<compile_context>
chip_gen: v5e
topology: v5e:2x2
jax: 0.10.0
libtpu: 0.0.40
codegen_flags: <defaults>
</compile_context>

<pallas_src>
import numpy as np

import jax
import jax.numpy as jnp
from jax import lax
from jax.experimental import pallas as pl
from jax.experimental.pallas import tpu as pltpu


# --------------------------- fused Pallas kernel -----------------------------

def _net_fused_kernel(x_ref, w1_ref, b1_ref, s1_ref, w2_ref, b2_ref, s2_ref,
                      wf1_ref, bf1_ref, wf2_ref, bf2_ref, o_ref):
    """Whole Net forward for one batch tile.

    x_ref:  (tb, 28, 28) f32   input images
    w1_ref: (5, 28, 512) bf16  conv1 Toeplitz bands; lane = cx*256 + px*20 + oc
    b1_ref: (1, 256)     f32   conv1 bias, lane = px*20 + oc
    s1_ref: (12, 23)     f32   even-row selection (y-pool) for conv1
    w2_ref: (5, 256, 512) bf16 conv2 Toeplitz bands; K lane = x_in*20 + ic,
                               out lane = cx*256 + px2*50 + oc2
    b2_ref: (1, 256)     f32   conv2 bias, lane = px2*50 + oc2
    s2_ref: (4, 7)       f32   even-row selection for conv2
    wf1_ref:(1024, 64)   bf16  fc1 weight remapped to the kernel's layout
    bf1_ref:(1, 64)      f32   fc1 bias (padded)
    wf2_ref:(1, 64)      f32   fc2 weight row (padded)
    bf2_ref:(1, 1)       f32   fc2 bias
    o_ref:  (1, tb, 1)   f32   output
    """
    tb = x_ref.shape[0]

    b1 = b1_ref[...]
    b2 = b2_ref[...]
    s1 = s1_ref[...]
    s2 = s2_ref[...]

    flats = []
    for b in range(tb):
        xb = x_ref[b].astype(jnp.bfloat16)                       # (28, 28)

        # conv1: 5 banded matmuls over full 28-wide rows (sublane slices only).
        out1 = jnp.zeros((24, 512), jnp.float32)
        for dh in range(5):
            out1 = out1 + jnp.dot(xb[dh:dh + 24, :], w1_ref[dh],
                                  preferred_element_type=jnp.float32)
        c1 = jnp.maximum(out1[:, :256], out1[:, 256:])           # pool over x
        c1 = jnp.maximum(c1 + b1, 0.0)                           # bias + ReLU
        m1 = jnp.maximum(c1[:-1, :], c1[1:, :])                  # pair-max in y
        p1 = jnp.dot(s1, m1, preferred_element_type=jnp.float32) # keep even rows
        p1 = p1.astype(jnp.bfloat16)                             # (12, 256)

        # conv2: same banded-matmul + fused-pool structure.
        out2 = jnp.zeros((8, 512), jnp.float32)
        for dh in range(5):
            out2 = out2 + jnp.dot(p1[dh:dh + 8, :], w2_ref[dh],
                                  preferred_element_type=jnp.float32)
        c2 = jnp.maximum(out2[:, :256], out2[:, 256:])
        c2 = jnp.maximum(c2 + b2, 0.0)
        m2 = jnp.maximum(c2[:-1, :], c2[1:, :])                  # (7, 256)
        p2 = jnp.dot(s2, m2, preferred_element_type=jnp.float32) # (4, 256)

        # flatten to one lane-dense row (lane-aligned 256-wide chunks).
        flats.append(jnp.concatenate([p2[0:1], p2[1:2], p2[2:3], p2[3:4]],
                                     axis=1))                    # (1, 1024)

    feat = jnp.concatenate(flats, axis=0).astype(jnp.bfloat16)   # (tb, 1024)

    # fc1 (+ReLU) on the whole tile, fc2 as VPU multiply + lane-sum.
    h = jnp.dot(feat, wf1_ref[...], preferred_element_type=jnp.float32)
    h = jnp.maximum(h + bf1_ref[...], 0.0)                       # (tb, 64)
    y = jnp.sum(h * wf2_ref[...], axis=-1, keepdims=True) + bf2_ref[...]
    o_ref[...] = y.reshape(1, tb, 1)


# --------------------------- pallas_call wrapper ------------------------------

def _pick_batch_tile(n, cap=8):
    """Largest divisor of n that is <= cap while leaving >=2 grid steps when
    possible (so v7x megacore has work on both TensorCores at small batch)."""
    if n <= 1:
        return 1
    best = 1
    for t in range(1, min(cap, n // 2) + 1):
        if n % t == 0:
            best = t
    return best


@jax.jit
def net_forward(x_nchw, prep):
    n = x_nchw.shape[0]
    x = x_nchw.reshape(n, 28, 28).astype(jnp.float32)
    tb = _pick_batch_tile(n)
    steps = n // tb

    out = pl.pallas_call(
        _net_fused_kernel,
        out_shape=jax.ShapeDtypeStruct((steps, tb, 1), jnp.float32),
        grid=(steps,),
        in_specs=[
            pl.BlockSpec((tb, 28, 28), lambda i: (i, 0, 0)),      # x (per tile)
            pl.BlockSpec((5, 28, 512), lambda i: (0, 0, 0)),      # conv1 bands
            pl.BlockSpec((1, 256), lambda i: (0, 0)),             # conv1 bias
            pl.BlockSpec((12, 23), lambda i: (0, 0)),             # y-pool sel 1
            pl.BlockSpec((5, 256, 512), lambda i: (0, 0, 0)),     # conv2 bands
            pl.BlockSpec((1, 256), lambda i: (0, 0)),             # conv2 bias
            pl.BlockSpec((4, 7), lambda i: (0, 0)),               # y-pool sel 2
            pl.BlockSpec((1024, 64), lambda i: (0, 0)),           # fc1 weight
            pl.BlockSpec((1, 64), lambda i: (0, 0)),              # fc1 bias
            pl.BlockSpec((1, 64), lambda i: (0, 0)),              # fc2 weight
            pl.BlockSpec((1, 1), lambda i: (0, 0)),               # fc2 bias
        ],
        out_specs=pl.BlockSpec((1, tb, 1), lambda i: (i, 0, 0)),
        compiler_params=pltpu.CompilerParams(
            dimension_semantics=("parallel",),
            vmem_limit_bytes=32 * 1024 * 1024,
        ),
    )(x, prep["w1"], prep["b1"], prep["s1"], prep["w2"], prep["b2"],
      prep["s2"], prep["wf1"], prep["bf1"], prep["wf2"], prep["bf2"])
    return out.reshape(n, 1)


# ----------------------------- parameter prep --------------------------------

def init_params(key):
    ks = jax.random.split(key, 8)

    def u(k, shape, fan_in):
        bound = 1.0 / jnp.sqrt(fan_in)
        return jax.random.uniform(k, shape, jnp.float32, -bound, bound)

    return {
        "conv1_w": u(ks[0], (20, 1, 5, 5), 1 * 5 * 5),
        "conv1_b": u(ks[1], (20,), 1 * 5 * 5),
        "conv2_w": u(ks[2], (50, 20, 5, 5), 20 * 5 * 5),
        "conv2_b": u(ks[3], (50,), 20 * 5 * 5),
        "fc1_w":   u(ks[4], (50, 4 * 4 * 50), 4 * 4 * 50),
        "fc1_b":   u(ks[5], (50,), 4 * 4 * 50),
        "fc2_w":   u(ks[6], (1, 50), 50),
        "fc2_b":   u(ks[7], (1,), 50),
    }


def prepare_params(params):
    """One-time host-side weight remap (hoisted out of the forward pass)."""
    c1w = np.asarray(params["conv1_w"], np.float32)   # (20, 1, 5, 5)
    c1b = np.asarray(params["conv1_b"], np.float32)   # (20,)
    c2w = np.asarray(params["conv2_w"], np.float32)   # (50, 20, 5, 5)
    c2b = np.asarray(params["conv2_b"], np.float32)   # (50,)
    f1w = np.asarray(params["fc1_w"], np.float32)     # (50, 800)
    f1b = np.asarray(params["fc1_b"], np.float32)     # (50,)
    f2w = np.asarray(params["fc2_w"], np.float32)     # (1, 50)
    f2b = np.asarray(params["fc2_b"], np.float32)     # (1,)

    # conv1 banded-Toeplitz weights: out lane = cx*256 + px*20 + oc,
    # x_out = 2*px + cx, contraction over the 28 input columns.
    W1 = np.zeros((5, 28, 512), np.float32)
    for dh in range(5):
        for px in range(12):
            for cx in range(2):
                xo = 2 * px + cx
                col0 = cx * 256 + px * 20
                for dw in range(5):
                    W1[dh, xo + dw, col0:col0 + 20] = c1w[:, 0, dh, dw]
    b1row = np.zeros((1, 256), np.float32)
    for px in range(12):
        b1row[0, px * 20:px * 20 + 20] = c1b
    S1 = np.zeros((12, 23), np.float32)
    S1[np.arange(12), 2 * np.arange(12)] = 1.0

    # conv2 banded-Toeplitz weights: K lane = x_in*20 + ic (pad to 256),
    # out lane = cx*256 + px2*50 + oc2, x_out = 2*px2 + cx.
    W2 = np.zeros((5, 256, 512), np.float32)
    for dh in range(5):
        for px2 in range(4):
            for cx in range(2):
                xo = 2 * px2 + cx
                col0 = cx * 256 + px2 * 50
                for dw in range(5):
                    xin = xo + dw
                    W2[dh, xin * 20:(xin + 1) * 20, col0:col0 + 50] = \
                        c2w[:, :, dh, dw].T          # (ic, oc2)
    b2row = np.zeros((1, 256), np.float32)
    for px2 in range(4):
        b2row[0, px2 * 50:px2 * 50 + 50] = c2b
    S2 = np.zeros((4, 7), np.float32)
    S2[np.arange(4), 2 * np.arange(4)] = 1.0

    # fc1 weight remapped to consume the kernel's pooled layout directly:
    # feature index f = py2*256 + px2*50 + oc2  <->  PyTorch's NCHW flatten
    # index oc2*16 + py2*4 + px2.
    Wf1 = np.zeros((1024, 64), np.float32)
    f1w_r = f1w.reshape(50, 50, 4, 4)                 # (o, oc2, py2, px2)
    for py2 in range(4):
        for px2 in range(4):
            r0 = py2 * 256 + px2 * 50
            Wf1[r0:r0 + 50, :50] = f1w_r[:, :, py2, px2].T   # (oc2, o)
    bf1 = np.zeros((1, 64), np.float32)
    bf1[0, :50] = f1b
    wf2 = np.zeros((1, 64), np.float32)
    wf2[0, :50] = f2w[0]
    bf2 = f2b.reshape(1, 1)

    return {
        "w1":  jnp.asarray(W1, jnp.bfloat16),
        "b1":  jnp.asarray(b1row),
        "s1":  jnp.asarray(S1),
        "w2":  jnp.asarray(W2, jnp.bfloat16),
        "b2":  jnp.asarray(b2row),
        "s2":  jnp.asarray(S2),
        "wf1": jnp.asarray(Wf1, jnp.bfloat16),
        "bf1": jnp.asarray(bf1),
        "wf2": jnp.asarray(wf2),
        "bf2": jnp.asarray(bf2),
    }


# ----------------------------- pure-JAX reference -----------------------------

def net_reference(x, params):
    """Pure-JAX reference (matches PyTorch semantics) for correctness check."""
    dn1 = lax.conv_dimension_numbers(x.shape, params["conv1_w"].shape,
                                     ("NCHW", "OIHW", "NCHW"))
    y = lax.conv_general_dilated(x, params["conv1_w"], (1, 1), "VALID",
                                 dimension_numbers=dn1,
                                 precision=lax.Precision.HIGHEST)
    y = jnp.maximum(y + params["conv1_b"][None, :, None, None], 0.0)
    y = lax.reduce_window(y, -jnp.inf, lax.max, (1, 1, 2, 2), (1, 1, 2, 2), "VALID")
    dn2 = lax.conv_dimension_numbers(y.shape, params["conv2_w"].shape,
                                     ("NCHW", "OIHW", "NCHW"))
    y = lax.conv_general_dilated(y, params["conv2_w"], (1, 1), "VALID",
                                 dimension_numbers=dn2,
                                 precision=lax.Precision.HIGHEST)
    y = jnp.maximum(y + params["conv2_b"][None, :, None, None], 0.0)
    y = lax.reduce_window(y, -jnp.inf, lax.max, (1, 1, 2, 2), (1, 1, 2, 2), "VALID")
    y = y.reshape(y.shape[0], -1)
    y = jnp.maximum(y @ params["fc1_w"].T + params["fc1_b"], 0.0)
    y = y @ params["fc2_w"].T + params["fc2_b"]
    return y


if __name__ == "__main__":
    key = jax.random.PRNGKey(0)
    k_x, k_p = jax.random.split(key)
    # fc1 (4*4*50 inputs) pins the input geometry to 1 channel, 28x28 spatial.
    x = jax.random.normal(k_x, (2, 1, 28, 28), jnp.float32)
    params = init_params(k_p)
    prep = prepare_params(params)          # one-time param prep (not per call)

    out = jax.block_until_ready(net_forward(x, prep))
    ref = jax.block_until_ready(net_reference(x, params))

    assert out.shape == (2, 1), out.shape
    max_err = float(jnp.max(jnp.abs(out - ref)))
    if max_err > 2e-2:   # bf16 operands / intermediates, f32 accumulation
        raise AssertionError(f"mismatch vs reference: max abs err {max_err}")
    print("KERNEL_OK")
</pallas_src>

<mosaic_0001>
module attributes {stable_mosaic.version = 11 : i64} {
  func.func @_net_fused_kernel(%arg0: i32, %arg1: memref<1x28x28xf32, #tpu.memory_space<vmem>>, %arg2: memref<5x28x512xbf16, #tpu.memory_space<vmem>>, %arg3: memref<1x256xf32, #tpu.memory_space<vmem>>, %arg4: memref<12x23xf32, #tpu.memory_space<vmem>>, %arg5: memref<5x256x512xbf16, #tpu.memory_space<vmem>>, %arg6: memref<1x256xf32, #tpu.memory_space<vmem>>, %arg7: memref<4x7xf32, #tpu.memory_space<vmem>>, %arg8: memref<1024x64xbf16, #tpu.memory_space<vmem>>, %arg9: memref<1x64xf32, #tpu.memory_space<vmem>>, %arg10: memref<1x64xf32, #tpu.memory_space<vmem>>, %arg11: memref<1x1xf32, #tpu.memory_space<vmem>>, %arg12: memref<1x1x1xf32, #tpu.memory_space<vmem>>) attributes {dimension_semantics = [#tpu.dimension_semantics<parallel>], iteration_bounds = array<i64: 2>, scalar_prefetch = 0 : i64, scratch_operands = 0 : i64, tpu.core_type = #tpu.core_type<tc>, window_params = [{transform_indices = @transform_0, window_bounds = array<i64: 1, 28, 28>}, {pipeline_mode = #tpu.pipeline_mode<synchronous>, transform_indices = @transform_1, window_bounds = array<i64: 5, 28, 512>}, {pipeline_mode = #tpu.pipeline_mode<synchronous>, transform_indices = @transform_2, window_bounds = array<i64: 1, 256>}, {pipeline_mode = #tpu.pipeline_mode<synchronous>, transform_indices = @transform_3, window_bounds = array<i64: 12, 23>}, {pipeline_mode = #tpu.pipeline_mode<synchronous>, transform_indices = @transform_4, window_bounds = array<i64: 5, 256, 512>}, {pipeline_mode = #tpu.pipeline_mode<synchronous>, transform_indices = @transform_5, window_bounds = array<i64: 1, 256>}, {pipeline_mode = #tpu.pipeline_mode<synchronous>, transform_indices = @transform_6, window_bounds = array<i64: 4, 7>}, {pipeline_mode = #tpu.pipeline_mode<synchronous>, transform_indices = @transform_7, window_bounds = array<i64: 1024, 64>}, {pipeline_mode = #tpu.pipeline_mode<synchronous>, transform_indices = @transform_8, window_bounds = array<i64: 1, 64>}, {pipeline_mode = #tpu.pipeline_mode<synchronous>, transform_indices = @transform_9, window_bounds = array<i64: 1, 64>}, {pipeline_mode = #tpu.pipeline_mode<synchronous>, transform_indices = @transform_10, window_bounds = array<i64: 1, 1>}, {transform_indices = @transform_11, window_bounds = array<i64: 1, 1, 1>}]} {
    %c0 = arith.constant 0 : index
    %c0_0 = arith.constant 0 : index
    %0 = vector.load %arg3[%c0, %c0_0] : memref<1x256xf32, #tpu.memory_space<vmem>>, vector<1x256xf32>
    %c0_1 = arith.constant 0 : index
    %c0_2 = arith.constant 0 : index
    %1 = vector.load %arg6[%c0_1, %c0_2] : memref<1x256xf32, #tpu.memory_space<vmem>>, vector<1x256xf32>
    %c0_3 = arith.constant 0 : index
    %c0_4 = arith.constant 0 : index
    %2 = vector.load %arg4[%c0_3, %c0_4] : memref<12x23xf32, #tpu.memory_space<vmem>>, vector<12x23xf32>
    %c0_5 = arith.constant 0 : index
    %c0_6 = arith.constant 0 : index
    %3 = vector.load %arg7[%c0_5, %c0_6] : memref<4x7xf32, #tpu.memory_space<vmem>>, vector<4x7xf32>
    %c0_7 = arith.constant 0 : index
    %c0_8 = arith.constant 0 : index
    %c0_9 = arith.constant 0 : index
    %4 = vector.load %arg1[%c0_7, %c0_8, %c0_9] : memref<1x28x28xf32, #tpu.memory_space<vmem>>, vector<1x28x28xf32>
    %5 = vector.shape_cast %4 : vector<1x28x28xf32> to vector<28x28xf32>
    %6 = arith.truncf %5 : vector<28x28xf32> to vector<28x28xbf16>
    %cst = arith.constant 0.000000e+00 : f32
    %7 = vector.broadcast %cst : f32 to vector<24x512xf32>
    %8 = vector.extract_strided_slice %6 {offsets = [0, 0], sizes = [24, 28], strides = [1, 1]} : vector<28x28xbf16> to vector<24x28xbf16>
    %c0_10 = arith.constant 0 : index
    %c0_11 = arith.constant 0 : index
    %c0_12 = arith.constant 0 : index
    %9 = vector.load %arg2[%c0_10, %c0_11, %c0_12] : memref<5x28x512xbf16, #tpu.memory_space<vmem>>, vector<1x28x512xbf16>
    %10 = vector.shape_cast %9 : vector<1x28x512xbf16> to vector<28x512xbf16>
    %cst_13 = arith.constant dense<0.000000e+00> : vector<24x512xf32>
    %11 = tpu.matmul %8, %10, %cst_13 {dimension_numbers = #tpu.dot_dimension_numbers<[1], [0], [0], [1], [0, 0, 1, 1], [], []>} : vector<24x28xbf16>, vector<28x512xbf16>, vector<24x512xf32> -> vector<24x512xf32>
    %12 = arith.addf %7, %11 : vector<24x512xf32>
    %13 = vector.extract_strided_slice %6 {offsets = [1, 0], sizes = [24, 28], strides = [1, 1]} : vector<28x28xbf16> to vector<24x28xbf16>
    %c1 = arith.constant 1 : index
    %c0_14 = arith.constant 0 : index
    %c0_15 = arith.constant 0 : index
    %14 = vector.load %arg2[%c1, %c0_14, %c0_15] : memref<5x28x512xbf16, #tpu.memory_space<vmem>>, vector<1x28x512xbf16>
    %15 = vector.shape_cast %14 : vector<1x28x512xbf16> to vector<28x512xbf16>
    %cst_16 = arith.constant dense<0.000000e+00> : vector<24x512xf32>
    %16 = tpu.matmul %13, %15, %cst_16 {dimension_numbers = #tpu.dot_dimension_numbers<[1], [0], [0], [1], [0, 0, 1, 1], [], []>} : vector<24x28xbf16>, vector<28x512xbf16>, vector<24x512xf32> -> vector<24x512xf32>
    %17 = arith.addf %12, %16 : vector<24x512xf32>
    %18 = vector.extract_strided_slice %6 {offsets = [2, 0], sizes = [24, 28], strides = [1, 1]} : vector<28x28xbf16> to vector<24x28xbf16>
    %c2 = arith.constant 2 : index
    %c0_17 = arith.constant 0 : index
    %c0_18 = arith.constant 0 : index
    %19 = vector.load %arg2[%c2, %c0_17, %c0_18] : memref<5x28x512xbf16, #tpu.memory_space<vmem>>, vector<1x28x512xbf16>
    %20 = vector.shape_cast %19 : vector<1x28x512xbf16> to vector<28x512xbf16>
    %cst_19 = arith.constant dense<0.000000e+00> : vector<24x512xf32>
    %21 = tpu.matmul %18, %20, %cst_19 {dimension_numbers = #tpu.dot_dimension_numbers<[1], [0], [0], [1], [0, 0, 1, 1], [], []>} : vector<24x28xbf16>, vector<28x512xbf16>, vector<24x512xf32> -> vector<24x512xf32>
    %22 = arith.addf %17, %21 : vector<24x512xf32>
    %23 = vector.extract_strided_slice %6 {offsets = [3, 0], sizes = [24, 28], strides = [1, 1]} : vector<28x28xbf16> to vector<24x28xbf16>
    %c3 = arith.constant 3 : index
    %c0_20 = arith.constant 0 : index
    %c0_21 = arith.constant 0 : index
    %24 = vector.load %arg2[%c3, %c0_20, %c0_21] : memref<5x28x512xbf16, #tpu.memory_space<vmem>>, vector<1x28x512xbf16>
    %25 = vector.shape_cast %24 : vector<1x28x512xbf16> to vector<28x512xbf16>
    %cst_22 = arith.constant dense<0.000000e+00> : vector<24x512xf32>
    %26 = tpu.matmul %23, %25, %cst_22 {dimension_numbers = #tpu.dot_dimension_numbers<[1], [0], [0], [1], [0, 0, 1, 1], [], []>} : vector<24x28xbf16>, vector<28x512xbf16>, vector<24x512xf32> -> vector<24x512xf32>
    %27 = arith.addf %22, %26 : vector<24x512xf32>
    %28 = vector.extract_strided_slice %6 {offsets = [4, 0], sizes = [24, 28], strides = [1, 1]} : vector<28x28xbf16> to vector<24x28xbf16>
    %c4 = arith.constant 4 : index
    %c0_23 = arith.constant 0 : index
    %c0_24 = arith.constant 0 : index
    %29 = vector.load %arg2[%c4, %c0_23, %c0_24] : memref<5x28x512xbf16, #tpu.memory_space<vmem>>, vector<1x28x512xbf16>
    %30 = vector.shape_cast %29 : vector<1x28x512xbf16> to vector<28x512xbf16>
    %cst_25 = arith.constant dense<0.000000e+00> : vector<24x512xf32>
    %31 = tpu.matmul %28, %30, %cst_25 {dimension_numbers = #tpu.dot_dimension_numbers<[1], [0], [0], [1], [0, 0, 1, 1], [], []>} : vector<24x28xbf16>, vector<28x512xbf16>, vector<24x512xf32> -> vector<24x512xf32>
    %32 = arith.addf %27, %31 : vector<24x512xf32>
    %33 = vector.extract_strided_slice %32 {offsets = [0, 0], sizes = [24, 256], strides = [1, 1]} : vector<24x512xf32> to vector<24x256xf32>
    %34 = vector.extract_strided_slice %32 {offsets = [0, 256], sizes = [24, 256], strides = [1, 1]} : vector<24x512xf32> to vector<24x256xf32>
    %35 = arith.maximumf %33, %34 : vector<24x256xf32>
    %36 = vector.broadcast %0 : vector<1x256xf32> to vector<24x256xf32>
    %37 = arith.addf %35, %36 : vector<24x256xf32>
    %cst_26 = arith.constant 0.000000e+00 : f32
    %38 = vector.broadcast %cst_26 : f32 to vector<24x256xf32>
    %39 = arith.maximumf %37, %38 : vector<24x256xf32>
    %40 = vector.extract_strided_slice %39 {offsets = [0, 0], sizes = [23, 256], strides = [1, 1]} : vector<24x256xf32> to vector<23x256xf32>
    %41 = vector.extract_strided_slice %39 {offsets = [1, 0], sizes = [23, 256], strides = [1, 1]} : vector<24x256xf32> to vector<23x256xf32>
    %42 = arith.maximumf %40, %41 : vector<23x256xf32>
    %cst_27 = arith.constant dense<0.000000e+00> : vector<12x256xf32>
    %43 = tpu.matmul %2, %42, %cst_27 {dimension_numbers = #tpu.dot_dimension_numbers<[1], [0], [0], [1], [0, 0, 1, 1], [], []>} : vector<12x23xf32>, vector<23x256xf32>, vector<12x256xf32> -> vector<12x256xf32>
    %44 = arith.truncf %43 : vector<12x256xf32> to vector<12x256xbf16>
    %cst_28 = arith.constant 0.000000e+00 : f32
    %45 = vector.broadcast %cst_28 : f32 to vector<8x512xf32>
    %46 = vector.extract_strided_slice %44 {offsets = [0, 0], sizes = [8, 256], strides = [1, 1]} : vector<12x256xbf16> to vector<8x256xbf16>
    %c0_29 = arith.constant 0 : index
    %c0_30 = arith.constant 0 : index
    %c0_31 = arith.constant 0 : index
    %47 = vector.load %arg5[%c0_29, %c0_30, %c0_31] : memref<5x256x512xbf16, #tpu.memory_space<vmem>>, vector<1x256x512xbf16>
    %48 = vector.shape_cast %47 : vector<1x256x512xbf16> to vector<256x512xbf16>
    %cst_32 = arith.constant dense<0.000000e+00> : vector<8x512xf32>
    %49 = tpu.matmul %46, %48, %cst_32 {dimension_numbers = #tpu.dot_dimension_numbers<[1], [0], [0], [1], [0, 0, 1, 1], [], []>} : vector<8x256xbf16>, vector<256x512xbf16>, vector<8x512xf32> -> vector<8x512xf32>
    %50 = arith.addf %45, %49 : vector<8x512xf32>
    %51 = vector.extract_strided_slice %44 {offsets = [1, 0], sizes = [8, 256], strides = [1, 1]} : vector<12x256xbf16> to vector<8x256xbf16>
    %c1_33 = arith.constant 1 : index
    %c0_34 = arith.constant 0 : index
    %c0_35 = arith.constant 0 : index
    %52 = vector.load %arg5[%c1_33, %c0_34, %c0_35] : memref<5x256x512xbf16, #tpu.memory_space<vmem>>, vector<1x256x512xbf16>
    %53 = vector.shape_cast %52 : vector<1x256x512xbf16> to vector<256x512xbf16>
    %cst_36 = arith.constant dense<0.000000e+00> : vector<8x512xf32>
    %54 = tpu.matmul %51, %53, %cst_36 {dimension_numbers = #tpu.dot_dimension_numbers<[1], [0], [0], [1], [0, 0, 1, 1], [], []>} : vector<8x256xbf16>, vector<256x512xbf16>, vector<8x512xf32> -> vector<8x512xf32>
    %55 = arith.addf %50, %54 : vector<8x512xf32>
    %56 = vector.extract_strided_slice %44 {offsets = [2, 0], sizes = [8, 256], strides = [1, 1]} : vector<12x256xbf16> to vector<8x256xbf16>
    %c2_37 = arith.constant 2 : index
    %c0_38 = arith.constant 0 : index
    %c0_39 = arith.constant 0 : index
    %57 = vector.load %arg5[%c2_37, %c0_38, %c0_39] : memref<5x256x512xbf16, #tpu.memory_space<vmem>>, vector<1x256x512xbf16>
    %58 = vector.shape_cast %57 : vector<1x256x512xbf16> to vector<256x512xbf16>
    %cst_40 = arith.constant dense<0.000000e+00> : vector<8x512xf32>
    %59 = tpu.matmul %56, %58, %cst_40 {dimension_numbers = #tpu.dot_dimension_numbers<[1], [0], [0], [1], [0, 0, 1, 1], [], []>} : vector<8x256xbf16>, vector<256x512xbf16>, vector<8x512xf32> -> vector<8x512xf32>
    %60 = arith.addf %55, %59 : vector<8x512xf32>
    %61 = vector.extract_strided_slice %44 {offsets = [3, 0], sizes = [8, 256], strides = [1, 1]} : vector<12x256xbf16> to vector<8x256xbf16>
    %c3_41 = arith.constant 3 : index
    %c0_42 = arith.constant 0 : index
    %c0_43 = arith.constant 0 : index
    %62 = vector.load %arg5[%c3_41, %c0_42, %c0_43] : memref<5x256x512xbf16, #tpu.memory_space<vmem>>, vector<1x256x512xbf16>
    %63 = vector.shape_cast %62 : vector<1x256x512xbf16> to vector<256x512xbf16>
    %cst_44 = arith.constant dense<0.000000e+00> : vector<8x512xf32>
    %64 = tpu.matmul %61, %63, %cst_44 {dimension_numbers = #tpu.dot_dimension_numbers<[1], [0], [0], [1], [0, 0, 1, 1], [], []>} : vector<8x256xbf16>, vector<256x512xbf16>, vector<8x512xf32> -> vector<8x512xf32>
    %65 = arith.addf %60, %64 : vector<8x512xf32>
    %66 = vector.extract_strided_slice %44 {offsets = [4, 0], sizes = [8, 256], strides = [1, 1]} : vector<12x256xbf16> to vector<8x256xbf16>
    %c4_45 = arith.constant 4 : index
    %c0_46 = arith.constant 0 : index
    %c0_47 = arith.constant 0 : index
    %67 = vector.load %arg5[%c4_45, %c0_46, %c0_47] : memref<5x256x512xbf16, #tpu.memory_space<vmem>>, vector<1x256x512xbf16>
    %68 = vector.shape_cast %67 : vector<1x256x512xbf16> to vector<256x512xbf16>
    %cst_48 = arith.constant dense<0.000000e+00> : vector<8x512xf32>
    %69 = tpu.matmul %66, %68, %cst_48 {dimension_numbers = #tpu.dot_dimension_numbers<[1], [0], [0], [1], [0, 0, 1, 1], [], []>} : vector<8x256xbf16>, vector<256x512xbf16>, vector<8x512xf32> -> vector<8x512xf32>
    %70 = arith.addf %65, %69 : vector<8x512xf32>
    %71 = vector.extract_strided_slice %70 {offsets = [0, 0], sizes = [8, 256], strides = [1, 1]} : vector<8x512xf32> to vector<8x256xf32>
    %72 = vector.extract_strided_slice %70 {offsets = [0, 256], sizes = [8, 256], strides = [1, 1]} : vector<8x512xf32> to vector<8x256xf32>
    %73 = arith.maximumf %71, %72 : vector<8x256xf32>
    %74 = vector.broadcast %1 : vector<1x256xf32> to vector<8x256xf32>
    %75 = arith.addf %73, %74 : vector<8x256xf32>
    %cst_49 = arith.constant 0.000000e+00 : f32
    %76 = vector.broadcast %cst_49 : f32 to vector<8x256xf32>
    %77 = arith.maximumf %75, %76 : vector<8x256xf32>
    %78 = vector.extract_strided_slice %77 {offsets = [0, 0], sizes = [7, 256], strides = [1, 1]} : vector<8x256xf32> to vector<7x256xf32>
    %79 = vector.extract_strided_slice %77 {offsets = [1, 0], sizes = [7, 256], strides = [1, 1]} : vector<8x256xf32> to vector<7x256xf32>
    %80 = arith.maximumf %78, %79 : vector<7x256xf32>
    %cst_50 = arith.constant dense<0.000000e+00> : vector<4x256xf32>
    %81 = tpu.matmul %3, %80, %cst_50 {dimension_numbers = #tpu.dot_dimension_numbers<[1], [0], [0], [1], [0, 0, 1, 1], [], []>} : vector<4x7xf32>, vector<7x256xf32>, vector<4x256xf32> -> vector<4x256xf32>
    %82 = vector.extract_strided_slice %81 {offsets = [0, 0], sizes = [1, 256], strides = [1, 1]} : vector<4x256xf32> to vector<1x256xf32>
    %83 = vector.extract_strided_slice %81 {offsets = [1, 0], sizes = [1, 256], strides = [1, 1]} : vector<4x256xf32> to vector<1x256xf32>
    %84 = vector.extract_strided_slice %81 {offsets = [2, 0], sizes = [1, 256], strides = [1, 1]} : vector<4x256xf32> to vector<1x256xf32>
    %85 = vector.extract_strided_slice %81 {offsets = [3, 0], sizes = [1, 256], strides = [1, 1]} : vector<4x256xf32> to vector<1x256xf32>
    %86 = tpu.concatenate %82, %83, %84, %85 in 1 : vector<1x256xf32>, vector<1x256xf32>, vector<1x256xf32>, vector<1x256xf32> -> vector<1x1024xf32>
    %87 = arith.truncf %86 : vector<1x1024xf32> to vector<1x1024xbf16>
    %c0_51 = arith.constant 0 : index
    %c0_52 = arith.constant 0 : index
    %88 = vector.load %arg8[%c0_51, %c0_52] : memref<1024x64xbf16, #tpu.memory_space<vmem>>, vector<1024x64xbf16>
    %cst_53 = arith.constant dense<0.000000e+00> : vector<1x64xf32>
    %89 = tpu.matmul %87, %88, %cst_53 {dimension_numbers = #tpu.dot_dimension_numbers<[1], [0], [0], [1], [0, 0, 1, 1], [], []>} : vector<1x1024xbf16>, vector<1024x64xbf16>, vector<1x64xf32> -> vector<1x64xf32>
    %c0_54 = arith.constant 0 : index
    %c0_55 = arith.constant 0 : index
    %90 = vector.load %arg9[%c0_54, %c0_55] : memref<1x64xf32, #tpu.memory_space<vmem>>, vector<1x64xf32>
    %91 = arith.addf %89, %90 : vector<1x64xf32>
    %cst_56 = arith.constant 0.000000e+00 : f32
    %92 = vector.broadcast %cst_56 : f32 to vector<1x64xf32>
    %93 = arith.maximumf %91, %92 : vector<1x64xf32>
    %c0_57 = arith.constant 0 : index
    %c0_58 = arith.constant 0 : index
    %94 = vector.load %arg10[%c0_57, %c0_58] : memref<1x64xf32, #tpu.memory_space<vmem>>, vector<1x64xf32>
    %95 = arith.mulf %93, %94 : vector<1x64xf32>
    %cst_59 = arith.constant dense<0.000000e+00> : vector<1xf32>
    %96 = vector.multi_reduction <add>, %95, %cst_59 [1] : vector<1x64xf32> to vector<1xf32>
    %97 = vector.shape_cast %96 : vector<1xf32> to vector<1x1xf32>
    %c0_60 = arith.constant 0 : index
    %c0_61 = arith.constant 0 : index
    %98 = vector.load %arg11[%c0_60, %c0_61] : memref<1x1xf32, #tpu.memory_space<vmem>>, vector<1x1xf32>
    %99 = arith.addf %97, %98 : vector<1x1xf32>
    %100 = vector.shape_cast %99 : vector<1x1xf32> to vector<1x1x1xf32>
    %c0_62 = arith.constant 0 : index
    %c0_63 = arith.constant 0 : index
    %c0_64 = arith.constant 0 : index
    %101 = vector.load %arg12[%c0_62, %c0_63, %c0_64] : memref<1x1x1xf32, #tpu.memory_space<vmem>>, vector<1x1x1xf32>
    tpu.vector_store %arg12[%c0_62, %c0_63, %c0_64], %100 {strides = array<i32>} : memref<1x1x1xf32, #tpu.memory_space<vmem>>, vector<1x1x1xf32>,
    return
  }
  func.func @transform_0(%arg0: i32) -> (i32, i32, i32) {
    %c0_i32 = arith.constant 0 : i32
    %c0_i32_0 = arith.constant 0 : i32
    %c0_i32_1 = arith.constant 0 : i32
    return %arg0, %c0_i32, %c0_i32_0 : i32, i32, i32
  }
  func.func @transform_1(%arg0: i32) -> (i32, i32, i32) {
    %c0_i32 = arith.constant 0 : i32
    %c0_i32_0 = arith.constant 0 : i32
    %c0_i32_1 = arith.constant 0 : i32
    %c0_i32_2 = arith.constant 0 : i32
    return %c0_i32, %c0_i32_0, %c0_i32_1 : i32, i32, i32
  }
  func.func @transform_2(%arg0: i32) -> (i32, i32) {
    %c0_i32 = arith.constant 0 : i32
    %c0_i32_0 = arith.constant 0 : i32
    %c0_i32_1 = arith.constant 0 : i32
    return %c0_i32, %c0_i32_0 : i32, i32
  }
  func.func @transform_3(%arg0: i32) -> (i32, i32) {
    %c0_i32 = arith.constant 0 : i32
    %c0_i32_0 = arith.constant 0 : i32
    %c0_i32_1 = arith.constant 0 : i32
    return %c0_i32, %c0_i32_0 : i32, i32
  }
  func.func @transform_4(%arg0: i32) -> (i32, i32, i32) {
    %c0_i32 = arith.constant 0 : i32
    %c0_i32_0 = arith.constant 0 : i32
    %c0_i32_1 = arith.constant 0 : i32
    %c0_i32_2 = arith.constant 0 : i32
    return %c0_i32, %c0_i32_0, %c0_i32_1 : i32, i32, i32
  }
  func.func @transform_5(%arg0: i32) -> (i32, i32) {
    %c0_i32 = arith.constant 0 : i32
    %c0_i32_0 = arith.constant 0 : i32
    %c0_i32_1 = arith.constant 0 : i32
    return %c0_i32, %c0_i32_0 : i32, i32
  }
  func.func @transform_6(%arg0: i32) -> (i32, i32) {
    %c0_i32 = arith.constant 0 : i32
    %c0_i32_0 = arith.constant 0 : i32
    %c0_i32_1 = arith.constant 0 : i32
    return %c0_i32, %c0_i32_0 : i32, i32
  }
  func.func @transform_7(%arg0: i32) -> (i32, i32) {
    %c0_i32 = arith.constant 0 : i32
    %c0_i32_0 = arith.constant 0 : i32
    %c0_i32_1 = arith.constant 0 : i32
    return %c0_i32, %c0_i32_0 : i32, i32
  }
  func.func @transform_8(%arg0: i32) -> (i32, i32) {
    %c0_i32 = arith.constant 0 : i32
    %c0_i32_0 = arith.constant 0 : i32
    %c0_i32_1 = arith.constant 0 : i32
    return %c0_i32, %c0_i32_0 : i32, i32
  }
  func.func @transform_9(%arg0: i32) -> (i32, i32) {
    %c0_i32 = arith.constant 0 : i32
    %c0_i32_0 = arith.constant 0 : i32
    %c0_i32_1 = arith.constant 0 : i32
    return %c0_i32, %c0_i32_0 : i32, i32
  }
  func.func @transform_10(%arg0: i32) -> (i32, i32) {
    %c0_i32 = arith.constant 0 : i32
    %c0_i32_0 = arith.constant 0 : i32
    %c0_i32_1 = arith.constant 0 : i32
    return %c0_i32, %c0_i32_0 : i32, i32
  }
  func.func @transform_11(%arg0: i32) -> (i32, i32, i32) {
    %c0_i32 = arith.constant 0 : i32
    %c0_i32_0 = arith.constant 0 : i32
    %c0_i32_1 = arith.constant 0 : i32
    return %arg0, %c0_i32, %c0_i32_0 : i32, i32, i32
  }
}

</mosaic_0001>

<bundles_post_ra>
// kernel: net_forward.1
= control target key start
LH: loop header
LB: loop body
LE: loop exit
PB: predicated region body
PF: predicated region fallthrough
CT: control target
= control target key end

     0   :  { %s7966_s0 = inlined_call_operand.vmem [shape: f32[2,28,28], index: 0, kind: input, shape index: {}]   ;;  %s7967_s1 = inlined_call_operand.hbm [shape: bf16[5,28,512], index: 1, kind: input, shape index: {}]   ;;  %s7968_s2 = inlined_call_operand.hbm [shape: f32[1,256], index: 2, kind: input, shape index: {}]   ;;  %s7969_s3 = inlined_call_operand.hbm [shape: f32[12,23], index: 3, kind: input, shape index: {}]   ;;  %s7970_s4 = inlined_call_operand.hbm [shape: bf16[5,256,512], index: 4, kind: input, shape index: {}]   ;;  %s7971_s5 = inlined_call_operand.hbm [shape: f32[1,256], index: 5, kind: input, shape index: {}]   ;;  %s7972_s6 = inlined_call_operand.hbm [shape: f32[4,7], index: 6, kind: input, shape index: {}]   ;;  %s7973_s7 = inlined_call_operand.vmem [shape: bf16[1024,64], index: 7, kind: input, shape index: {}]   ;;  %s7974_s8 = inlined_call_operand.hbm [shape: f32[1,64], index: 8, kind: input, shape index: {}]   ;;  %s7975_s9 = inlined_call_operand.hbm [shape: f32[1,64], index: 9, kind: input, shape index: {}]   ;;  %s7976_s10 = inlined_call_operand.<no memory space> [shape: f32[1,1], index: 10, kind: input, shape index: {}]   ;;  %s7977_s11 = inlined_call_operand.vmem [shape: f32[2,1,1], index: 11, kind: output, shape index: {}]  }
   0x1   :  { %v16_v0 = vstv %s7976_s10 }
   0x2   :  { %17 = vst [vmem:[#allocation2] sm:$0x1] %v16_v0 }
   0x3   :  { %18 = vsyncpa [#allocation4], 0 }
   0x4   :  { %19 = vsyncpa [#allocation6], 0 }
   0x5   :  { %20 = vsyncpa [#allocation9], 0 }
   0x6   :  { %21 = vsyncpa [#allocation12], 0 }
   0x7   :  { %22 = vsyncpa [#allocation15], 0  ;;  %s7366_s19 = smov 0  }
   0x8 LB: > { %s321_s10 = sshll.u32 %s7968_s2, 4  ;;  %s7375_s22 = sadd.s32 4294967295, %s7289_s19   ;;  %s7289_s19 = sphi %s7366_s19, %s28_s19   ;;  %s322_s10 = int_to_ptr.hbm [resolvable:$true] %s321_s10 }
   0x9   : > { %p4736_p0 = scmp.ge.s32.totalorder %s7289_s19, 1  ;;  %p295_p1 = scmp.lt.s32.totalorder %s7289_s19, 3 }
   0xa   : > { %p6987_p2 = scmp.eq.s32.totalorder %s7375_s22, 0  ;;  %s7291_s24 = smov [#allocation5]  }
   0xb   : > { %p7380_p3 = pnand %p4736_p0, %p295_p1  ;;  %s323_s25 = sshll.u32 %s7291_s24, 4  ;;  %s324_s25 = int_to_ptr.vmem [resolvable:$true] %s323_s25 }
   0xc   : > { %s346_s28 = sshll.u32 %s7970_s4, 4  ;;  %s7292_s30 = smov [#allocation8]   ;;  %s347_s28 = int_to_ptr.hbm [resolvable:$true] %s346_s28 }
   0xd   : > { %p6962_p4 = pneg %p7380_p3  ;;  %s348_s12 = sshll.u32 %s7292_s30, 4  ;;  %s349_s12 = int_to_ptr.vmem [resolvable:$true] %s348_s12 }
   0xe   : > { %s373_s15 = sshll.u32 %s7972_s6, 4  ;;  %s7293_s16 = smov 256   ;;  %s374_s15 = int_to_ptr.hbm [resolvable:$true] %s373_s15 }
   0xf   : > { %p7391_p5 = pnand %p6987_p2, %p6962_p4  ;;  %s7294_s17 = smov 16  }
  0x10   : > { %s7295_s18 = smov [#allocation11]   ;;  %s306_s26 = sshll.u32 %s7967_s1, 4  ;;  %s307_s26 = int_to_ptr.hbm [resolvable:$true] %s306_s26 }
  0x11   : > { %6968 = dma.hbm_to_vmem [thread:$0]  (!%p7391_p5), %s322_s10, 32, %s324_s25, [#allocation6]  }
  0x12   : > { %6974 = dma.hbm_to_vmem [thread:$0]  (!%p7391_p5), %s347_s28, 40960, %s349_s12, [#allocation9], %s7293_s16, %s7293_s16, %s7294_s17  }
  0x13   : > { %s375_s20 = sshll.u32 %s7295_s18, 4  ;;  %s332_s10 = sshll.u32 %s7969_s3, 4  ;;  %s376_s20 = int_to_ptr.vmem [resolvable:$true] %s375_s20  ;;  %s333_s10 = int_to_ptr.hbm [resolvable:$true] %s332_s10 }
  0x14   : > { %6980 = dma.hbm_to_vmem [thread:$0]  (!%p7391_p5), %s374_s15, 64, %s376_s20, [#allocation12]  }
  0x15   : > { %s7296_s25 = smov [#allocation3]   ;;  %s7297_s28 = smov [#allocation7]  }
  0x16   : > { %s308_s13 = sshll.u32 %s7296_s25, 4  ;;  %s334_s12 = sshll.u32 %s7297_s28, 4  ;;  %s309_s13 = int_to_ptr.vmem [resolvable:$true] %s308_s13  ;;  %s335_s12 = int_to_ptr.vmem [resolvable:$true] %s334_s12 }
  0x17   : > { %6965 = dma.hbm_to_vmem [thread:$0]  (!%p7391_p5), %s307_s26, 5120, %s309_s13, [#allocation4], %s7293_s16, %s7293_s16, %s7294_s17  }
  0x18   : > { %s7298_s14 = smov 128   ;;  %s7299_s18 = smov 8  }
  0x19   : > { %6971 = dma.hbm_to_vmem [thread:$0]  (!%p7391_p5), %s333_s10, 256, %s335_s12, [#allocation6], %s7298_s14, %s7298_s14, %s7299_s18  }
  0x1a   : > { %s361_s21 = sshll.u32 %s7971_s5, 4  ;;  %s7300_s24 = smov [#allocation10]   ;;  %s362_s21 = int_to_ptr.hbm [resolvable:$true] %s361_s21 }
  0x1b   : > { %s363_s27 = sshll.u32 %s7300_s24, 4  ;;  %s388_s16 = sshll.u32 %s7974_s8, 4  ;;  %s364_s27 = int_to_ptr.vmem [resolvable:$true] %s363_s27  ;;  %s389_s16 = int_to_ptr.hbm [resolvable:$true] %s388_s16 }
  0x1c   : > { %6977 = dma.hbm_to_vmem [thread:$0]  (!%p7391_p5), %s362_s21, 32, %s364_s27, [#allocation9]  }
  0x1d   : > { %s7301_s17 = smov [#allocation13]   ;;  %s400_s28 = sshll.u32 %s7975_s9, 4  ;;  %s401_s28 = int_to_ptr.hbm [resolvable:$true] %s400_s28 }
  0x1e   : > { %s390_s26 = sshll.u32 %s7301_s17, 4  ;;  %s7302_s12 = smov [#allocation14]   ;;  %s391_s26 = int_to_ptr.vmem [resolvable:$true] %s390_s26 }
  0x1f   : > { %6983 = dma.hbm_to_vmem [thread:$0]  (!%p7391_p5), %s389_s16, 16, %s391_s26, [#allocation12]  }
  0x20   : > { %s402_s14 = sshll.u32 %s7302_s12, 4  ;;  %426 = sbr.rel (%p7380_p3) target bundleno = 1326 (0x52e), region = 64  ;;  %s403_s14 = int_to_ptr.vmem [resolvable:$true] %s402_s14 }
  0x21   : > { %6986 = dma.hbm_to_vmem [thread:$0]  (!%p7391_p5), %s401_s28, 16, %s403_s14, [#allocation15]  }
  0x25   : > { %7268 = dma.done.wait (%p6987_p2), [#allocation4], 5120  }
  0x26   : > { %7270 = vsyncadd (%p6987_p2), [#allocation4], 4294962176 }
  0x27   : > { %7272 = dma.done.wait (%p6987_p2), [#allocation6], 288  }
  0x28   : > { %7274 = vsyncadd (%p6987_p2), [#allocation6], 4294967008 }
  0x29   : > { %7276 = dma.done.wait (%p6987_p2), [#allocation9], 40992  }
  0x2a   : > { %7278 = vsyncadd (%p6987_p2), [#allocation9], 4294926304 }
  0x2b   : > { %7280 = dma.done.wait (%p6987_p2), [#allocation12], 80  }
  0x2c   : > { %7282 = vsyncadd (%p6987_p2), [#allocation12], 4294967216 }
  0x2d   : > { %7284 = dma.done.wait (%p6987_p2), [#allocation15], 16  }
  0x2e   : > { %7286 = vsyncadd (%p6987_p2), [#allocation15], 4294967280  ;;  %p500_p6 = scmp.lt.s32.totalorder %s7375_s22, 1  ;;  %vm608_vm0 = vcmask 1045504   ;;  %v4775_v1 = vld [vmem:[#allocation3 + $0x60] sm:$0xf] }
  0x2f   : > { %v6520_v2 = vld [vmem:[#allocation3 + $0x6c] sm:$0x30]  ;;  %v6518_v3 = vld [vmem:[#allocation3 + $0x64] sm:$0xf]  ;;  %v4777_v5 = vld [vmem:[#allocation3 + $0x70] sm:$0x30] }
  0x30   : > { %s7981_s22 = smov (!%p500_p6, %s7375_s22), 1  ;;  %v4776_v4 = vor.u32 %v6520_v2, %v4775_v1  ;;  %v4783_v6 = vld [vmem:[#allocation3 + $0x68] sm:$0xf]  ;;  %v6521_v7 = vld [vmem:[#allocation3 + $0x74] sm:$0x30]  ;;  %v4780_v8 = vor.u32 %v6518_v3, %v4777_v5  ;;  %vm601_vm2 = vcmask 228352  }
  0x31   : > { %s6505_s23 = sshll.u32 %s7981_s22, 5  ;;  %v4784_v9 = vor.u32 %v6521_v7, %v4783_v6  ;;  %v6519_v10 = vld [vmem:[#allocation3 + $0x6c] sm:$0xf]  ;;  %v4785_v11 = vld [vmem:[#allocation3 + $0x78] sm:$0x30]  ;;  %vm828_vm4 = vcmask 1046528   ;;  %s507_s30 = scalar_lea.vmem %s7977_s11, %s7981_s22 }
  0x32   : > { %s7459_s15 = scalar_lea.vmem %s7966_s0, %s6505_s23  ;;  %v4759_v12 = vld [vmem:[#allocation3 + $0x40] sm:$0xf]  ;;  %v610_v13 = vsel %vm608_vm0, %v4776_v4, 0  ;;  %v4788_v14 = vor.u32 %v6519_v10, %v4785_v11  ;;  %v6516_v15 = vld [vmem:[#allocation3 + $0x4c] sm:$0xf0]  ;;  %v613_v18 = vsel %vm608_vm0, %v4780_v8, 0 }
  0x33   : > { %v6514_v16 = vld [vmem:[#allocation3 + $0x44] sm:$0xf]  ;;  %627 = vmatpush.bf16.msra.mxu0 %v610_v13  ;;  %v616_v19 = vsel %vm608_vm0, %v4784_v9, 0  ;;  %v4760_v20 = vor.u32 %v6516_v15, %v4759_v12  ;;  %v4761_v21 = vld [vmem:[#allocation3 + $0x50] sm:$0xf0]  ;;  %645 = vmatpush.bf16.msra.mxu1 %v613_v18  ;;  %vm1328_vm5 = vcmask 187392  }
  0x34   : > { %v514_v17 = vld [vmem:[%s7459_s15] sm:$0xff]  ;;  %v4767_v22 = vld [vmem:[#allocation3 + $0x48] sm:$0xf]  ;;  %663 = vmatpush.bf16.msra.mxu2 %v616_v19  ;;  %v619_v24 = vsel %vm608_vm0, %v4788_v14, 0  ;;  %v4764_v25 = vor.u32 %v6514_v16, %v4761_v21  ;;  %v6517_v26 = vld [vmem:[#allocation3 + $0x54] sm:$0xf0] }
  0x35   : > { %v518_v23 = vpack.c.bf16 %v514_v17, %v514_v17  ;;  %v6515_v27 = vld [vmem:[#allocation3 + $0x4c] sm:$0xf]  ;;  %681 = vmatpush.bf16.msra.mxu3 %v619_v24  ;;  %v4768_v29 = vor.u32 %v6517_v26, %v4767_v22  ;;  %v4769_v30 = vld [vmem:[#allocation3 + $0x58] sm:$0xf0]  ;;  %v517_v32 = vld [vmem:[%s7459_s15 + $0x18] sm:$0xf] }
  0x36   : > { %v515_v28 = vld [vmem:[%s7459_s15 + $0x8] sm:$0xff]  ;;  %v516_v31 = vld [vmem:[%s7459_s15 + $0x10] sm:$0xff]  ;;  %v4772_v35 = vor.u32 %v6515_v27, %v4769_v30  ;;  %v521_v37 = vpack.c.bf16 %v517_v32, %v517_v32  ;;  %v4815_v38 = vld [vmem:[#allocation3 + $0x20] sm:$0xf]  ;;  %vm549_vm1 = vsmask.f32 7424 }
  0x37   : > { %v519_v33 = vpack.c.bf16 %v515_v28, %v515_v28  ;;  %v543_v34 = vunpack.c.l.b16 %v518_v23  ;;  %v520_v36 = vpack.c.bf16 %v516_v31, %v516_v31  ;;  %v6512_v39 = vld [vmem:[#allocation3 + $0x2c] sm:$0x30]  ;;  %v6510_v40 = vld [vmem:[#allocation3 + $0x24] sm:$0xf]  ;;  %628 = vmatpush.bf16.msra.mxu0 %v4760_v20  ;;  %v4817_v43 = vld [vmem:[#allocation3 + $0x30] sm:$0x30]  ;;  %646 = vmatpush.bf16.msra.mxu1 %v4764_v25 }
  0x38   : > { %v4816_v42 = vor.u32 %v6512_v39, %v4815_v38  ;;  %v4823_v44 = vld [vmem:[#allocation3 + $0x28] sm:$0xf]  ;;  %v6513_v45 = vld [vmem:[#allocation3 + $0x34] sm:$0x30]  ;;  %664 = vmatpush.bf16.msra.mxu2 %v4768_v29  ;;  %v546_v47 = vunpack.c.l.b16 %v521_v37  ;;  %v4820_v48 = vor.u32 %v6510_v40, %v4817_v43  ;;  %v6511_v50 = vld [vmem:[#allocation3 + $0x2c] sm:$0xf] }
  0x39   : > { %v544_v41 = vunpack.c.l.b16 %v519_v33  ;;  %v7469_v46 = vunpack.c.l.b16 %v520_v36  ;;  %v4824_v49 = vor.u32 %v6513_v45, %v4823_v44  ;;  %v4825_v51 = vld [vmem:[#allocation3 + $0x38] sm:$0x30]  ;;  %v4799_v52 = vld [vmem:[#allocation3] sm:$0xf]  ;;  %682 = vmatpush.bf16.msra.mxu3 %v4772_v35  ;;  %v6508_v56 = vld [vmem:[#allocation3 + $0xc] sm:$0xf0] }
  0x3a   : > { %v736_v54 = vsel %vm608_vm0, %v4816_v42, 0  ;;  %v4828_v55 = vor.u32 %v6511_v50, %v4825_v51  ;;  %v6506_v57 = vld [vmem:[#allocation3 + $0x4] sm:$0xf]  ;;  %v739_v59 = vsel %vm608_vm0, %v4820_v48, 0  ;;  %v4800_v61 = vor.u32 %v6508_v56, %v4799_v52  ;;  %v4801_v62 = vld [vmem:[#allocation3 + $0x10] sm:$0xf0] }
  0x3b   : > { %v7471_v53 = vpack.c.b16 %v544_v41, %v543_v34  ;;  %v7475_v58 = vpack.c.b16 %v546_v47, %v7469_v46  ;;  %753 = vmatpush.bf16.msrb.mxu0 %v736_v54  ;;  %v742_v60 = vsel %vm608_vm0, %v4824_v49, 0  ;;  %v4807_v63 = vld [vmem:[#allocation3 + $0x8] sm:$0xf]  ;;  %771 = vmatpush.bf16.msrb.mxu1 %v739_v59  ;;  %v4804_v3 = vor.u32 %v6506_v57, %v4801_v62  ;;  %v6509_v4 = vld [vmem:[#allocation3 + $0x14] sm:$0xf0] }
  0x3c   : > { %789 = vmatpush.bf16.msrb.mxu2 %v742_v60  ;;  %v745_v2 = vsel %vm608_vm0, %v4828_v55, 0  ;;  %v4808_v7 = vor.u32 %v6509_v4, %v4807_v63  ;;  %v6507_v8 = vld [vmem:[#allocation3 + $0xc] sm:$0xf]  ;;  %v4809_v9 = vld [vmem:[#allocation3 + $0x18] sm:$0xf0]  ;;  %v693_v48 = vpack.c.b16 %v7469_v46, %v7469_v46  ;;  %vm3908_vm6 = vcmask 56320  }
  0x3d   : > { %v551_v0 = vshrl.u32 %v7471_v53, 16  ;;  %v553_v1 = vshll.u32 %v7471_v53, 16  ;;  %v558_v5 = vshll.u32 %v7475_v58, 16  ;;  %v562_v6 = vshrl.u32 %v7475_v58, 16  ;;  %807 = vmatpush.bf16.msrb.mxu3 %v745_v2  ;;  %v4855_v19 = vld [vmem:[#allocation3 + $0xa0] sm:$0xf] }
  0x3e   : > { %v4812_v11 = vor.u32 %v6507_v8, %v4809_v9  ;;  %v6528_v20 = vld [vmem:[#allocation3 + $0xac] sm:$0x30]  ;;  %v6526_v21 = vld [vmem:[#allocation3 + $0xa4] sm:$0xf]  ;;  %v4857_v23 = vld [vmem:[#allocation3 + $0xb0] sm:$0x30] }
  0x3f   : > { %v555_v10 = vrot.slane %v553_v1, 1  ;;  %v560_v12 = vrot.slane %v558_v5, 1  ;;  %v984_v13 = vrot.slane %v558_v5, 2  ;;  %v983_v14 = vrot.slane %v562_v6, 1  ;;  %754 = vmatpush.bf16.msrb.mxu0 %v4800_v61  ;;  %772 = vmatpush.bf16.msrb.mxu1 %v4804_v3  ;;  %v4863_v24 = vld [vmem:[#allocation3 + $0xa8] sm:$0xf] }
  0x40   : > { %790 = vmatpush.bf16.msrb.mxu2 %v4808_v7  ;;  %v4856_v22 = vor.u32 %v6528_v20, %v4855_v19  ;;  %v6529_v25 = vld [vmem:[#allocation3 + $0xb4] sm:$0x30]  ;;  %v4860_v26 = vor.u32 %v6526_v21, %v4857_v23  ;;  %v6527_v28 = vld [vmem:[#allocation3 + $0xac] sm:$0xf]  ;;  %v4865_v29 = vld [vmem:[#allocation3 + $0xb8] sm:$0x30] }
  0x41   : > { %v556_v15 = vor.u32 %v555_v10, %v551_v0  ;;  %v7488_v16 = vor.u32 %v984_v13, %v983_v14  ;;  %808 = vmatpush.bf16.msrb.mxu3 %v4812_v11  ;;  %v564_v18 = vor.u32 %v562_v6, %v560_v12  ;;  %v4864_v27 = vor.u32 %v6529_v25, %v4863_v24  ;;  %v4839_v30 = vld [vmem:[#allocation3 + $0x80] sm:$0xf]  ;;  %v6524_v33 = vld [vmem:[#allocation3 + $0x8c] sm:$0xf0]  ;;  %v6522_v34 = vld [vmem:[#allocation3 + $0x84] sm:$0xf] }
  0x42   : > { %v875_v31 = vsel %vm608_vm0, %v4856_v22, 0  ;;  %v4868_v32 = vor.u32 %v6527_v28, %v4865_v29  ;;  %v878_v35 = vsel %vm608_vm0, %v4860_v26, 0  ;;  %v4840_v37 = vor.u32 %v6524_v33, %v4839_v30  ;;  %v4841_v38 = vld [vmem:[#allocation3 + $0x90] sm:$0xf0]  ;;  %v4847_v39 = vld [vmem:[#allocation3 + $0x88] sm:$0xf] }
  0x43   : > { %v561_v17 = vsel %vm549_vm1, %v556_v15, %v560_v12  ;;  %v881_v36 = vsel %vm608_vm0, %v4864_v27, 0  ;;  %v4844_v41 = vor.u32 %v6522_v34, %v4841_v38  ;;  %v6525_v42 = vld [vmem:[#allocation3 + $0x94] sm:$0xf0]  ;;  %v6523_v43 = vld [vmem:[#allocation3 + $0x8c] sm:$0xf]  ;;  %v980_v49 = vrot.slane %v551_v0, 1 }
  0x44   : > { %4789 = vmatmul.msk.bf16.vlgmr.msra.gmra.mxu0 %vm601_vm2, %v561_v17  ;;  %4791 = vmatmul.msk.bf16.vlgmr.msra.gmra.mxu1 %vm601_vm2, %v561_v17  ;;  %v884_v40 = vsel %vm608_vm0, %v4868_v32, 0  ;;  %v4848_v44 = vor.u32 %v6525_v42, %v4847_v39  ;;  %v4849_v45 = vld [vmem:[#allocation3 + $0x98] sm:$0xf0]  ;;  %v4895_v50 = vld [vmem:[#allocation3 + $0xe0] sm:$0xf]  ;;  %v981_v4 = vrot.slane %v553_v1, 2 }
  0x45   : > { %4793 = vmatmul.msk.bf16.vlgmr.msra.gmra.mxu2 %vm601_vm2, %v561_v17  ;;  %4795 = vmatmul.msk.bf16.vlgmr.msra.gmra.mxu3 %vm601_vm2, %v561_v17  ;;  %v4852_v47 = vor.u32 %v6523_v43, %v4849_v45  ;;  %v6536_v51 = vld [vmem:[#allocation3 + $0xec] sm:$0x30]  ;;  %v6534_v52 = vld [vmem:[#allocation3 + $0xe4] sm:$0xf]  ;;  %v4897_v55 = vld [vmem:[#allocation3 + $0xf0] sm:$0x30] }
  0x46   : > { %892 = vmatpush.bf16.msra.mxu0 %v875_v31  ;;  %910 = vmatpush.bf16.msra.mxu1 %v878_v35  ;;  %v4896_v54 = vor.u32 %v6536_v51, %v4895_v50  ;;  %v4903_v56 = vld [vmem:[#allocation3 + $0xe8] sm:$0xf]  ;;  %v6537_v57 = vld [vmem:[#allocation3 + $0xf4] sm:$0x30]  ;;  %v4900_v59 = vor.u32 %v6534_v52, %v4897_v55  ;;  %v6535_v60 = vld [vmem:[#allocation3 + $0xec] sm:$0xf]  ;;  %v982_v14 = vor.u32 %v981_v4, %v980_v49 }
  0x47   : > { %928 = vmatpush.bf16.msra.mxu2 %v881_v36  ;;  %946 = vmatpush.bf16.msra.mxu3 %v884_v40  ;;  %v4904_v46 = vor.u32 %v6537_v57, %v4903_v56  ;;  %v4905_v61 = vld [vmem:[#allocation3 + $0xf8] sm:$0x30]  ;;  %v4879_v62 = vld [vmem:[#allocation3 + $0xc0] sm:$0xf]  ;;  %v6532_v2 = vld [vmem:[#allocation3 + $0xcc] sm:$0xf0] }
  0x48   : > { %v1030_v63 = vsel %vm608_vm0, %v4896_v54, 0  ;;  %v4908_v0 = vor.u32 %v6535_v60, %v4905_v61  ;;  %v6530_v3 = vld [vmem:[#allocation3 + $0xc4] sm:$0xf]  ;;  %v1033_v5 = vsel %vm608_vm0, %v4900_v59, 0  ;;  %v4880_v7 = vor.u32 %v6532_v2, %v4879_v62  ;;  %v4881_v8 = vld [vmem:[#allocation3 + $0xd0] sm:$0xf0] }
  0x49   : > { %v1036_v6 = vsel %vm608_vm0, %v4904_v46, 0  ;;  %v4887_v9 = vld [vmem:[#allocation3 + $0xc8] sm:$0xf]  ;;  %v4884_v11 = vor.u32 %v6530_v3, %v4881_v8  ;;  %v6533_v12 = vld [vmem:[#allocation3 + $0xd4] sm:$0xf0]  ;;  %v829_v19 = vrot.slane %v7471_v53, 1 }
  0x4a   : > { %893 = vmatpush.bf16.msra.mxu0 %v4840_v37  ;;  %911 = vmatpush.bf16.msra.mxu1 %v4844_v41  ;;  %v1039_v10 = vsel %vm608_vm0, %v4908_v0, 0  ;;  %v6531_v13 = vld [vmem:[#allocation3 + $0xcc] sm:$0xf]  ;;  %v4888_v15 = vor.u32 %v6533_v12, %v4887_v9  ;;  %v4889_v17 = vld [vmem:[#allocation3 + $0xd8] sm:$0xf0]  ;;  %v830_v20 = vrot.slane %v7475_v58, 1 }
  0x4b   : > { %929 = vmatpush.bf16.msra.mxu2 %v4848_v44  ;;  %947 = vmatpush.bf16.msra.mxu3 %v4852_v47  ;;  %vm979_vm3 = vsmask.f32 6400  ;;  %v4892_v1 = vor.u32 %v6531_v13, %v4889_v17  ;;  %v4935_v22 = vld [vmem:[#allocation3 + $0x120] sm:$0xf]  ;;  %v6544_v23 = vld [vmem:[#allocation3 + $0x12c] sm:$0x30] }
  0x4c   : > { %v831_v21 = vsel %vm828_vm4, %v829_v19, %v830_v20  ;;  %v6542_v24 = vld [vmem:[#allocation3 + $0x124] sm:$0xf]  ;;  %v4936_v25 = vor.u32 %v6544_v23, %v4935_v22  ;;  %v4937_v26 = vld [vmem:[#allocation3 + $0x130] sm:$0x30]  ;;  %v4943_v27 = vld [vmem:[#allocation3 + $0x128] sm:$0xf] }
  0x4d   : > { %v6545_v28 = vld [vmem:[#allocation3 + $0x134] sm:$0x30]  ;;  %v4940_v29 = vor.u32 %v6542_v24, %v4937_v26  ;;  %v6543_v31 = vld [vmem:[#allocation3 + $0x12c] sm:$0xf]  ;;  %v4945_v32 = vld [vmem:[#allocation3 + $0x138] sm:$0x30] }
  0x4e   : > { %v4944_v30 = vor.u32 %v6545_v28, %v4943_v27  ;;  %v1181_v33 = vsel %vm608_vm0, %v4936_v25, 0  ;;  %v4948_v34 = vor.u32 %v6543_v31, %v4945_v32  ;;  %v4919_v38 = vld [vmem:[#allocation3 + $0x100] sm:$0xf]  ;;  %v6540_v39 = vld [vmem:[#allocation3 + $0x10c] sm:$0xf0]  ;;  %v1135_v51 = vrot.slane %v7471_v53, 2 }
  0x4f   : > { %v1184_v35 = vsel %vm608_vm0, %v4940_v29, 0  ;;  %v6538_v40 = vld [vmem:[#allocation3 + $0x104] sm:$0xf]  ;;  %v4920_v41 = vor.u32 %v6540_v39, %v4919_v38  ;;  %v4921_v42 = vld [vmem:[#allocation3 + $0x110] sm:$0xf0]  ;;  %v1136_v52 = vrot.slane %v7475_v58, 2 }
  0x50   : > { %v1187_v36 = vsel %vm608_vm0, %v4944_v30, 0  ;;  %v1190_v37 = vsel %vm608_vm0, %v4948_v34, 0  ;;  %v4927_v43 = vld [vmem:[#allocation3 + $0x108] sm:$0xf]  ;;  %v6541_v44 = vld [vmem:[#allocation3 + $0x114] sm:$0xf0]  ;;  %v4924_v45 = vor.u32 %v6538_v40, %v4921_v42 }
  0x51   : > { %v4928_v47 = vor.u32 %v6541_v44, %v4927_v43  ;;  %v4929_v49 = vld [vmem:[#allocation3 + $0x118] sm:$0xf0]  ;;  %v1137_v56 = vsel %vm608_vm0, %v1135_v51, %v1136_v52  ;;  %vm4600_vm7 = vcmask 516096   ;;  %vm4606_vm8 = vcmask 0  }
  0x54   : > { %4790 = vmatmul.msk.bf16.gmra.mxu0 %vm601_vm2, %v564_v18  ;;  %4792 = vmatmul.msk.bf16.gmra.mxu1 %vm601_vm2, %v564_v18 }
  0x55   : > { %4794 = vmatmul.msk.bf16.gmra.mxu2 %vm601_vm2, %v564_v18  ;;  %4796 = vmatmul.msk.bf16.gmra.mxu3 %vm601_vm2, %v564_v18  ;;  %v986_v18 = vsel %vm979_vm3, %v982_v14, %v7488_v16 }
  0x64   : > { %4829 = vmatmul.msk.bf16.vlgmr.msrb.gmra.mxu0 %vm601_vm2, %v7471_v53  ;;  %4831 = vmatmul.msk.bf16.vlgmr.msrb.gmra.mxu1 %vm601_vm2, %v7471_v53 }
  0x65   : > { %4833 = vmatmul.msk.bf16.vlgmr.msrb.gmra.mxu2 %vm601_vm2, %v7471_v53  ;;  %4835 = vmatmul.msk.bf16.vlgmr.msrb.gmra.mxu3 %vm601_vm2, %v7471_v53 }
  0x66   : > { %1047 = vmatpush.bf16.msrb.mxu0 %v1030_v63  ;;  %1065 = vmatpush.bf16.msrb.mxu1 %v1033_v5 }
  0x67   : > { %1083 = vmatpush.bf16.msrb.mxu2 %v1036_v6  ;;  %1101 = vmatpush.bf16.msrb.mxu3 %v1039_v10 }
  0x6a   : > { %1048 = vmatpush.bf16.msrb.mxu0 %v4880_v7  ;;  %1066 = vmatpush.bf16.msrb.mxu1 %v4884_v11 }
  0x6b   : > { %1084 = vmatpush.bf16.msrb.mxu2 %v4888_v15  ;;  %1102 = vmatpush.bf16.msrb.mxu3 %v4892_v1 }
  0x74   : > { %4830 = vmatmul.msk.bf16.gmra.mxu0 %vm601_vm2, %v693_v48  ;;  %4832 = vmatmul.msk.bf16.gmra.mxu1 %vm601_vm2, %v693_v48 }
  0x75   : > { %4834 = vmatmul.msk.bf16.gmra.mxu2 %vm601_vm2, %v693_v48  ;;  %4836 = vmatmul.msk.bf16.gmra.mxu3 %vm601_vm2, %v693_v48  ;;  %v6539_v48 = vld [vmem:[#allocation3 + $0x10c] sm:$0xf] }
  0x76   : > { %v4932_v50 = vor.u32 %v6539_v48, %v4929_v49 }
  0x84   : > { %4869 = vmatmul.msk.bf16.vlgmr.msra.gmra.mxu0 %vm601_vm2, %v831_v21  ;;  %4871 = vmatmul.msk.bf16.vlgmr.msra.gmra.mxu1 %vm601_vm2, %v831_v21 }
  0x85   : > { %4873 = vmatmul.msk.bf16.vlgmr.msra.gmra.mxu2 %vm601_vm2, %v831_v21  ;;  %4875 = vmatmul.msk.bf16.vlgmr.msra.gmra.mxu3 %vm601_vm2, %v831_v21 }
  0x86   : > { %1198 = vmatpush.bf16.msra.mxu0 %v1181_v33  ;;  %1216 = vmatpush.bf16.msra.mxu1 %v1184_v35 }
  0x87   : > { %1234 = vmatpush.bf16.msra.mxu2 %v1187_v36  ;;  %1252 = vmatpush.bf16.msra.mxu3 %v1190_v37 }
  0x8a   : > { %1199 = vmatpush.bf16.msra.mxu0 %v4920_v41  ;;  %1217 = vmatpush.bf16.msra.mxu1 %v4924_v45 }
  0x8b   : > { %1235 = vmatpush.bf16.msra.mxu2 %v4928_v47  ;;  %1253 = vmatpush.bf16.msra.mxu3 %v4932_v50 }
  0x94   : > { %4870 = vmatmul.msk.bf16.gmra.mxu0 %vm601_vm2, %v830_v20  ;;  %4872 = vmatmul.msk.bf16.gmra.mxu1 %vm601_vm2, %v830_v20 }
  0x95   : > { %4874 = vmatmul.msk.bf16.gmra.mxu2 %vm601_vm2, %v830_v20  ;;  %4876 = vmatmul.msk.bf16.gmra.mxu3 %vm601_vm2, %v830_v20 }
  0xa4   : > { %4909 = vmatmul.msk.bf16.vlgmr.msrb.gmra.mxu0 %vm601_vm2, %v986_v18  ;;  %4911 = vmatmul.msk.bf16.vlgmr.msrb.gmra.mxu1 %vm601_vm2, %v986_v18 }
  0xa5   : > { %4913 = vmatmul.msk.bf16.vlgmr.msrb.gmra.mxu2 %vm601_vm2, %v986_v18  ;;  %4915 = vmatmul.msk.bf16.vlgmr.msrb.gmra.mxu3 %vm601_vm2, %v986_v18 }
  0xb4   : > { %4910 = vmatmul.msk.bf16.gmra.mxu0 %vm601_vm2, %v7488_v16  ;;  %4912 = vmatmul.msk.bf16.gmra.mxu1 %vm601_vm2, %v7488_v16 }
  0xb5   : > { %4914 = vmatmul.msk.bf16.gmra.mxu2 %vm601_vm2, %v7488_v16  ;;  %4916 = vmatmul.msk.bf16.gmra.mxu3 %vm601_vm2, %v7488_v16 }
  0xc1   : > { %v630_v54 = vpop.f32.mrf.mxu0  ;;  %v648_v55 = vpop.f32.mrf.mxu1 }
  0xc4   : > { %4949 = vmatmul.msk.bf16.vlgmr.msra.gmra.mxu0 %vm601_vm2, %v1137_v56  ;;  %4951 = vmatmul.msk.bf16.vlgmr.msra.gmra.mxu1 %vm601_vm2, %v1137_v56 }
  0xc5   : > { %4953 = vmatmul.msk.bf16.vlgmr.msra.gmra.mxu2 %vm601_vm2, %v1137_v56  ;;  %4955 = vmatmul.msk.bf16.vlgmr.msra.gmra.mxu3 %vm601_vm2, %v1137_v56 }
  0xc8   : > { %v666_v57 = vpop.f32.mrf.mxu2  ;;  %v684_v59 = vpop.f32.mrf.mxu3 }
  0xc9   : > { %v7559_v46 = vpop.f32.mrf.mxu0  ;;  %v7561_v16 = vpop.f32.mrf.mxu1 }
  0xd0   : > { %v7563_v53 = vpop.f32.mrf.mxu2  ;;  %v7565_v58 = vpop.f32.mrf.mxu3 }
  0xd1   : > { %v635_v60 = vpop.f32.mrf.mxu0  ;;  %v653_v61 = vpop.f32.mrf.mxu1 }
  0xd4   : > { %4950 = vmatmul.msk.bf16.gmra.mxu0 %vm601_vm2, %v1136_v52  ;;  %4952 = vmatmul.msk.bf16.gmra.mxu1 %vm601_vm2, %v1136_v52 }
  0xd5   : > { %4954 = vmatmul.msk.bf16.gmra.mxu2 %vm601_vm2, %v1136_v52  ;;  %4956 = vmatmul.msk.bf16.gmra.mxu3 %vm601_vm2, %v1136_v52 }
  0xd8   : > { %v671_v62 = vpop.f32.mrf.mxu2  ;;  %v689_v63 = vpop.f32.mrf.mxu3 }
  0xd9   : > { %v637_v0 = vpop.f32.mrf.mxu0  ;;  %v655_v2 = vpop.f32.mrf.mxu1 }
  0xe0   : > { %v673_v3 = vpop.f32.mrf.mxu2  ;;  %v691_v4 = vpop.f32.mrf.mxu3 }
  0xe1   : > { %v756_v5 = vpop.f32.mrf.mxu0  ;;  %v774_v6 = vpop.f32.mrf.mxu1 }
  0xe2   : > { %v757_v7 = vadd.f32 %v756_v5, %v630_v54  ;;  %v775_v8 = vadd.f32 %v774_v6, %v648_v55 }
  0xe8   : > { %v792_v9 = vpop.f32.mrf.mxu2  ;;  %v810_v10 = vpop.f32.mrf.mxu3 }
  0xe9   : > { %v793_v11 = vadd.f32 %v792_v9, %v666_v57  ;;  %v811_v12 = vadd.f32 %v810_v10, %v684_v59  ;;  %v7571_v13 = vpop.f32.mrf.mxu0  ;;  %v7573_v14 = vpop.f32.mrf.mxu1 }
  0xf0   : > { %v7575_v15 = vpop.f32.mrf.mxu2  ;;  %v7577_v17 = vpop.f32.mrf.mxu3 }
  0xf1   : > { %v761_v1 = vpop.f32.mrf.mxu0  ;;  %v779_v18 = vpop.f32.mrf.mxu1 }
  0xf2   : > { %v762_v19 = vadd.f32 %v761_v1, %v635_v60  ;;  %v780_v20 = vadd.f32 %v779_v18, %v653_v61 }
  0xf8   : > { %v797_v21 = vpop.f32.mrf.mxu2  ;;  %v815_v22 = vpop.f32.mrf.mxu3 }
  0xf9   : > { %v7579_v23 = vadd.f32 %v797_v21, %v671_v62  ;;  %v7581_v24 = vadd.f32 %v815_v22, %v689_v63  ;;  %v763_v25 = vpop.f32.mrf.mxu0  ;;  %v781_v26 = vpop.f32.mrf.mxu1 }
 0x100   : > { %v799_v27 = vpop.f32.mrf.mxu2  ;;  %v817_v28 = vpop.f32.mrf.mxu3 }
 0x101   : > { %v895_v29 = vpop.f32.mrf.mxu0  ;;  %v913_v30 = vpop.f32.mrf.mxu1  ;;  %v795_v27 = vadd.f32 %v7575_v15, %v7563_v53  ;;  %v813_v28 = vadd.f32 %v7577_v17, %v7565_v58 }
 0x102   : > { %v958_v31 = vadd.f32 %v895_v29, %v757_v7  ;;  %v959_v32 = vadd.f32 %v913_v30, %v775_v8 }
 0x108   : > { %v931_v33 = vpop.f32.mrf.mxu2  ;;  %v949_v34 = vpop.f32.mrf.mxu3 }
 0x109   : > { %v960_v35 = vadd.f32 %v931_v33, %v793_v11  ;;  %v961_v36 = vadd.f32 %v949_v34, %v811_v12  ;;  %v897_v37 = vpop.f32.mrf.mxu0  ;;  %v915_v38 = vpop.f32.mrf.mxu1 }
 0x110   : > { %v933_v39 = vpop.f32.mrf.mxu2  ;;  %v951_v40 = vpop.f32.mrf.mxu3 }
 0x111   : > { %v900_v41 = vpop.f32.mrf.mxu0  ;;  %v918_v42 = vpop.f32.mrf.mxu1  ;;  %v964_v33 = vadd.f32 %v933_v39, %v795_v27  ;;  %v965_v34 = vadd.f32 %v951_v40, %v813_v28  ;;  %v6672_v39 = vld [vmem:[#allocation8 + $0x3ec] sm:$0xf0] }
 0x112   : > { %v7583_v43 = vadd.f32 %v900_v41, %v762_v19  ;;  %v7585_v44 = vadd.f32 %v918_v42, %v780_v20 }
 0x118   : > { %v7587_v45 = vpop.f32.mrf.mxu2  ;;  %v7589_v47 = vpop.f32.mrf.mxu3 }
 0x119   : > { %v902_v48 = vpop.f32.mrf.mxu0  ;;  %v920_v49 = vpop.f32.mrf.mxu1 }
 0x120   : > { %v938_v50 = vpop.f32.mrf.mxu2  ;;  %v956_v51 = vpop.f32.mrf.mxu3 }
 0x121   : > { %v1050_v52 = vpop.f32.mrf.mxu0  ;;  %v1068_v54 = vpop.f32.mrf.mxu1 }
 0x122   : > { %v1113_v9 = vadd.f32 %v1050_v52, %v958_v31  ;;  %v1114_v10 = vadd.f32 %v1068_v54, %v959_v32  ;;  %v759_v31 = vadd.f32 %v7571_v13, %v7559_v46  ;;  %v777_v32 = vadd.f32 %v7573_v14, %v7561_v16  ;;  %v5077_v46 = vld [vmem:[#allocation8 + $0x2e0] sm:$0xf]  ;;  %v6640_v13 = vld [vmem:[#allocation8 + $0x2ec] sm:$0xf0]  ;;  %v509_v16 = vld [vmem:[#allocation5] sm:$0x3] }
 0x123   : > { %v5078_v14 = vor.u32 %v6640_v13, %v5077_v46 }
 0x125   : > { %1862 = vmatpush.bf16.msrb.mxu2 %v5078_v14 }
 0x128   : > { %v1086_v55 = vpop.f32.mrf.mxu2  ;;  %v1104_v56 = vpop.f32.mrf.mxu3 }
 0x129   : > { %v1052_v57 = vpop.f32.mrf.mxu0  ;;  %v1070_v59 = vpop.f32.mrf.mxu1  ;;  %v1115_v11 = vadd.f32 %v1086_v55, %v960_v35  ;;  %v1116_v12 = vadd.f32 %v1104_v56, %v961_v36  ;;  %v962_v35 = vadd.f32 %v897_v37, %v759_v31  ;;  %v963_v36 = vadd.f32 %v915_v38, %v777_v32  ;;  %v5205_v55 = vld [vmem:[#allocation8 + $0x3e0] sm:$0xf]  ;;  %v6628_v31 = vld [vmem:[#allocation8 + $0x28c] sm:$0xf0] }
 0x12a   : > { %v5206_v40 = vor.u32 %v6672_v39, %v5205_v55  ;;  %v5061_v56 = vld [vmem:[#allocation8 + $0x2c0] sm:$0xf] }
 0x12b   : > { %v1117_v41 = vadd.f32 %v1052_v57, %v962_v35  ;;  %v1118_v58 = vadd.f32 %v1070_v59, %v963_v36  ;;  %v968_v57 = vadd.f32 %v7587_v45, %v7579_v23  ;;  %v969_v59 = vadd.f32 %v7589_v47, %v7581_v24  ;;  %v5045_v24 = vld [vmem:[#allocation8 + $0x2a0] sm:$0xf] }
 0x12c   : > { %1875 = vmatpush.bf16.msrb.mxu3 %v5206_v40  ;;  %v5157_v32 = vld [vmem:[#allocation8 + $0x380] sm:$0xf] }
 0x130   : > { %v1088_v60 = vpop.f32.mrf.mxu2  ;;  %v1106_v61 = vpop.f32.mrf.mxu3 }
 0x131   : > { %v7591_v62 = vpop.f32.mrf.mxu0  ;;  %v7593_v63 = vpop.f32.mrf.mxu1  ;;  %v1119_v53 = vadd.f32 %v1088_v60, %v964_v33  ;;  %v1120_v15 = vadd.f32 %v1106_v61, %v965_v34  ;;  %v6636_v60 = vld [vmem:[#allocation8 + $0x2cc] sm:$0xf0]  ;;  %v5189_v61 = vld [vmem:[#allocation8 + $0x3c0] sm:$0xf] }
 0x132   : > { %v6660_v33 = vld [vmem:[#allocation8 + $0x38c] sm:$0xf0] }
 0x138   : > { %v7595_v0 = vpop.f32.mrf.mxu2  ;;  %v7597_v2 = vpop.f32.mrf.mxu3 }
 0x139   : > { %v1057_v3 = vpop.f32.mrf.mxu0  ;;  %v1075_v4 = vpop.f32.mrf.mxu1  ;;  %v1123_v23 = vadd.f32 %v7595_v0, %v968_v57  ;;  %v1124_v45 = vadd.f32 %v7597_v2, %v969_v59  ;;  %v6638_v59 = vld [vmem:[#allocation8 + $0x2e4] sm:$0xf] }
 0x13a   : > { %v6668_v3 = vld [vmem:[#allocation8 + $0x3cc] sm:$0xf0]  ;;  %v1283_v4 = vperm.slane %v509_v16, 0 }
 0x140   : > { %v1093_v5 = vpop.f32.mrf.mxu2  ;;  %v1111_v6 = vpop.f32.mrf.mxu3 }
 0x141   : > { %v1201_v7 = vpop.f32.mrf.mxu0  ;;  %v1219_v8 = vpop.f32.mrf.mxu1  ;;  %v1284_v5 = vperm.slane %v509_v16, 1  ;;  %v5062_v6 = vor.u32 %v6636_v60, %v5061_v56  ;;  %v5079_v60 = vld [vmem:[#allocation8 + $0x2f0] sm:$0xf0] }
 0x142   : > { %v7599_v19 = vadd.f32 %v1201_v7, %v1113_v9  ;;  %v7601_v20 = vadd.f32 %v1219_v8, %v1114_v10  ;;  %v5190_v7 = vor.u32 %v6668_v3, %v5189_v61  ;;  %v1121_v8 = vadd.f32 %v7591_v62, %v7583_v43 }
 0x143   : > { %v1122_v9 = vadd.f32 %v7593_v63, %v7585_v44  ;;  %1863 = vmatpush.bf16.msrb.mxu2 %v5062_v6  ;;  %v6670_v6 = vld [vmem:[#allocation8 + $0x3e4] sm:$0xf] }
 0x144   : > { %1876 = vmatpush.bf16.msrb.mxu3 %v5190_v7  ;;  %v5207_v7 = vld [vmem:[#allocation8 + $0x3f0] sm:$0xf0] }
 0x148   : > { %v1237_v1 = vpop.f32.mrf.mxu2  ;;  %v1255_v18 = vpop.f32.mrf.mxu3 }
 0x149   : > { %v7603_v21 = vadd.f32 %v1237_v1, %v1115_v11  ;;  %v7605_v22 = vadd.f32 %v1255_v18, %v1116_v12  ;;  %v1203_v25 = vpop.f32.mrf.mxu0  ;;  %v1221_v26 = vpop.f32.mrf.mxu1  ;;  %v6632_v1 = vld [vmem:[#allocation8 + $0x2ac] sm:$0xf0]  ;;  %v5173_v18 = vld [vmem:[#allocation8 + $0x3a0] sm:$0xf] }
 0x14a   : > { %v1268_v52 = vadd.f32 %v1203_v25, %v1117_v41  ;;  %v1269_v54 = vadd.f32 %v1221_v26, %v1118_v58  ;;  %v5046_v0 = vor.u32 %v6632_v1, %v5045_v24  ;;  %v5029_v26 = vld [vmem:[#allocation8 + $0x280] sm:$0xf]  ;;  %v5158_v41 = vor.u32 %v6660_v33, %v5157_v32  ;;  %v6634_v1 = vld [vmem:[#allocation8 + $0x2c4] sm:$0xf] }
 0x14b   : > { %v1276_v29 = vmax.f32 %v7599_v19, %v7603_v21  ;;  %v1277_v30 = vmax.f32 %v7601_v20, %v7605_v22  ;;  %v6664_v19 = vld [vmem:[#allocation8 + $0x3ac] sm:$0xf0]  ;;  %v5013_v58 = vld [vmem:[#allocation8 + $0x260] sm:$0xf]  ;;  %v5082_v24 = vor.u32 %v6638_v59, %v5079_v60 }
 0x14c   : > { %v5174_v2 = vor.u32 %v6664_v19, %v5173_v18  ;;  %1864 = vmatpush.bf16.msrb.mxu2 %v5046_v0  ;;  %v5063_v18 = vld [vmem:[#allocation8 + $0x2d0] sm:$0xf0]  ;;  %v6666_v19 = vld [vmem:[#allocation8 + $0x3c4] sm:$0xf]  ;;  %v4965_v33 = vld [vmem:[#allocation8 + $0x200] sm:$0xf] }
 0x14d   : > { %v7629_v44 = vadd.f32 %v1283_v4, %v1276_v29  ;;  %v7631_v63 = vadd.f32 %v1284_v5, %v1277_v30 }
 0x14e   : > { %1877 = vmatpush.bf16.msrb.mxu3 %v5174_v2  ;;  %v6630_v2 = vld [vmem:[#allocation8 + $0x2a4] sm:$0xf] }
 0x14f   : > { %v1293_v29 = vmax.f32 %v7629_v44, 0.0  ;;  %v1294_v30 = vmax.f32 %v7631_v63, 0.0  ;;  %v6648_v44 = vld [vmem:[#allocation8 + $0x32c] sm:$0xf0]  ;;  %v5066_v63 = vor.u32 %v6634_v1, %v5063_v18  ;;  %v4967_v1 = vld [vmem:[#allocation8 + $0x210] sm:$0xf0] }
 0x150   : > { %v1239_v17 = vpop.f32.mrf.mxu2  ;;  %v1257_v42 = vpop.f32.mrf.mxu3  ;;  %v6642_v18 = vld [vmem:[#allocation8 + $0x304] sm:$0xf] }
 0x151   : > { %v1270_v48 = vadd.f32 %v1239_v17, %v1119_v53  ;;  %v1271_v49 = vadd.f32 %v1257_v42, %v1120_v15  ;;  %v1206_v50 = vpop.f32.mrf.mxu0  ;;  %v1224_v51 = vpop.f32.mrf.mxu1  ;;  %v5030_v15 = vor.u32 %v6628_v31, %v5029_v26  ;;  %v6624_v17 = vld [vmem:[#allocation8 + $0x26c] sm:$0xf0]  ;;  %v1306_v16 = vrot.slane %v1293_v29, 1  ;;  %v5047_v26 = vld [vmem:[#allocation8 + $0x2b0] sm:$0xf0] }
 0x152   : > { %v1272_v20 = vadd.f32 %v1206_v50, %v1121_v8  ;;  %v1273_v21 = vadd.f32 %v1224_v51, %v1122_v9  ;;  %v6656_v50 = vld [vmem:[#allocation8 + $0x36c] sm:$0xf0]  ;;  %v1309_v14 = vrot.slane %v1294_v30, 1  ;;  %1878 = vmatpush.bf16.msrb.mxu3 %v5158_v41  ;;  %v5014_v39 = vor.u32 %v6624_v17, %v5013_v58  ;;  %v4997_v8 = vld [vmem:[#allocation8 + $0x240] sm:$0xf] }
 0x153   : > { %v1278_v37 = vmax.f32 %v1268_v52, %v1270_v48  ;;  %v1279_v38 = vmax.f32 %v1269_v54, %v1271_v49  ;;  %v5141_v49 = vld [vmem:[#allocation8 + $0x360] sm:$0xf]  ;;  %1865 = vmatpush.bf16.msrb.mxu2 %v5030_v15  ;;  %v6620_v9 = vld [vmem:[#allocation8 + $0x24c] sm:$0xf0]  ;;  %v6641_v15 = vld [vmem:[#allocation8 + $0x2f4] sm:$0xf0]  ;;  %v5050_v58 = vor.u32 %v6630_v2, %v5047_v26 }
 0x154   : > { %v512_v41 = vld [vmem:[#allocation7 + $0x8] sm:$0xf]  ;;  %v5071_v2 = vld [vmem:[#allocation8 + $0x2d8] sm:$0xf0]  ;;  %v6667_v26 = vld [vmem:[#allocation8 + $0x3cc] sm:$0xf] }
 0x155   : > { %v1289_v47 = vadd.f32 %v1283_v4, %v1278_v37  ;;  %v1290_v10 = vadd.f32 %v1284_v5, %v1279_v38  ;;  %v5142_v37 = vor.u32 %v6656_v50, %v5141_v49  ;;  %v6658_v49 = vld [vmem:[#allocation8 + $0x384] sm:$0xf]  ;;  %v5159_v50 = vld [vmem:[#allocation8 + $0x390] sm:$0xf0] }
 0x157   : > { %v1295_v34 = vmax.f32 %v1289_v47, 0.0  ;;  %v1296_v35 = vmax.f32 %v1290_v10, 0.0  ;;  %1866 = vmatpush.bf16.msrb.mxu2 %v5014_v39  ;;  %1879 = vmatpush.bf16.msrb.mxu3 %v5142_v37  ;;  %v5162_v37 = vor.u32 %v6658_v49, %v5159_v50  ;;  %v5165_v49 = vld [vmem:[#allocation8 + $0x388] sm:$0xf] }
 0x158   : > { %v1242_v11 = vpop.f32.mrf.mxu2  ;;  %v1260_v12 = vpop.f32.mrf.mxu3 }
 0x159   : > { %v1274_v22 = vadd.f32 %v1242_v11, %v1123_v23  ;;  %v1275_v25 = vadd.f32 %v1260_v12, %v1124_v45  ;;  %v1208_v43 = vpop.f32.mrf.mxu0  ;;  %v1226_v62 = vpop.f32.mrf.mxu1  ;;  %v1307_v51 = vrot.slane %v1295_v34, 1  ;;  %v1310_v52 = vrot.slane %v1296_v35, 1  ;;  %v5125_v23 = vld [vmem:[#allocation8 + $0x340] sm:$0xf]  ;;  %v6652_v45 = vld [vmem:[#allocation8 + $0x34c] sm:$0xf0] }
 0x15a   : > { %v511_v11 = vld [vmem:[#allocation7] sm:$0xff]  ;;  %v5210_v12 = vor.u32 %v6670_v6, %v5207_v7  ;;  %v5109_v62 = vld [vmem:[#allocation8 + $0x320] sm:$0xf]  ;;  %v6650_v6 = vld [vmem:[#allocation8 + $0x344] sm:$0xf] }
 0x15b   : > { %v1280_v27 = vmax.f32 %v1272_v20, %v1274_v22  ;;  %v1281_v28 = vmax.f32 %v1273_v21, %v1275_v25  ;;  %v5191_v20 = vld [vmem:[#allocation8 + $0x3d0] sm:$0xf0]  ;;  %v4998_v21 = vor.u32 %v6620_v9, %v4997_v8  ;;  %v5126_v22 = vor.u32 %v6652_v45, %v5125_v23  ;;  %v4981_v25 = vld [vmem:[#allocation8 + $0x220] sm:$0xf]  ;;  %v6616_v43 = vld [vmem:[#allocation8 + $0x22c] sm:$0xf0] }
 0x15c   : > { %v5194_v0 = vor.u32 %v6666_v19, %v5191_v20  ;;  %v4982_v31 = vor.u32 %v6616_v43, %v4981_v25  ;;  %v5110_v32 = vor.u32 %v6648_v44, %v5109_v62  ;;  %v5127_v7 = vld [vmem:[#allocation8 + $0x350] sm:$0xf0]  ;;  %v6614_v23 = vld [vmem:[#allocation8 + $0x224] sm:$0xf]  ;;  %v6639_v20 = vld [vmem:[#allocation8 + $0x2ec] sm:$0xf] }
 0x15d   : > { %v1291_v36 = vadd.f32 %v1283_v4, %v1280_v27  ;;  %v1292_v53 = vadd.f32 %v1284_v5, %v1281_v28  ;;  %v1308_v4 = vsel %vm828_vm4, %v1306_v16, %v1307_v51  ;;  %v1311_v5 = vsel %vm828_vm4, %v1309_v14, %v1310_v52  ;;  %v6662_v27 = vld [vmem:[#allocation8 + $0x3a4] sm:$0xf]  ;;  %v5175_v28 = vld [vmem:[#allocation8 + $0x3b0] sm:$0xf0]  ;;  %1867 = vmatpush.bf16.msrb.mxu2 %v4998_v21  ;;  %v5197_v16 = vld [vmem:[#allocation8 + $0x3c8] sm:$0xf] }
 0x15e   : > { %v1322_v47 = vmax.f32 %v1293_v29, %v1308_v4  ;;  %v1323_v10 = vmax.f32 %v1294_v30, %v1311_v5  ;;  %1880 = vmatpush.bf16.msrb.mxu3 %v5126_v22  ;;  %v5213_v29 = vld [vmem:[#allocation8 + $0x3e8] sm:$0xf]  ;;  %v6673_v30 = vld [vmem:[#allocation8 + $0x3f4] sm:$0xf0]  ;;  %v5178_v17 = vor.u32 %v6662_v27, %v5175_v28  ;;  %v6618_v4 = vld [vmem:[#allocation8 + $0x244] sm:$0xf]  ;;  %v5130_v9 = vor.u32 %v6650_v6, %v5127_v7 }
 0x15f   : > { %v1297_v42 = vmax.f32 %v1291_v36, 0.0  ;;  %v1298_v48 = vmax.f32 %v1292_v53, 0.0  ;;  %v6644_v36 = vld [vmem:[#allocation8 + $0x30c] sm:$0xf0]  ;;  %v5085_v53 = vld [vmem:[#allocation8 + $0x2e8] sm:$0xf] }
 0x160   : > { %v1244_v54 = vpop.f32.mrf.mxu2  ;;  %v1262_v46 = vpop.f32.mrf.mxu3  ;;  %v6669_v14 = vld [vmem:[#allocation8 + $0x3d4] sm:$0xf0]  ;;  %v4999_v5 = vld [vmem:[#allocation8 + $0x250] sm:$0xf0]  ;;  %v5087_v21 = vld [vmem:[#allocation8 + $0x2f8] sm:$0xf0] }
 0x161   : > { %v1312_v13 = vrot.slane %v1297_v42, 1  ;;  %v1314_v55 = vrot.slane %v1298_v48, 1  ;;  %1868 = vmatpush.bf16.msrb.mxu2 %v4982_v31  ;;  %v5086_v54 = vor.u32 %v6641_v15, %v5085_v53  ;;  %v5214_v46 = vor.u32 %v6673_v30, %v5213_v29  ;;  %v4983_v45 = vld [vmem:[#allocation8 + $0x230] sm:$0xf0]  ;;  %v6671_v22 = vld [vmem:[#allocation8 + $0x3ec] sm:$0xf] }
 0x162   : > { %1881 = vmatpush.bf16.msrb.mxu3 %v5110_v32  ;;  %v5198_v60 = vor.u32 %v6669_v14, %v5197_v16  ;;  %v5002_v8 = vor.u32 %v6618_v4, %v4999_v5  ;;  %v5095_v19 = vld [vmem:[#allocation8 + $0x310] sm:$0xf0]  ;;  %v5215_v25 = vld [vmem:[#allocation8 + $0x3f8] sm:$0xf0]  ;;  %v5090_v44 = vor.u32 %v6639_v20, %v5087_v21  ;;  %v5053_v32 = vld [vmem:[#allocation8 + $0x2a8] sm:$0xf] }
 0x163   : > { %v1326_v38 = vmax.f32 %v1297_v42, %v1312_v13  ;;  %v1327_v40 = vmax.f32 %v1298_v48, %v1314_v55  ;;  %v1313_v56 = vsel %vm828_vm4, %v1307_v51, %v1312_v13  ;;  %v1315_v57 = vsel %vm828_vm4, %v1310_v52, %v1314_v55  ;;  %v6626_v42 = vld [vmem:[#allocation8 + $0x284] sm:$0xf]  ;;  %v5031_v48 = vld [vmem:[#allocation8 + $0x290] sm:$0xf0]  ;;  %v5069_v13 = vld [vmem:[#allocation8 + $0x2c8] sm:$0xf] }
 0x164   : > { %v1324_v61 = vmax.f32 %v1295_v34, %v1313_v56  ;;  %v1325_v3 = vmax.f32 %v1296_v35, %v1315_v57  ;;  %v6612_v34 = vld [vmem:[#allocation8 + $0x20c] sm:$0xf0]  ;;  %v5093_v35 = vld [vmem:[#allocation8 + $0x300] sm:$0xf]  ;;  %v6637_v55 = vld [vmem:[#allocation8 + $0x2d4] sm:$0xf0]  ;;  %v5034_v39 = vor.u32 %v6626_v42, %v5031_v48  ;;  %v5098_v62 = vor.u32 %v6642_v18, %v5095_v19 }
 0x165   : > { %4957 = vmatpush.msk.msrb.mxu0 %vm828_vm4, %v1326_v38  ;;  %4960 = vmatpush.msk.msrb.mxu1 %vm828_vm4, %v1327_v40  ;;  %v4966_v51 = vor.u32 %v6612_v34, %v4965_v33  ;;  %v5094_v52 = vor.u32 %v6644_v36, %v5093_v35  ;;  %v6622_v38 = vld [vmem:[#allocation8 + $0x264] sm:$0xf]  ;;  %v5015_v40 = vld [vmem:[#allocation8 + $0x270] sm:$0xf0]  ;;  %v5070_v59 = vor.u32 %v6637_v55, %v5069_v13  ;;  %v5199_v27 = vld [vmem:[#allocation8 + $0x3d8] sm:$0xf0] }
 0x166   : > { %v6654_v56 = vld [vmem:[#allocation8 + $0x364] sm:$0xf]  ;;  %v5143_v57 = vld [vmem:[#allocation8 + $0x370] sm:$0xf0]  ;;  %v5202_v31 = vor.u32 %v6667_v26, %v5199_v27  ;;  %v6633_v33 = vld [vmem:[#allocation8 + $0x2b4] sm:$0xf0] }
 0x167   : > { %1355 = vmatpush.msrb.mxu0 %v1324_v61  ;;  %1378 = vmatpush.msrb.mxu1 %v1325_v3  ;;  %v5018_v61 = vor.u32 %v6622_v38, %v5015_v40  ;;  %v5146_v3 = vor.u32 %v6654_v56, %v5143_v57  ;;  %v5181_v34 = vld [vmem:[#allocation8 + $0x3a8] sm:$0xf]  ;;  %v5054_v35 = vor.u32 %v6633_v33, %v5053_v32  ;;  %v6665_v36 = vld [vmem:[#allocation8 + $0x3b4] sm:$0xf0]  ;;  %v6631_v53 = vld [vmem:[#allocation8 + $0x2ac] sm:$0xf] }
 0x168   : > { %1869 = vmatpush.bf16.msrb.mxu2 %v4966_v51  ;;  %1882 = vmatpush.bf16.msrb.mxu3 %v5094_v52  ;;  %v5055_v15 = vld [vmem:[#allocation8 + $0x2b8] sm:$0xf0]  ;;  %v5182_v29 = vor.u32 %v6665_v36, %v5181_v34  ;;  %v5037_v42 = vld [vmem:[#allocation8 + $0x288] sm:$0xf]  ;;  %v6629_v48 = vld [vmem:[#allocation8 + $0x294] sm:$0xf0] }
 0x169   : > { %1356 = vmatpush.msrb.mxu0 %v1322_v47  ;;  %1379 = vmatpush.msrb.mxu1 %v1323_v10  ;;  %v5111_v47 = vld [vmem:[#allocation8 + $0x330] sm:$0xf0]  ;;  %v4986_v10 = vor.u32 %v6614_v23, %v4983_v45  ;;  %v5058_v30 = vor.u32 %v6631_v53, %v5055_v15  ;;  %v5038_v50 = vor.u32 %v6629_v48, %v5037_v42  ;;  %v6661_v51 = vld [vmem:[#allocation8 + $0x394] sm:$0xf0]  ;;  %v6627_v52 = vld [vmem:[#allocation8 + $0x28c] sm:$0xf] }
 0x16a   : > { %4958 = vmatmul.msk.f32.vlgmr.msrb.gmra.mxu0 %vm1328_vm5, %v511_v11  ;;  %4961 = vmatmul.msk.f32.vlgmr.msrb.gmra.mxu1 %vm1328_vm5, %v511_v11  ;;  %v6659_v55 = vld [vmem:[#allocation8 + $0x38c] sm:$0xf]  ;;  %v5167_v16 = vld [vmem:[#allocation8 + $0x398] sm:$0xf0]  ;;  %v5149_v38 = vld [vmem:[#allocation8 + $0x368] sm:$0xf] }
 0x16b   : > { %1888 = vmatpush.bf16.msra.mxu0 %v5082_v24  ;;  %1901 = vmatpush.bf16.msra.mxu1 %v5210_v12  ;;  %v6646_v24 = vld [vmem:[#allocation8 + $0x324] sm:$0xf]  ;;  %v5170_v14 = vor.u32 %v6659_v55, %v5167_v16  ;;  %v6657_v56 = vld [vmem:[#allocation8 + $0x374] sm:$0xf0]  ;;  %v6623_v57 = vld [vmem:[#allocation8 + $0x26c] sm:$0xf] }
 0x16c   : > { %1914 = vmatpush.bf16.msra.mxu2 %v5086_v54  ;;  %1927 = vmatpush.bf16.msra.mxu3 %v5214_v46  ;;  %v5114_v11 = vor.u32 %v6646_v24, %v5111_v47  ;;  %v6610_v12 = vld [vmem:[#allocation8 + $0x204] sm:$0xf]  ;;  %v5039_v54 = vld [vmem:[#allocation8 + $0x298] sm:$0xf0]  ;;  %v5166_v46 = vor.u32 %v6661_v51, %v5165_v49  ;;  %v5005_v6 = vld [vmem:[#allocation8 + $0x248] sm:$0xf] }
 0x16d   : > { %v4970_v43 = vor.u32 %v6610_v12, %v4967_v1  ;;  %v5042_v13 = vor.u32 %v6627_v52, %v5039_v54  ;;  %v5151_v4 = vld [vmem:[#allocation8 + $0x378] sm:$0xf0]  ;;  %v6621_v7 = vld [vmem:[#allocation8 + $0x254] sm:$0xf0]  ;;  %v6619_v45 = vld [vmem:[#allocation8 + $0x24c] sm:$0xf] }
 0x16e   : > { %v6653_v23 = vld [vmem:[#allocation8 + $0x354] sm:$0xf0]  ;;  %v5007_v24 = vld [vmem:[#allocation8 + $0x258] sm:$0xf0]  ;;  %v4989_v18 = vld [vmem:[#allocation8 + $0x228] sm:$0xf] }
 0x16f   : > { %1889 = vmatpush.bf16.msra.mxu0 %v5066_v63  ;;  %1902 = vmatpush.bf16.msra.mxu1 %v5194_v0  ;;  %v5218_v63 = vor.u32 %v6671_v22, %v5215_v25  ;;  %v6635_v0 = vld [vmem:[#allocation8 + $0x2cc] sm:$0xf]  ;;  %v5135_v12 = vld [vmem:[#allocation8 + $0x358] sm:$0xf0]  ;;  %v6617_v19 = vld [vmem:[#allocation8 + $0x234] sm:$0xf0] }
 0x170   : > { %1915 = vmatpush.bf16.msra.mxu2 %v5070_v59  ;;  %1928 = vmatpush.bf16.msra.mxu3 %v5198_v60  ;;  %v5074_v28 = vor.u32 %v6635_v0, %v5071_v2  ;;  %v5023_v59 = vld [vmem:[#allocation8 + $0x278] sm:$0xf0]  ;;  %v5150_v60 = vor.u32 %v6657_v56, %v5149_v38  ;;  %v5117_v20 = vld [vmem:[#allocation8 + $0x328] sm:$0xf]  ;;  %v4990_v21 = vor.u32 %v6617_v19, %v4989_v18  ;;  %v6649_v22 = vld [vmem:[#allocation8 + $0x334] sm:$0xf0] }
 0x171   : > { %v6615_v25 = vld [vmem:[#allocation8 + $0x22c] sm:$0xf]  ;;  %v5119_v0 = vld [vmem:[#allocation8 + $0x338] sm:$0xf0]  ;;  %v4973_v2 = vld [vmem:[#allocation8 + $0x208] sm:$0xf] }
 0x172   : > { %4959 = vmatmul.msk.f32.gmra.mxu0 %vm1328_vm5, %v512_v41  ;;  %4962 = vmatmul.msk.f32.gmra.mxu1 %vm1328_vm5, %v512_v41  ;;  %v6663_v41 = vld [vmem:[#allocation8 + $0x3ac] sm:$0xf]  ;;  %v6613_v27 = vld [vmem:[#allocation8 + $0x214] sm:$0xf0]  ;;  %v5103_v15 = vld [vmem:[#allocation8 + $0x318] sm:$0xf0] }
 0x173   : > { %1890 = vmatpush.bf16.msra.mxu0 %v5050_v58  ;;  %1903 = vmatpush.bf16.msra.mxu1 %v5178_v17  ;;  %v5183_v58 = vld [vmem:[#allocation8 + $0x3b8] sm:$0xf0]  ;;  %v4974_v32 = vor.u32 %v6613_v27, %v4973_v2  ;;  %v6611_v34 = vld [vmem:[#allocation8 + $0x20c] sm:$0xf]  ;;  %v6576_v55 = vld [vmem:[#allocation8 + $0xec] sm:$0xf0] }
 0x174   : > { %1916 = vmatpush.bf16.msra.mxu2 %v5054_v35  ;;  %v5186_v17 = vor.u32 %v6663_v41, %v5183_v58  ;;  %1929 = vmatpush.bf16.msra.mxu3 %v5182_v29  ;;  %v4975_v35 = vld [vmem:[#allocation8 + $0x218] sm:$0xf0]  ;;  %v6643_v36 = vld [vmem:[#allocation8 + $0x30c] sm:$0xf]  ;;  %v5461_v16 = vld [vmem:[#allocation8 + $0x1e0] sm:$0xf] }
 0x175   : > { %v4978_v53 = vor.u32 %v6611_v34, %v4975_v35  ;;  %v5106_v29 = vor.u32 %v6643_v36, %v5103_v15  ;;  %v6574_v56 = vld [vmem:[#allocation8 + $0xe4] sm:$0xf]  ;;  %v6604_v18 = vld [vmem:[#allocation8 + $0x1cc] sm:$0xf0]  ;;  %v5285_v36 = vld [vmem:[#allocation8 + $0x80] sm:$0xf] }
 0x176   : > { %v6570_v19 = vld [vmem:[#allocation8 + $0xc4] sm:$0xf]  ;;  %v6600_v27 = vld [vmem:[#allocation8 + $0x1ac] sm:$0xf0] }
 0x177   : > { %1891 = vmatpush.bf16.msra.mxu0 %v5034_v39  ;;  %1904 = vmatpush.bf16.msra.mxu1 %v5162_v37  ;;  %v5021_v39 = vld [vmem:[#allocation8 + $0x268] sm:$0xf]  ;;  %v6625_v37 = vld [vmem:[#allocation8 + $0x274] sm:$0xf0] }
 0x178   : > { %1917 = vmatpush.bf16.msra.mxu2 %v5038_v50  ;;  %1930 = vmatpush.bf16.msra.mxu3 %v5166_v46  ;;  %v5022_v40 = vor.u32 %v6625_v37, %v5021_v39 }
 0x17b   : > { %1892 = vmatpush.bf16.msra.mxu0 %v5018_v61  ;;  %1905 = vmatpush.bf16.msra.mxu1 %v5146_v3  ;;  %v5026_v61 = vor.u32 %v6623_v57, %v5023_v59  ;;  %v6655_v3 = vld [vmem:[#allocation8 + $0x36c] sm:$0xf]  ;;  %v5335_v57 = vld [vmem:[#allocation8 + $0xf0] sm:$0xf0]  ;;  %v6606_v59 = vld [vmem:[#allocation8 + $0x1e4] sm:$0xf] }
 0x17c   : > { %1918 = vmatpush.bf16.msra.mxu2 %v5022_v40  ;;  %v5154_v5 = vor.u32 %v6655_v3, %v5151_v4  ;;  %1931 = vmatpush.bf16.msra.mxu3 %v5150_v60  ;;  %v6608_v40 = vld [vmem:[#allocation8 + $0x1ec] sm:$0xf0] }
 0x17f   : > { %1893 = vmatpush.bf16.msra.mxu0 %v5002_v8  ;;  %1906 = vmatpush.bf16.msra.mxu1 %v5130_v9  ;;  %v5133_v8 = vld [vmem:[#allocation8 + $0x348] sm:$0xf]  ;;  %v5006_v9 = vor.u32 %v6621_v7, %v5005_v6 }
 0x180   : > { %v5134_v47 = vor.u32 %v6653_v23, %v5133_v8 }
 0x181   : > { %1919 = vmatpush.bf16.msra.mxu2 %v5006_v9 }
 0x182   : > { %1932 = vmatpush.bf16.msra.mxu3 %v5134_v47  ;;  %v6572_v47 = vld [vmem:[#allocation8 + $0xcc] sm:$0xf0] }
 0x183   : > { %1894 = vmatpush.bf16.msra.mxu0 %v4986_v10  ;;  %1907 = vmatpush.bf16.msra.mxu1 %v5114_v11  ;;  %v5010_v10 = vor.u32 %v6619_v45, %v5007_v24  ;;  %v6651_v11 = vld [vmem:[#allocation8 + $0x34c] sm:$0xf]  ;;  %v5462_v45 = vor.u32 %v6608_v40, %v5461_v16  ;;  %v5317_v24 = vld [vmem:[#allocation8 + $0xc0] sm:$0xf]  ;;  %v5271_v40 = vld [vmem:[#allocation8 + $0x70] sm:$0xf0] }
 0x184   : > { %v5138_v1 = vor.u32 %v6651_v11, %v5135_v12  ;;  %v5338_v11 = vor.u32 %v6574_v56, %v5335_v57  ;;  %v6590_v56 = vld [vmem:[#allocation8 + $0x164] sm:$0xf]  ;;  %v5399_v57 = vld [vmem:[#allocation8 + $0x170] sm:$0xf0] }
 0x185   : > { %1920 = vmatpush.bf16.msra.mxu2 %v4990_v21  ;;  %v5319_v21 = vld [vmem:[#allocation8 + $0xd0] sm:$0xf0] }
 0x187   : > { %1895 = vmatpush.bf16.msra.mxu0 %v4970_v43  ;;  %1908 = vmatpush.bf16.msra.mxu1 %v5098_v62  ;;  %v4991_v43 = vld [vmem:[#allocation8 + $0x238] sm:$0xf0]  ;;  %v5118_v62 = vor.u32 %v6649_v22, %v5117_v20  ;;  %v6602_v22 = vld [vmem:[#allocation8 + $0x1c4] sm:$0xf] }
 0x189   : > { %1933 = vmatpush.bf16.msra.mxu3 %v5118_v62  ;;  %1921 = vmatpush.bf16.msra.mxu2 %v4974_v32  ;;  %v6598_v32 = vld [vmem:[#allocation8 + $0x1a4] sm:$0xf] }
 0x18b   : > { %1940 = vmatpush.bf16.msrb.mxu0 %v5090_v44  ;;  %1953 = vmatpush.bf16.msrb.mxu1 %v5218_v63  ;;  %v4994_v44 = vor.u32 %v6615_v25, %v4991_v43  ;;  %v6647_v63 = vld [vmem:[#allocation8 + $0x32c] sm:$0xf]  ;;  %v5447_v25 = vld [vmem:[#allocation8 + $0x1d0] sm:$0xf0]  ;;  %v5318_v43 = vor.u32 %v6572_v47, %v5317_v24  ;;  %v6586_v24 = vld [vmem:[#allocation8 + $0x144] sm:$0xf] }
 0x18c   : > { %v5122_v26 = vor.u32 %v6647_v63, %v5119_v0  ;;  %v6568_v63 = vld [vmem:[#allocation8 + $0xac] sm:$0xf0]  ;;  %v5322_v0 = vor.u32 %v6570_v19, %v5319_v21  ;;  %v5450_v2 = vor.u32 %v6602_v22, %v5447_v25  ;;  %v5383_v47 = vld [vmem:[#allocation8 + $0x150] sm:$0xf0]  ;;  %v5365_v22 = vld [vmem:[#allocation8 + $0x120] sm:$0xf] }
 0x18d   : > { %v5386_v21 = vor.u32 %v6586_v24, %v5383_v47  ;;  %v6584_v25 = vld [vmem:[#allocation8 + $0x12c] sm:$0xf0]  ;;  %v5437_v24 = vld [vmem:[#allocation8 + $0x1a8] sm:$0xf]  ;;  %v6601_v47 = vld [vmem:[#allocation8 + $0x1b4] sm:$0xf0] }
 0x18f   : > { %1941 = vmatpush.bf16.msrb.mxu0 %v5074_v28  ;;  %1954 = vmatpush.bf16.msrb.mxu1 %v5202_v31  ;;  %v5101_v28 = vld [vmem:[#allocation8 + $0x308] sm:$0xf]  ;;  %v6645_v31 = vld [vmem:[#allocation8 + $0x314] sm:$0xf0] }
 0x190   : > { %v5102_v33 = vor.u32 %v6645_v31, %v5101_v28  ;;  %v6566_v28 = vld [vmem:[#allocation8 + $0xa4] sm:$0xf]  ;;  %v5303_v31 = vld [vmem:[#allocation8 + $0xb0] sm:$0xf0] }
 0x191   : > { %v5306_v15 = vor.u32 %v6566_v28, %v5303_v31 }
 0x192   : > { %1934 = vmatpush.bf16.msra.mxu3 %v5102_v33  ;;  %v5431_v33 = vld [vmem:[#allocation8 + $0x1b0] sm:$0xf0] }
 0x193   : > { %1942 = vmatpush.bf16.msrb.mxu0 %v5058_v30  ;;  %1955 = vmatpush.bf16.msrb.mxu1 %v5186_v17 }
 0x197   : > { %1943 = vmatpush.bf16.msrb.mxu0 %v5042_v13  ;;  %1956 = vmatpush.bf16.msrb.mxu1 %v5170_v14  ;;  %v5333_v13 = vld [vmem:[#allocation8 + $0xe0] sm:$0xf] }
 0x198   : > { %v5334_v8 = vor.u32 %v6576_v55, %v5333_v13  ;;  %v5269_v13 = vld [vmem:[#allocation8 + $0x60] sm:$0xf]  ;;  %v6560_v55 = vld [vmem:[#allocation8 + $0x6c] sm:$0xf0] }
 0x19b   : > { %1944 = vmatpush.bf16.msrb.mxu0 %v5026_v61  ;;  %1957 = vmatpush.bf16.msrb.mxu1 %v5154_v5  ;;  %v5463_v5 = vld [vmem:[#allocation8 + $0x1f0] sm:$0xf0] }
 0x19c   : > { %v5466_v12 = vor.u32 %v6606_v59, %v5463_v5  ;;  %v5270_v59 = vor.u32 %v6560_v55, %v5269_v13  ;;  %v5402_v5 = vor.u32 %v6590_v56, %v5399_v57  ;;  %v6571_v56 = vld [vmem:[#allocation8 + $0xcc] sm:$0xf]  ;;  %v5327_v57 = vld [vmem:[#allocation8 + $0xd8] sm:$0xf0] }
 0x19f   : > { %1945 = vmatpush.bf16.msrb.mxu0 %v5010_v10  ;;  %1958 = vmatpush.bf16.msrb.mxu1 %v5138_v1  ;;  %v5445_v1 = vld [vmem:[#allocation8 + $0x1c0] sm:$0xf] }
 0x1a0   : > { %v5446_v62 = vor.u32 %v6604_v18, %v5445_v1  ;;  %v5237_v1 = vld [vmem:[#allocation8 + $0x20] sm:$0xf]  ;;  %v6552_v18 = vld [vmem:[#allocation8 + $0x2c] sm:$0xf0] }
 0x1a3   : > { %1946 = vmatpush.bf16.msrb.mxu0 %v4994_v44  ;;  %1959 = vmatpush.bf16.msrb.mxu1 %v5122_v26  ;;  %v5301_v44 = vld [vmem:[#allocation8 + $0xa0] sm:$0xf] }
 0x1a4   : > { %v5429_v26 = vld [vmem:[#allocation8 + $0x1a0] sm:$0xf]  ;;  %v5302_v34 = vor.u32 %v6568_v63, %v5301_v44  ;;  %v6582_v44 = vld [vmem:[#allocation8 + $0x124] sm:$0xf]  ;;  %v5367_v63 = vld [vmem:[#allocation8 + $0x130] sm:$0xf0] }
 0x1a5   : > { %v5430_v35 = vor.u32 %v6600_v27, %v5429_v26  ;;  %v5349_v26 = vld [vmem:[#allocation8 + $0x100] sm:$0xf]  ;;  %v6580_v27 = vld [vmem:[#allocation8 + $0x10c] sm:$0xf0]  ;;  %v5370_v31 = vor.u32 %v6582_v44, %v5367_v63  ;;  %v6563_v44 = vld [vmem:[#allocation8 + $0x8c] sm:$0xf] }
 0x1a6   : > { %v5295_v63 = vld [vmem:[#allocation8 + $0x98] sm:$0xf0] }
 0x1a7   : > { %1947 = vmatpush.bf16.msrb.mxu0 %v4978_v53  ;;  %1960 = vmatpush.bf16.msrb.mxu1 %v5106_v29  ;;  %v6564_v53 = vld [vmem:[#allocation8 + $0x8c] sm:$0xf0]  ;;  %v5434_v29 = vor.u32 %v6598_v32, %v5431_v33  ;;  %v6546_v32 = vld [vmem:[#allocation8 + $0x4] sm:$0xf]  ;;  %v5223_v33 = vld [vmem:[#allocation8 + $0x10] sm:$0xf0] }
 0x1e7   : > { %v1358_v30 = vpop.f32.mrf.mxu0  ;;  %v1381_v41 = vpop.f32.mrf.mxu1 }
 0x1e8   : > { %v1387_v58 = vpack.c.bf16 %v1381_v41, %v1358_v30  ;;  %v5413_v30 = vld [vmem:[#allocation8 + $0x180] sm:$0xf]  ;;  %v6596_v41 = vld [vmem:[#allocation8 + $0x18c] sm:$0xf0] }
 0x1ea   : > { %v7645_v49 = vunpack.c.l.b16 %v1387_v58  ;;  %v7647_v50 = vunpack.c.h.b16 %v1387_v58  ;;  %v6562_v58 = vld [vmem:[#allocation8 + $0x84] sm:$0xf] }
 0x1ef   : > { %v1361_v17 = vpop.f32.mrf.mxu0  ;;  %v1384_v42 = vpop.f32.mrf.mxu1 }
 0x1f0   : > { %v1388_v48 = vpack.c.bf16 %v1384_v42, %v1361_v17  ;;  %v5287_v17 = vld [vmem:[#allocation8 + $0x90] sm:$0xf0]  ;;  %v6594_v42 = vld [vmem:[#allocation8 + $0x184] sm:$0xf] }
 0x1f1   : > { %v5290_v16 = vor.u32 %v6562_v58, %v5287_v17  ;;  %v5350_v58 = vor.u32 %v6580_v27, %v5349_v26  ;;  %v5343_v17 = vld [vmem:[#allocation8 + $0xf8] sm:$0xf0]  ;;  %v5277_v26 = vld [vmem:[#allocation8 + $0x68] sm:$0xf]  ;;  %v6561_v27 = vld [vmem:[#allocation8 + $0x74] sm:$0xf0] }
 0x1f2   : > { %v1522_v51 = vunpack.c.l.b16 %v1388_v48  ;;  %v1523_v52 = vunpack.c.h.b16 %v1388_v48  ;;  %v5415_v48 = vld [vmem:[#allocation8 + $0x190] sm:$0xf0] }
 0x1f4   : > { %v7650_v54 = vpack.c.b16 %v1522_v51, %v7645_v49  ;;  %v7653_v46 = vpack.c.b16 %v1523_v52, %v7647_v50  ;;  %v5286_v51 = vor.u32 %v6564_v53, %v5285_v36  ;;  %v5414_v52 = vor.u32 %v6596_v41, %v5413_v30  ;;  %v5341_v36 = vld [vmem:[#allocation8 + $0xe8] sm:$0xf]  ;;  %v6577_v53 = vld [vmem:[#allocation8 + $0xf4] sm:$0xf0]  ;;  %v6575_v30 = vld [vmem:[#allocation8 + $0xec] sm:$0xf] }
 0x1f5   : > { %v5342_v13 = vor.u32 %v6577_v53, %v5341_v36  ;;  %v6591_v36 = vld [vmem:[#allocation8 + $0x16c] sm:$0xf]  ;;  %v5407_v53 = vld [vmem:[#allocation8 + $0x178] sm:$0xf0] }
 0x1f6   : > { %v1527_v14 = vshrl.u32 %v7650_v54, 16  ;;  %v1529_v39 = vshll.u32 %v7650_v54, 16  ;;  %v1534_v37 = vshrl.u32 %v7653_v46, 16  ;;  %v1536_v38 = vshll.u32 %v7653_v46, 16 }
 0x1f8   : > { %v1531_v60 = vrot.slane %v1529_v39, 1  ;;  %v2956_v61 = vrot.slane %v1527_v14, 1  ;;  %v2957_v3 = vrot.slane %v1529_v39, 2  ;;  %v1538_v4 = vrot.slane %v1536_v38, 1  ;;  %v5397_v39 = vld [vmem:[#allocation8 + $0x160] sm:$0xf] }
 0x1f9   : > { %v2959_v6 = vrot.slane %v1534_v37, 1  ;;  %v2960_v7 = vrot.slane %v1536_v38, 2  ;;  %v6558_v38 = vld [vmem:[#allocation8 + $0x64] sm:$0xf] }
 0x1fa   : > { %v7659_v9 = vor.u32 %v1531_v60, %v1527_v14  ;;  %v7661_v23 = vor.u32 %v1538_v4, %v1534_v37  ;;  %v7663_v10 = vor.u32 %v2957_v3, %v2956_v61  ;;  %v5418_v14 = vor.u32 %v6594_v42, %v5415_v48  ;;  %v6592_v37 = vld [vmem:[#allocation8 + $0x16c] sm:$0xf0]  ;;  %v5253_v61 = vld [vmem:[#allocation8 + $0x40] sm:$0xf]  ;;  %v6607_v42 = vld [vmem:[#allocation8 + $0x1ec] sm:$0xf] }
 0x1fb   : > { %v7665_v20 = vor.u32 %v2960_v7, %v2959_v6  ;;  %v5398_v60 = vor.u32 %v6592_v37, %v5397_v39  ;;  %v6556_v3 = vld [vmem:[#allocation8 + $0x4c] sm:$0xf0]  ;;  %v5274_v4 = vor.u32 %v6558_v38, %v5271_v40  ;;  %v5381_v6 = vld [vmem:[#allocation8 + $0x140] sm:$0xf]  ;;  %v5471_v48 = vld [vmem:[#allocation8 + $0x1f8] sm:$0xf0]  ;;  %v5346_v39 = vor.u32 %v6575_v30, %v5343_v17 }
 0x1fc   : > { %1870 = vmatmul.bf16.vlgmr.msrb.gmra.mxu2 %v7659_v9  ;;  %1883 = vmatmul.bf16.vlgmr.msrb.gmra.mxu3 %v7661_v23  ;;  %v6588_v7 = vld [vmem:[#allocation8 + $0x14c] sm:$0xf0]  ;;  %v5474_v37 = vor.u32 %v6607_v42, %v5471_v48  ;;  %v5453_v38 = vld [vmem:[#allocation8 + $0x1c8] sm:$0xf]  ;;  %v6605_v40 = vld [vmem:[#allocation8 + $0x1d4] sm:$0xf0]  ;;  %v5410_v17 = vor.u32 %v6591_v36, %v5407_v53 }
 0x1fd   : > { %1896 = vmatmul.bf16.vlgmr.msra.gmra.mxu0 %v7659_v9  ;;  %1909 = vmatmul.bf16.vlgmr.msra.gmra.mxu1 %v7661_v23  ;;  %v5261_v30 = vld [vmem:[#allocation8 + $0x48] sm:$0xf]  ;;  %v6589_v48 = vld [vmem:[#allocation8 + $0x154] sm:$0xf0]  ;;  %v6698_v36 = vld [vmem:[#allocation8 + $0x4c4] sm:$0xf] }
 0x1fe   : > { %2290 = vmatpush.bf16.msrb.mxu2 %v5334_v8  ;;  %2303 = vmatpush.bf16.msrb.mxu3 %v5462_v45  ;;  %v6554_v8 = vld [vmem:[#allocation8 + $0x44] sm:$0xf]  ;;  %v5255_v45 = vld [vmem:[#allocation8 + $0x50] sm:$0xf0]  ;;  %v5389_v42 = vld [vmem:[#allocation8 + $0x148] sm:$0xf] }
 0x1ff   : > { %2316 = vmatpush.bf16.msra.mxu0 %v5338_v11  ;;  %2329 = vmatpush.bf16.msra.mxu1 %v5466_v12  ;;  %v5254_v11 = vor.u32 %v6556_v3, %v5253_v61  ;;  %v5382_v12 = vor.u32 %v6588_v7, %v5381_v6  ;;  %v5258_v19 = vor.u32 %v6554_v8, %v5255_v45  ;;  %v5309_v6 = vld [vmem:[#allocation8 + $0xa8] sm:$0xf]  ;;  %v6569_v7 = vld [vmem:[#allocation8 + $0xb4] sm:$0xf0]  ;;  %v5575_v53 = vld [vmem:[#allocation8 + $0x4d0] sm:$0xf0] }
 0x200   : > { %v7677_v61 = vpack.c.b16 %v7645_v49, %v7645_v49  ;;  %v7681_v3 = vpack.c.b16 %v7647_v50, %v7647_v50  ;;  %v5330_v8 = vor.u32 %v6571_v56, %v5327_v57  ;;  %v6567_v49 = vld [vmem:[#allocation8 + $0xac] sm:$0xf]  ;;  %v5373_v56 = vld [vmem:[#allocation8 + $0x128] sm:$0xf]  ;;  %v6585_v57 = vld [vmem:[#allocation8 + $0x134] sm:$0xf0] }
 0x201   : > { %v6599_v50 = vld [vmem:[#allocation8 + $0x1ac] sm:$0xf] }
 0x202   : > { %2291 = vmatpush.bf16.msrb.mxu2 %v5318_v43  ;;  %2304 = vmatpush.bf16.msrb.mxu3 %v5446_v62  ;;  %v6550_v43 = vld [vmem:[#allocation8 + $0x24] sm:$0xf]  ;;  %v5239_v62 = vld [vmem:[#allocation8 + $0x30] sm:$0xf0] }
 0x203   : > { %2317 = vmatpush.bf16.msra.mxu0 %v5322_v0  ;;  %2330 = vmatpush.bf16.msra.mxu1 %v5450_v2  ;;  %v5221_v0 = vld [vmem:[#allocation8] sm:$0xf]  ;;  %v6548_v2 = vld [vmem:[#allocation8 + $0xc] sm:$0xf0]  ;;  %v5242_v28 = vor.u32 %v6550_v43, %v5239_v62  ;;  %v5421_v43 = vld [vmem:[#allocation8 + $0x188] sm:$0xf] }
 0x204   : > { %v5222_v41 = vor.u32 %v6548_v2, %v5221_v0  ;;  %v6597_v62 = vld [vmem:[#allocation8 + $0x194] sm:$0xf0]  ;;  %v6595_v0 = vld [vmem:[#allocation8 + $0x18c] sm:$0xf] }
 0x205   : > { %v5422_v2 = vor.u32 %v6597_v62, %v5421_v43  ;;  %v6702_v43 = vld [vmem:[#allocation8 + $0x4e4] sm:$0xf] }
 0x206   : > { %2292 = vmatpush.bf16.msrb.mxu2 %v5302_v34  ;;  %2305 = vmatpush.bf16.msrb.mxu3 %v5430_v35  ;;  %v6578_v34 = vld [vmem:[#allocation8 + $0x104] sm:$0xf]  ;;  %v5351_v35 = vld [vmem:[#allocation8 + $0x110] sm:$0xf0] }
 0x207   : > { %2318 = vmatpush.bf16.msra.mxu0 %v5306_v15  ;;  %2331 = vmatpush.bf16.msra.mxu1 %v5434_v29  ;;  %v5469_v15 = vld [vmem:[#allocation8 + $0x1e8] sm:$0xf]  ;;  %v6609_v29 = vld [vmem:[#allocation8 + $0x1f4] sm:$0xf0] }
 0x208   : > { %v5470_v55 = vor.u32 %v6609_v29, %v5469_v15  ;;  %v5278_v15 = vor.u32 %v6561_v27, %v5277_v26 }
 0x20a   : > { %2293 = vmatpush.bf16.msrb.mxu2 %v5286_v51  ;;  %2306 = vmatpush.bf16.msrb.mxu3 %v5414_v52  ;;  %v5226_v51 = vor.u32 %v6546_v32, %v5223_v33  ;;  %v5354_v52 = vor.u32 %v6578_v34, %v5351_v35  ;;  %v5405_v32 = vld [vmem:[#allocation8 + $0x168] sm:$0xf]  ;;  %v6593_v33 = vld [vmem:[#allocation8 + $0x174] sm:$0xf0]  ;;  %v6559_v34 = vld [vmem:[#allocation8 + $0x6c] sm:$0xf] }
 0x20b   : > { %2319 = vmatpush.bf16.msra.mxu0 %v5290_v16  ;;  %2332 = vmatpush.bf16.msra.mxu1 %v5418_v14  ;;  %v5325_v16 = vld [vmem:[#allocation8 + $0xc8] sm:$0xf]  ;;  %v6573_v14 = vld [vmem:[#allocation8 + $0xd4] sm:$0xf0]  ;;  %v5279_v35 = vld [vmem:[#allocation8 + $0x78] sm:$0xf0]  ;;  %v5406_v29 = vor.u32 %v6593_v33, %v5405_v32 }
 0x20c   : > { %1922 = vmatmul.bf16.vlgmr.msra.gmra.mxu2 %v7659_v9  ;;  %1935 = vmatmul.bf16.vlgmr.msra.gmra.mxu3 %v7661_v23 }
 0x20d   : > { %1948 = vmatmul.bf16.vlgmr.msrb.gmra.mxu0 %v7659_v9  ;;  %1961 = vmatmul.bf16.vlgmr.msrb.gmra.mxu1 %v7661_v23  ;;  %v5238_v9 = vor.u32 %v6552_v18, %v5237_v1  ;;  %v5366_v23 = vor.u32 %v6584_v25, %v5365_v22  ;;  %v5310_v1 = vor.u32 %v6569_v7, %v5309_v6  ;;  %v5229_v6 = vld [vmem:[#allocation8 + $0x8] sm:$0xf] }
 0x20e   : > { %2294 = vmatpush.bf16.msrb.mxu2 %v5270_v59  ;;  %2307 = vmatpush.bf16.msrb.mxu3 %v5398_v60  ;;  %v6603_v59 = vld [vmem:[#allocation8 + $0x1cc] sm:$0xf]  ;;  %v5455_v60 = vld [vmem:[#allocation8 + $0x1d8] sm:$0xf0]  ;;  %v5438_v18 = vor.u32 %v6601_v47, %v5437_v24  ;;  %v5357_v24 = vld [vmem:[#allocation8 + $0x108] sm:$0xf] }
 0x20f   : > { %2320 = vmatpush.bf16.msra.mxu0 %v5274_v4  ;;  %2333 = vmatpush.bf16.msra.mxu1 %v5402_v5  ;;  %v5326_v4 = vor.u32 %v6573_v14, %v5325_v16  ;;  %v5454_v5 = vor.u32 %v6605_v40, %v5453_v38  ;;  %v5458_v45 = vor.u32 %v6603_v59, %v5455_v60  ;;  %v6551_v59 = vld [vmem:[#allocation8 + $0x2c] sm:$0xf]  ;;  %v5247_v60 = vld [vmem:[#allocation8 + $0x38] sm:$0xf0]  ;;  %v6581_v47 = vld [vmem:[#allocation8 + $0x114] sm:$0xf0] }
 0x210   : > { %v5390_v14 = vor.u32 %v6589_v48, %v5389_v42  ;;  %v5578_v42 = vor.u32 %v6698_v36, %v5575_v53  ;;  %v6678_v36 = vld [vmem:[#allocation8 + $0x424] sm:$0xf]  ;;  %v5495_v53 = vld [vmem:[#allocation8 + $0x430] sm:$0xf0] }
 0x212   : > { %2295 = vmatpush.bf16.msrb.mxu2 %v5254_v11  ;;  %2308 = vmatpush.bf16.msrb.mxu3 %v5382_v12  ;;  %v5311_v11 = vld [vmem:[#allocation8 + $0xb8] sm:$0xf0] }
 0x213   : > { %2321 = vmatpush.bf16.msra.mxu0 %v5258_v19  ;;  %2334 = vmatpush.bf16.msra.mxu1 %v5386_v21  ;;  %v5439_v12 = vld [vmem:[#allocation8 + $0x1b8] sm:$0xf0]  ;;  %v5293_v19 = vld [vmem:[#allocation8 + $0x88] sm:$0xf]  ;;  %v6565_v21 = vld [vmem:[#allocation8 + $0x94] sm:$0xf0]  ;;  %v5314_v22 = vor.u32 %v6567_v49, %v5311_v11  ;;  %v5250_v49 = vor.u32 %v6551_v59, %v5247_v60 }
 0x214   : > { %v5442_v25 = vor.u32 %v6599_v50, %v5439_v12  ;;  %v6547_v50 = vld [vmem:[#allocation8 + $0xc] sm:$0xf]  ;;  %v5231_v12 = vld [vmem:[#allocation8 + $0x18] sm:$0xf0]  ;;  %v5669_v59 = vld [vmem:[#allocation8 + $0x580] sm:$0xf] }
 0x215   : > { %v6724_v60 = vld [vmem:[#allocation8 + $0x58c] sm:$0xf0] }
 0x216   : > { %2296 = vmatpush.bf16.msrb.mxu2 %v5238_v9  ;;  %2309 = vmatpush.bf16.msrb.mxu3 %v5366_v23  ;;  %v5423_v9 = vld [vmem:[#allocation8 + $0x198] sm:$0xf0]  ;;  %v5294_v23 = vor.u32 %v6565_v21, %v5293_v19  ;;  %v5589_v19 = vld [vmem:[#allocation8 + $0x4e0] sm:$0xf]  ;;  %v6704_v21 = vld [vmem:[#allocation8 + $0x4ec] sm:$0xf0] }
 0x217   : > { %2322 = vmatpush.bf16.msra.mxu0 %v5242_v28  ;;  %2335 = vmatpush.bf16.msra.mxu1 %v5370_v31  ;;  %v5298_v28 = vor.u32 %v6563_v44, %v5295_v63  ;;  %v5426_v31 = vor.u32 %v6595_v0, %v5423_v9  ;;  %v5358_v44 = vor.u32 %v6581_v47, %v5357_v24  ;;  %v5591_v63 = vld [vmem:[#allocation8 + $0x4f0] sm:$0xf0]  ;;  %v6734_v0 = vld [vmem:[#allocation8 + $0x5e4] sm:$0xf] }
 0x218   : > { %v5719_v9 = vld [vmem:[#allocation8 + $0x5f0] sm:$0xf0]  ;;  %v5590_v26 = vor.u32 %v6704_v21, %v5589_v19  ;;  %v5594_v32 = vor.u32 %v6702_v43, %v5591_v63  ;;  %v6716_v63 = vld [vmem:[#allocation8 + $0x54c] sm:$0xf0] }
 0x219   : > { %v5722_v33 = vor.u32 %v6734_v0, %v5719_v9  ;;  %v6682_v0 = vld [vmem:[#allocation8 + $0x444] sm:$0xf]  ;;  %v5511_v9 = vld [vmem:[#allocation8 + $0x450] sm:$0xf0] }
 0x21a   : > { %2297 = vmatpush.bf16.msrb.mxu2 %v5222_v41  ;;  %2310 = vmatpush.bf16.msrb.mxu3 %v5350_v58  ;;  %v6557_v41 = vld [vmem:[#allocation8 + $0x54] sm:$0xf0]  ;;  %v5282_v58 = vor.u32 %v6559_v34, %v5279_v35  ;;  %v5701_v34 = vld [vmem:[#allocation8 + $0x5c0] sm:$0xf]  ;;  %v6732_v35 = vld [vmem:[#allocation8 + $0x5cc] sm:$0xf0] }
 0x21b   : > { %2323 = vmatpush.bf16.msra.mxu0 %v5226_v51  ;;  %2336 = vmatpush.bf16.msra.mxu1 %v5354_v52  ;;  %v6555_v51 = vld [vmem:[#allocation8 + $0x4c] sm:$0xf]  ;;  %v5263_v52 = vld [vmem:[#allocation8 + $0x58] sm:$0xf0]  ;;  %v5262_v16 = vor.u32 %v6557_v41, %v5261_v30  ;;  %v5702_v41 = vor.u32 %v6732_v35, %v5701_v34  ;;  %v5621_v34 = vld [vmem:[#allocation8 + $0x520] sm:$0xf] }
 0x21c   : > { %v5266_v38 = vor.u32 %v6555_v51, %v5263_v52  ;;  %v5685_v51 = vld [vmem:[#allocation8 + $0x5a0] sm:$0xf]  ;;  %v6728_v52 = vld [vmem:[#allocation8 + $0x5ac] sm:$0xf0] }
 0x21d   : > { %2298 = vmatmul.bf16.vlgmr.msrb.gmra.mxu2 %v7677_v61  ;;  %2311 = vmatmul.bf16.vlgmr.msrb.gmra.mxu3 %v7681_v3  ;;  %v6712_v35 = vld [vmem:[#allocation8 + $0x52c] sm:$0xf0] }
 0x21e   : > { %2342 = vmatpush.bf16.msra.mxu2 %v5342_v13  ;;  %2355 = vmatpush.bf16.msra.mxu3 %v5470_v55  ;;  %v6587_v13 = vld [vmem:[#allocation8 + $0x14c] sm:$0xf]  ;;  %v5391_v55 = vld [vmem:[#allocation8 + $0x158] sm:$0xf0] }
 0x21f   : > { %2368 = vmatpush.bf16.msrb.mxu0 %v5346_v39  ;;  %2381 = vmatpush.bf16.msrb.mxu1 %v5474_v37  ;;  %v5245_v39 = vld [vmem:[#allocation8 + $0x28] sm:$0xf]  ;;  %v6553_v37 = vld [vmem:[#allocation8 + $0x34] sm:$0xf0]  ;;  %v5394_v40 = vor.u32 %v6587_v13, %v5391_v55  ;;  %v6694_v13 = vld [vmem:[#allocation8 + $0x4a4] sm:$0xf] }
 0x220   : > { %2324 = vmatmul.bf16.vlgmr.msra.gmra.mxu0 %v7677_v61  ;;  %2337 = vmatmul.bf16.vlgmr.msra.gmra.mxu1 %v7681_v3  ;;  %v5246_v7 = vor.u32 %v6553_v37, %v5245_v39  ;;  %v5559_v55 = vld [vmem:[#allocation8 + $0x4b0] sm:$0xf0]  ;;  %v5686_v37 = vor.u32 %v6728_v52, %v5685_v51  ;;  %v5498_v51 = vor.u32 %v6678_v36, %v5495_v53  ;;  %v5677_v36 = vld [vmem:[#allocation8 + $0x588] sm:$0xf]  ;;  %v6725_v53 = vld [vmem:[#allocation8 + $0x594] sm:$0xf0] }
 0x222   : > { %2343 = vmatpush.bf16.msra.mxu2 %v5326_v4  ;;  %2356 = vmatpush.bf16.msra.mxu3 %v5454_v5  ;;  %v6583_v4 = vld [vmem:[#allocation8 + $0x12c] sm:$0xf]  ;;  %v5375_v5 = vld [vmem:[#allocation8 + $0x138] sm:$0xf0] }
 0x223   : > { %2369 = vmatpush.bf16.msrb.mxu0 %v5330_v8  ;;  %2382 = vmatpush.bf16.msrb.mxu1 %v5458_v45  ;;  %v5374_v8 = vor.u32 %v6585_v57, %v5373_v56  ;;  %v6549_v45 = vld [vmem:[#allocation8 + $0x14] sm:$0xf0]  ;;  %v5378_v11 = vor.u32 %v6583_v4, %v5375_v5  ;;  %v5562_v56 = vor.u32 %v6694_v13, %v5559_v55  ;;  %v6690_v4 = vld [vmem:[#allocation8 + $0x484] sm:$0xf]  ;;  %v5543_v5 = vld [vmem:[#allocation8 + $0x490] sm:$0xf0] }
 0x224   : > { %v5230_v62 = vor.u32 %v6549_v45, %v5229_v6  ;;  %v6722_v6 = vld [vmem:[#allocation8 + $0x584] sm:$0xf]  ;;  %v6688_v45 = vld [vmem:[#allocation8 + $0x46c] sm:$0xf0]  ;;  %v5546_v24 = vor.u32 %v6690_v4, %v5543_v5  ;;  %v5479_v55 = vld [vmem:[#allocation8 + $0x410] sm:$0xf0] }
 0x225   : > { %v6674_v13 = vld [vmem:[#allocation8 + $0x404] sm:$0xf]  ;;  %v6735_v4 = vld [vmem:[#allocation8 + $0x5ec] sm:$0xf]  ;;  %v5727_v5 = vld [vmem:[#allocation8 + $0x5f8] sm:$0xf0] }
 0x226   : > { %2344 = vmatpush.bf16.msra.mxu2 %v5310_v1  ;;  %2357 = vmatpush.bf16.msra.mxu3 %v5438_v18  ;;  %v6579_v1 = vld [vmem:[#allocation8 + $0x10c] sm:$0xf]  ;;  %v5359_v18 = vld [vmem:[#allocation8 + $0x118] sm:$0xf0] }
 0x227   : > { %2370 = vmatpush.bf16.msrb.mxu0 %v5314_v22  ;;  %2383 = vmatpush.bf16.msrb.mxu1 %v5442_v25  ;;  %v5717_v22 = vld [vmem:[#allocation8 + $0x5e0] sm:$0xf]  ;;  %v6736_v25 = vld [vmem:[#allocation8 + $0x5ec] sm:$0xf0] }
 0x228   : > { %v5718_v27 = vor.u32 %v6736_v25, %v5717_v22  ;;  %v5509_v22 = vld [vmem:[#allocation8 + $0x440] sm:$0xf]  ;;  %v6684_v25 = vld [vmem:[#allocation8 + $0x44c] sm:$0xf0] }
 0x22a   : > { %2345 = vmatpush.bf16.msra.mxu2 %v5294_v23  ;;  %2358 = vmatpush.bf16.msra.mxu3 %v5422_v2  ;;  %v5234_v23 = vor.u32 %v6547_v50, %v5231_v12  ;;  %v5362_v2 = vor.u32 %v6579_v1, %v5359_v18  ;;  %v6686_v50 = vld [vmem:[#allocation8 + $0x464] sm:$0xf]  ;;  %v5527_v12 = vld [vmem:[#allocation8 + $0x470] sm:$0xf0] }
 0x22b   : > { %2371 = vmatpush.bf16.msrb.mxu0 %v5298_v28  ;;  %2384 = vmatpush.bf16.msrb.mxu1 %v5426_v31  ;;  %v5573_v28 = vld [vmem:[#allocation8 + $0x4c0] sm:$0xf]  ;;  %v6700_v31 = vld [vmem:[#allocation8 + $0x4cc] sm:$0xf0]  ;;  %v6718_v1 = vld [vmem:[#allocation8 + $0x564] sm:$0xf]  ;;  %v5530_v43 = vor.u32 %v6686_v50, %v5527_v12 }
 0x22c   : > { %v5574_v30 = vor.u32 %v6700_v31, %v5573_v28  ;;  %v5655_v18 = vld [vmem:[#allocation8 + $0x570] sm:$0xf0]  ;;  %v5493_v28 = vld [vmem:[#allocation8 + $0x420] sm:$0xf]  ;;  %v6680_v31 = vld [vmem:[#allocation8 + $0x42c] sm:$0xf0] }
 0x22d   : > { %v6699_v50 = vld [vmem:[#allocation8 + $0x4cc] sm:$0xf]  ;;  %v5583_v12 = vld [vmem:[#allocation8 + $0x4d8] sm:$0xf0] }
 0x22e   : > { %2346 = vmatpush.bf16.msra.mxu2 %v5278_v15  ;;  %2359 = vmatpush.bf16.msra.mxu3 %v5406_v29  ;;  %v6730_v15 = vld [vmem:[#allocation8 + $0x5c4] sm:$0xf]  ;;  %v5703_v29 = vld [vmem:[#allocation8 + $0x5d0] sm:$0xf0] }
 0x22f   : > { %2372 = vmatpush.bf16.msrb.mxu0 %v5282_v58  ;;  %2385 = vmatpush.bf16.msrb.mxu1 %v5410_v17  ;;  %v5557_v58 = vld [vmem:[#allocation8 + $0x4a0] sm:$0xf]  ;;  %v6696_v17 = vld [vmem:[#allocation8 + $0x4ac] sm:$0xf0]  ;;  %v5706_v48 = vor.u32 %v6730_v15, %v5703_v29  ;;  %v6710_v15 = vld [vmem:[#allocation8 + $0x524] sm:$0xf] }
 0x230   : > { %v5558_v39 = vor.u32 %v6696_v17, %v5557_v58  ;;  %v5623_v29 = vld [vmem:[#allocation8 + $0x530] sm:$0xf0]  ;;  %v5622_v58 = vor.u32 %v6712_v35, %v5621_v34  ;;  %v6676_v17 = vld [vmem:[#allocation8 + $0x40c] sm:$0xf0] }
 0x231   : > { %v5626_v52 = vor.u32 %v6710_v15, %v5623_v29  ;;  %v6691_v15 = vld [vmem:[#allocation8 + $0x48c] sm:$0xf]  ;;  %v5551_v29 = vld [vmem:[#allocation8 + $0x498] sm:$0xf0] }
 0x232   : > { %2347 = vmatpush.bf16.msra.mxu2 %v5262_v16  ;;  %2360 = vmatpush.bf16.msra.mxu3 %v5390_v14  ;;  %v6726_v16 = vld [vmem:[#allocation8 + $0x5a4] sm:$0xf]  ;;  %v5687_v14 = vld [vmem:[#allocation8 + $0x5b0] sm:$0xf0] }
 0x233   : > { %2373 = vmatpush.bf16.msrb.mxu0 %v5266_v38  ;;  %2386 = vmatpush.bf16.msrb.mxu1 %v5394_v40  ;;  %v5541_v38 = vld [vmem:[#allocation8 + $0x480] sm:$0xf]  ;;  %v6692_v40 = vld [vmem:[#allocation8 + $0x48c] sm:$0xf0]  ;;  %v5690_v57 = vor.u32 %v6726_v16, %v5687_v14  ;;  %v6706_v16 = vld [vmem:[#allocation8 + $0x504] sm:$0xf] }
 0x234   : > { %v5607_v14 = vld [vmem:[#allocation8 + $0x510] sm:$0xf0] }
 0x236   : > { %2348 = vmatpush.bf16.msra.mxu2 %v5246_v7  ;;  %2361 = vmatpush.bf16.msra.mxu3 %v5374_v8  ;;  %v5671_v7 = vld [vmem:[#allocation8 + $0x590] sm:$0xf0]  ;;  %v5525_v8 = vld [vmem:[#allocation8 + $0x460] sm:$0xf] }
 0x237   : > { %2374 = vmatpush.bf16.msrb.mxu0 %v5250_v49  ;;  %2387 = vmatpush.bf16.msrb.mxu1 %v5378_v11  ;;  %v5674_v47 = vor.u32 %v6722_v6, %v5671_v7  ;;  %v5653_v49 = vld [vmem:[#allocation8 + $0x560] sm:$0xf]  ;;  %v6720_v11 = vld [vmem:[#allocation8 + $0x56c] sm:$0xf0]  ;;  %v5526_v19 = vor.u32 %v6688_v45, %v5525_v8  ;;  %v5482_v6 = vor.u32 %v6674_v13, %v5479_v55  ;;  %v5581_v8 = vld [vmem:[#allocation8 + $0x4c8] sm:$0xf] }
 0x238   : > { %v5654_v21 = vor.u32 %v6720_v11, %v5653_v49  ;;  %v5610_v7 = vor.u32 %v6706_v16, %v5607_v14  ;;  %v6701_v45 = vld [vmem:[#allocation8 + $0x4d4] sm:$0xf0]  ;;  %v5709_v49 = vld [vmem:[#allocation8 + $0x5c8] sm:$0xf]  ;;  %v6687_v16 = vld [vmem:[#allocation8 + $0x46c] sm:$0xf] }
 0x239   : > { %v6733_v11 = vld [vmem:[#allocation8 + $0x5d4] sm:$0xf0]  ;;  %v5661_v13 = vld [vmem:[#allocation8 + $0x568] sm:$0xf]  ;;  %v5535_v14 = vld [vmem:[#allocation8 + $0x478] sm:$0xf0] }
 0x23a   : > { %2349 = vmatpush.bf16.msra.mxu2 %v5230_v62  ;;  %2362 = vmatpush.bf16.msra.mxu3 %v5358_v44  ;;  %v5658_v62 = vor.u32 %v6718_v1, %v5655_v18  ;;  %v5637_v44 = vld [vmem:[#allocation8 + $0x540] sm:$0xf]  ;;  %v6731_v1 = vld [vmem:[#allocation8 + $0x5cc] sm:$0xf]  ;;  %v5711_v18 = vld [vmem:[#allocation8 + $0x5d8] sm:$0xf0] }
 0x23b   : > { %2375 = vmatpush.bf16.msrb.mxu0 %v5234_v23  ;;  %2388 = vmatpush.bf16.msrb.mxu1 %v5362_v2  ;;  %v6714_v23 = vld [vmem:[#allocation8 + $0x544] sm:$0xf]  ;;  %v5639_v2 = vld [vmem:[#allocation8 + $0x550] sm:$0xf0]  ;;  %v6721_v55 = vld [vmem:[#allocation8 + $0x574] sm:$0xf0] }
 0x23d   : > { %2350 = vmatmul.bf16.vlgmr.msra.gmra.mxu2 %v7677_v61  ;;  %2363 = vmatmul.bf16.vlgmr.msra.gmra.mxu3 %v7681_v3 }
 0x23e   : > { %2783 = vmatpush.bf16.msrb.mxu2 %v5590_v26  ;;  %2796 = vmatpush.bf16.msrb.mxu3 %v5718_v27  ;;  %v5510_v26 = vor.u32 %v6684_v25, %v5509_v22  ;;  %v5638_v27 = vor.u32 %v6716_v63, %v5637_v44  ;;  %v5582_v22 = vor.u32 %v6701_v45, %v5581_v8 }
 0x23f   : > { %2809 = vmatpush.bf16.msra.mxu0 %v5594_v32  ;;  %2822 = vmatpush.bf16.msra.mxu1 %v5722_v33  ;;  %v5514_v32 = vor.u32 %v6682_v0, %v5511_v9  ;;  %v5642_v33 = vor.u32 %v6714_v23, %v5639_v2  ;;  %v5710_v25 = vor.u32 %v6733_v11, %v5709_v49  ;;  %v5693_v0 = vld [vmem:[#allocation8 + $0x5a8] sm:$0xf]  ;;  %v6729_v9 = vld [vmem:[#allocation8 + $0x5b4] sm:$0xf0]  ;;  %v6695_v23 = vld [vmem:[#allocation8 + $0x4ac] sm:$0xf] }
 0x240   : > { %2376 = vmatmul.bf16.vlgmr.msrb.gmra.mxu0 %v7677_v61  ;;  %2389 = vmatmul.bf16.vlgmr.msrb.gmra.mxu1 %v7681_v3  ;;  %v5542_v61 = vor.u32 %v6692_v40, %v5541_v38  ;;  %v5670_v3 = vor.u32 %v6724_v60, %v5669_v59  ;;  %v5725_v38 = vld [vmem:[#allocation8 + $0x5e8] sm:$0xf]  ;;  %v6737_v40 = vld [vmem:[#allocation8 + $0x5f4] sm:$0xf0]  ;;  %v5599_v60 = vld [vmem:[#allocation8 + $0x4f8] sm:$0xf0]  ;;  %v5586_v44 = vor.u32 %v6699_v50, %v5583_v12 }
 0x241   : > { %v5714_v63 = vor.u32 %v6731_v1, %v5711_v18  ;;  %v5567_v2 = vld [vmem:[#allocation8 + $0x4b8] sm:$0xf0]  ;;  %v5629_v50 = vld [vmem:[#allocation8 + $0x528] sm:$0xf]  ;;  %v6713_v12 = vld [vmem:[#allocation8 + $0x534] sm:$0xf0] }
 0x242   : > { %2784 = vmatpush.bf16.msrb.mxu2 %v5574_v30  ;;  %2797 = vmatpush.bf16.msrb.mxu3 %v5702_v41  ;;  %v5477_v30 = vld [vmem:[#allocation8 + $0x400] sm:$0xf]  ;;  %v5494_v41 = vor.u32 %v6680_v31, %v5493_v28  ;;  %v5694_v31 = vor.u32 %v6729_v9, %v5693_v0  ;;  %v5570_v34 = vor.u32 %v6695_v23, %v5567_v2  ;;  %v6679_v1 = vld [vmem:[#allocation8 + $0x42c] sm:$0xf]  ;;  %v5503_v18 = vld [vmem:[#allocation8 + $0x438] sm:$0xf0] }
 0x243   : > { %2810 = vmatpush.bf16.msra.mxu0 %v5578_v42  ;;  %2823 = vmatpush.bf16.msra.mxu1 %v5706_v48  ;;  %v5605_v42 = vld [vmem:[#allocation8 + $0x500] sm:$0xf]  ;;  %v6708_v48 = vld [vmem:[#allocation8 + $0x50c] sm:$0xf0]  ;;  %v5613_v0 = vld [vmem:[#allocation8 + $0x508] sm:$0xf]  ;;  %v5506_v23 = vor.u32 %v6679_v1, %v5503_v18 }
 0x244   : > { %v5606_v59 = vor.u32 %v6708_v48, %v5605_v42  ;;  %v5533_v42 = vld [vmem:[#allocation8 + $0x468] sm:$0xf]  ;;  %v6689_v48 = vld [vmem:[#allocation8 + $0x474] sm:$0xf0] }
 0x245   : > { %v6709_v9 = vld [vmem:[#allocation8 + $0x514] sm:$0xf0] }
 0x246   : > { %2785 = vmatpush.bf16.msrb.mxu2 %v5558_v39  ;;  %2798 = vmatpush.bf16.msrb.mxu3 %v5686_v37  ;;  %v5597_v39 = vld [vmem:[#allocation8 + $0x4e8] sm:$0xf]  ;;  %v6705_v37 = vld [vmem:[#allocation8 + $0x4f4] sm:$0xf0] }
 0x247   : > { %2811 = vmatpush.bf16.msra.mxu0 %v5562_v56  ;;  %2824 = vmatpush.bf16.msra.mxu1 %v5690_v57  ;;  %v6703_v56 = vld [vmem:[#allocation8 + $0x4ec] sm:$0xf]  ;;  %v5478_v57 = vor.u32 %v6676_v17, %v5477_v30  ;;  %v5678_v17 = vor.u32 %v6725_v53, %v5677_v36  ;;  %v6766_v36 = vld [vmem:[#allocation8 + $0x6e4] sm:$0xf] }
 0x248   : > { %v6723_v30 = vld [vmem:[#allocation8 + $0x58c] sm:$0xf] }
 0x24a   : > { %2786 = vmatpush.bf16.msrb.mxu2 %v5542_v61  ;;  %2799 = vmatpush.bf16.msrb.mxu3 %v5670_v3  ;;  %v5598_v61 = vor.u32 %v6705_v37, %v5597_v39  ;;  %v5726_v3 = vor.u32 %v6737_v40, %v5725_v38  ;;  %v6719_v39 = vld [vmem:[#allocation8 + $0x56c] sm:$0xf]  ;;  %v5663_v37 = vld [vmem:[#allocation8 + $0x578] sm:$0xf0]  ;;  %v5534_v38 = vor.u32 %v6689_v48, %v5533_v42 }
 0x24b   : > { %2812 = vmatpush.bf16.msra.mxu0 %v5546_v24  ;;  %2825 = vmatpush.bf16.msra.mxu1 %v5674_v47  ;;  %v5602_v24 = vor.u32 %v6703_v56, %v5599_v60  ;;  %v5730_v47 = vor.u32 %v6735_v4, %v5727_v5  ;;  %v5662_v40 = vor.u32 %v6721_v55, %v5661_v13  ;;  %v5517_v56 = vld [vmem:[#allocation8 + $0x448] sm:$0xf]  ;;  %v6717_v5 = vld [vmem:[#allocation8 + $0x554] sm:$0xf0] }
 0x24c   : > { %v5666_v60 = vor.u32 %v6719_v39, %v5663_v37  ;;  %v5645_v4 = vld [vmem:[#allocation8 + $0x548] sm:$0xf]  ;;  %v6762_v39 = vld [vmem:[#allocation8 + $0x6c4] sm:$0xf]  ;;  %v5831_v37 = vld [vmem:[#allocation8 + $0x6d0] sm:$0xf0] }
 0x24d   : > { %v5646_v45 = vor.u32 %v6717_v5, %v5645_v4  ;;  %v5834_v4 = vor.u32 %v6762_v39, %v5831_v37  ;;  %v5749_v37 = vld [vmem:[#allocation8 + $0x620] sm:$0xf] }
 0x24e   : > { %2787 = vmatpush.bf16.msrb.mxu2 %v5526_v19  ;;  %2800 = vmatpush.bf16.msrb.mxu3 %v5654_v21  ;;  %v7692_v19 = vrot.slane %v7650_v54, 1  ;;  %v7695_v21 = vrot.slane %v7653_v46, 1 }
 0x24f   : > { %2813 = vmatpush.bf16.msra.mxu0 %v5530_v43  ;;  %2826 = vmatpush.bf16.msra.mxu1 %v5658_v62  ;;  %v5565_v43 = vld [vmem:[#allocation8 + $0x4a8] sm:$0xf]  ;;  %v6697_v62 = vld [vmem:[#allocation8 + $0x4b4] sm:$0xf0] }
 0x250   : > { %v5566_v28 = vor.u32 %v6697_v62, %v5565_v43  ;;  %v5485_v43 = vld [vmem:[#allocation8 + $0x408] sm:$0xf] }
 0x252   : > { %2788 = vmatpush.bf16.msrb.mxu2 %v5510_v26  ;;  %2801 = vmatpush.bf16.msrb.mxu3 %v5638_v27  ;;  %v6727_v26 = vld [vmem:[#allocation8 + $0x5ac] sm:$0xf]  ;;  %v5695_v27 = vld [vmem:[#allocation8 + $0x5b8] sm:$0xf0] }
 0x253   : > { %2814 = vmatpush.bf16.msra.mxu0 %v5514_v32  ;;  %2827 = vmatpush.bf16.msra.mxu1 %v5642_v33  ;;  %v5549_v32 = vld [vmem:[#allocation8 + $0x488] sm:$0xf]  ;;  %v6693_v33 = vld [vmem:[#allocation8 + $0x494] sm:$0xf0]  ;;  %v5698_v35 = vor.u32 %v6727_v26, %v5695_v27  ;;  %v6675_v26 = vld [vmem:[#allocation8 + $0x40c] sm:$0xf] }
 0x254   : > { %v5487_v27 = vld [vmem:[#allocation8 + $0x418] sm:$0xf0] }
 0x256   : > { %2789 = vmatpush.bf16.msrb.mxu2 %v5494_v41  ;;  %2802 = vmatpush.bf16.msrb.mxu3 %v5622_v58  ;;  %v5679_v41 = vld [vmem:[#allocation8 + $0x598] sm:$0xf0]  ;;  %v5550_v58 = vor.u32 %v6693_v33, %v5549_v32  ;;  %v5845_v32 = vld [vmem:[#allocation8 + $0x6e0] sm:$0xf]  ;;  %v6768_v33 = vld [vmem:[#allocation8 + $0x6ec] sm:$0xf0] }
 0x257   : > { %2815 = vmatpush.bf16.msra.mxu0 %v5498_v51  ;;  %2828 = vmatpush.bf16.msra.mxu1 %v5626_v52  ;;  %v5554_v51 = vor.u32 %v6691_v15, %v5551_v29  ;;  %v5682_v52 = vor.u32 %v6723_v30, %v5679_v41  ;;  %v5614_v15 = vor.u32 %v6709_v9, %v5613_v0  ;;  %v5847_v29 = vld [vmem:[#allocation8 + $0x6f0] sm:$0xf0]  ;;  %v6798_v30 = vld [vmem:[#allocation8 + $0x7e4] sm:$0xf]  ;;  %v5781_v9 = vld [vmem:[#allocation8 + $0x660] sm:$0xf] }
 0x258   : > { %v5975_v41 = vld [vmem:[#allocation8 + $0x7f0] sm:$0xf0]  ;;  %v5846_v42 = vor.u32 %v6768_v33, %v5845_v32  ;;  %v5850_v13 = vor.u32 %v6766_v36, %v5847_v29  ;;  %v6784_v32 = vld [vmem:[#allocation8 + $0x76c] sm:$0xf0]  ;;  %v6750_v33 = vld [vmem:[#allocation8 + $0x664] sm:$0xf] }
 0x259   : > { %v5978_v55 = vor.u32 %v6798_v30, %v5975_v41  ;;  %v5911_v36 = vld [vmem:[#allocation8 + $0x770] sm:$0xf0]  ;;  %v5765_v41 = vld [vmem:[#allocation8 + $0x640] sm:$0xf] }
 0x25a   : > { %2790 = vmatpush.bf16.msrb.mxu2 %v5478_v57  ;;  %2803 = vmatpush.bf16.msrb.mxu3 %v5606_v59  ;;  %v6685_v57 = vld [vmem:[#allocation8 + $0x454] sm:$0xf0]  ;;  %v5538_v59 = vor.u32 %v6687_v16, %v5535_v14  ;;  %v5957_v16 = vld [vmem:[#allocation8 + $0x7c0] sm:$0xf]  ;;  %v6796_v14 = vld [vmem:[#allocation8 + $0x7cc] sm:$0xf0] }
 0x25b   : > { %2816 = vmatpush.bf16.msra.mxu0 %v5482_v6  ;;  %2829 = vmatpush.bf16.msra.mxu1 %v5610_v7  ;;  %v6683_v6 = vld [vmem:[#allocation8 + $0x44c] sm:$0xf]  ;;  %v5519_v7 = vld [vmem:[#allocation8 + $0x458] sm:$0xf0]  ;;  %v5518_v8 = vor.u32 %v6685_v57, %v5517_v56  ;;  %v5958_v57 = vor.u32 %v6796_v14, %v5957_v16  ;;  %v5895_v16 = vld [vmem:[#allocation8 + $0x750] sm:$0xf0] }
 0x25c   : > { %v5522_v49 = vor.u32 %v6683_v6, %v5519_v7  ;;  %v5941_v6 = vld [vmem:[#allocation8 + $0x7a0] sm:$0xf]  ;;  %v6792_v7 = vld [vmem:[#allocation8 + $0x7ac] sm:$0xf0] }
 0x25d   : > { %2791 = vmatmul.bf16.vlgmr.msrb.gmra.mxu2 %v7692_v19  ;;  %2804 = vmatmul.bf16.vlgmr.msrb.gmra.mxu3 %v7695_v21 }
 0x25e   : > { %2835 = vmatpush.bf16.msra.mxu2 %v5598_v61  ;;  %2848 = vmatpush.bf16.msra.mxu3 %v5726_v3  ;;  %v6715_v61 = vld [vmem:[#allocation8 + $0x54c] sm:$0xf]  ;;  %v5647_v3 = vld [vmem:[#allocation8 + $0x558] sm:$0xf0] }
 0x25f   : > { %2861 = vmatpush.bf16.msrb.mxu0 %v5602_v24  ;;  %2874 = vmatpush.bf16.msrb.mxu1 %v5730_v47  ;;  %v5501_v24 = vld [vmem:[#allocation8 + $0x428] sm:$0xf]  ;;  %v6681_v47 = vld [vmem:[#allocation8 + $0x434] sm:$0xf0]  ;;  %v5650_v11 = vor.u32 %v6715_v61, %v5647_v3  ;;  %v6758_v61 = vld [vmem:[#allocation8 + $0x6a4] sm:$0xf] }
 0x260   : > { %2817 = vmatmul.bf16.vlgmr.msra.gmra.mxu0 %v7692_v19  ;;  %2830 = vmatmul.bf16.vlgmr.msra.gmra.mxu1 %v7695_v21  ;;  %v5502_v62 = vor.u32 %v6681_v47, %v5501_v24  ;;  %v5815_v3 = vld [vmem:[#allocation8 + $0x6b0] sm:$0xf0]  ;;  %v5942_v47 = vor.u32 %v6792_v7, %v5941_v6  ;;  %v6774_v7 = vld [vmem:[#allocation8 + $0x724] sm:$0xf] }
 0x261   : > { %v5818_v1 = vor.u32 %v6758_v61, %v5815_v3  ;;  %v5751_v6 = vld [vmem:[#allocation8 + $0x630] sm:$0xf0]  ;;  %v5733_v3 = vld [vmem:[#allocation8 + $0x600] sm:$0xf] }
 0x262   : > { %2836 = vmatpush.bf16.msra.mxu2 %v5582_v22  ;;  %2849 = vmatpush.bf16.msra.mxu3 %v5710_v25  ;;  %v6711_v22 = vld [vmem:[#allocation8 + $0x52c] sm:$0xf]  ;;  %v5631_v25 = vld [vmem:[#allocation8 + $0x538] sm:$0xf0]  ;;  %v5879_v61 = vld [vmem:[#allocation8 + $0x730] sm:$0xf0] }
 0x263   : > { %2862 = vmatpush.bf16.msrb.mxu0 %v5586_v44  ;;  %2875 = vmatpush.bf16.msrb.mxu1 %v5714_v63  ;;  %v5630_v44 = vor.u32 %v6713_v12, %v5629_v50  ;;  %v6677_v63 = vld [vmem:[#allocation8 + $0x414] sm:$0xf0]  ;;  %v5634_v2 = vor.u32 %v6711_v22, %v5631_v25  ;;  %v5797_v50 = vld [vmem:[#allocation8 + $0x680] sm:$0xf]  ;;  %v6756_v12 = vld [vmem:[#allocation8 + $0x68c] sm:$0xf0] }
 0x264   : > { %v5486_v53 = vor.u32 %v6677_v63, %v5485_v43  ;;  %v5925_v25 = vld [vmem:[#allocation8 + $0x780] sm:$0xf]  ;;  %v6788_v43 = vld [vmem:[#allocation8 + $0x78c] sm:$0xf0]  ;;  %v5798_v63 = vor.u32 %v6756_v12, %v5797_v50 }
 0x265   : > { %v5926_v0 = vor.u32 %v6788_v43, %v5925_v25  ;;  %v6772_v50 = vld [vmem:[#allocation8 + $0x70c] sm:$0xf0]  ;;  %v6738_v25 = vld [vmem:[#allocation8 + $0x604] sm:$0xf]  ;;  %v5735_v43 = vld [vmem:[#allocation8 + $0x610] sm:$0xf0] }
 0x266   : > { %2837 = vmatpush.bf16.msra.mxu2 %v5566_v28  ;;  %2850 = vmatpush.bf16.msra.mxu3 %v5694_v31  ;;  %v6707_v28 = vld [vmem:[#allocation8 + $0x50c] sm:$0xf]  ;;  %v5615_v31 = vld [vmem:[#allocation8 + $0x518] sm:$0xf0] }
 0x267   : > { %2863 = vmatpush.bf16.msrb.mxu0 %v5570_v34  ;;  %2876 = vmatpush.bf16.msrb.mxu1 %v5698_v35  ;;  %v5973_v34 = vld [vmem:[#allocation8 + $0x7e0] sm:$0xf]  ;;  %v6800_v35 = vld [vmem:[#allocation8 + $0x7ec] sm:$0xf0] }
 0x268   : > { %v5974_v48 = vor.u32 %v6800_v35, %v5973_v34  ;;  %v5783_v34 = vld [vmem:[#allocation8 + $0x670] sm:$0xf0]  ;;  %v6782_v35 = vld [vmem:[#allocation8 + $0x764] sm:$0xf] }
 0x26a   : > { %2838 = vmatpush.bf16.msra.mxu2 %v5550_v58  ;;  %2851 = vmatpush.bf16.msra.mxu3 %v5678_v17  ;;  %v5490_v58 = vor.u32 %v6675_v26, %v5487_v27  ;;  %v5618_v17 = vor.u32 %v6707_v28, %v5615_v31  ;;  %v5909_v31 = vld [vmem:[#allocation8 + $0x760] sm:$0xf] }
 0x26b   : > { %2864 = vmatpush.bf16.msrb.mxu0 %v5554_v51  ;;  %2877 = vmatpush.bf16.msrb.mxu1 %v5682_v52  ;;  %v5829_v51 = vld [vmem:[#allocation8 + $0x6c0] sm:$0xf]  ;;  %v6764_v52 = vld [vmem:[#allocation8 + $0x6cc] sm:$0xf0] }
 0x26c   : > { %v5830_v56 = vor.u32 %v6764_v52, %v5829_v51  ;;  %v6780_v51 = vld [vmem:[#allocation8 + $0x74c] sm:$0xf0]  ;;  %v6746_v52 = vld [vmem:[#allocation8 + $0x644] sm:$0xf] }
 0x26e   : > { %2839 = vmatpush.bf16.msra.mxu2 %v5534_v38  ;;  %2852 = vmatpush.bf16.msra.mxu3 %v5662_v40  ;;  %v6794_v38 = vld [vmem:[#allocation8 + $0x7c4] sm:$0xf]  ;;  %v5959_v40 = vld [vmem:[#allocation8 + $0x7d0] sm:$0xf0] }
 0x26f   : > { %2865 = vmatpush.bf16.msrb.mxu0 %v5538_v59  ;;  %2878 = vmatpush.bf16.msrb.mxu1 %v5666_v60  ;;  %v5813_v59 = vld [vmem:[#allocation8 + $0x6a0] sm:$0xf]  ;;  %v6760_v60 = vld [vmem:[#allocation8 + $0x6ac] sm:$0xf0]  ;;  %v5962_v5 = vor.u32 %v6794_v38, %v5959_v40 }
 0x270   : > { %v5814_v24 = vor.u32 %v6760_v60, %v5813_v59  ;;  %v6744_v38 = vld [vmem:[#allocation8 + $0x62c] sm:$0xf0]  ;;  %v5877_v60 = vld [vmem:[#allocation8 + $0x720] sm:$0xf] }
 0x272   : > { %2840 = vmatpush.bf16.msra.mxu2 %v5518_v8  ;;  %2853 = vmatpush.bf16.msra.mxu3 %v5646_v45  ;;  %v6790_v8 = vld [vmem:[#allocation8 + $0x7a4] sm:$0xf]  ;;  %v5943_v45 = vld [vmem:[#allocation8 + $0x7b0] sm:$0xf0] }
 0x273   : > { %2866 = vmatpush.bf16.msrb.mxu0 %v5522_v49  ;;  %2879 = vmatpush.bf16.msrb.mxu1 %v5650_v11  ;;  %v5946_v18 = vor.u32 %v6790_v8, %v5943_v45  ;;  %v5750_v8 = vor.u32 %v6744_v38, %v5749_v37  ;;  %v5821_v38 = vld [vmem:[#allocation8 + $0x6a8] sm:$0xf] }
 0x276   : > { %2841 = vmatpush.bf16.msra.mxu2 %v5502_v62  ;;  %2854 = vmatpush.bf16.msra.mxu3 %v5630_v44  ;;  %v6754_v62 = vld [vmem:[#allocation8 + $0x684] sm:$0xf] }
 0x277   : > { %2867 = vmatpush.bf16.msrb.mxu0 %v5506_v23  ;;  %2880 = vmatpush.bf16.msrb.mxu1 %v5634_v2  ;;  %v6786_v44 = vld [vmem:[#allocation8 + $0x784] sm:$0xf]  ;;  %v6752_v23 = vld [vmem:[#allocation8 + $0x66c] sm:$0xf0] }
 0x27a   : > { %2842 = vmatpush.bf16.msra.mxu2 %v5486_v53  ;;  %2855 = vmatpush.bf16.msra.mxu3 %v5614_v15  ;;  %v1897_v49 = vpop.f32.mrf.mxu0  ;;  %v1910_v11 = vpop.f32.mrf.mxu1  ;;  %v5782_v53 = vor.u32 %v6752_v23, %v5781_v9  ;;  %v5910_v15 = vor.u32 %v6784_v32, %v5909_v31  ;;  %v6767_v9 = vld [vmem:[#allocation8 + $0x6ec] sm:$0xf]  ;;  %v5983_v32 = vld [vmem:[#allocation8 + $0x7f8] sm:$0xf0] }
 0x27b   : > { %2868 = vmatpush.bf16.msrb.mxu0 %v5490_v58  ;;  %2881 = vmatpush.bf16.msrb.mxu1 %v5618_v17  ;;  %v7705_v22 = vadd.f32 %v1910_v11, %v1897_v49  ;;  %v6748_v58 = vld [vmem:[#allocation8 + $0x64c] sm:$0xf0]  ;;  %v5786_v17 = vor.u32 %v6750_v33, %v5783_v34  ;;  %v5861_v11 = vld [vmem:[#allocation8 + $0x700] sm:$0xf]  ;;  %v6799_v31 = vld [vmem:[#allocation8 + $0x7ec] sm:$0xf]  ;;  %v5738_v33 = vor.u32 %v6738_v25, %v5735_v43 }
 0x27c   : > { %v5766_v14 = vor.u32 %v6748_v58, %v5765_v41  ;;  %v6740_v49 = vld [vmem:[#allocation8 + $0x60c] sm:$0xf0]  ;;  %v6765_v41 = vld [vmem:[#allocation8 + $0x6d4] sm:$0xf0]  ;;  %v5807_v25 = vld [vmem:[#allocation8 + $0x698] sm:$0xf0] }
 0x27d   : > { %2843 = vmatmul.bf16.vlgmr.msra.gmra.mxu2 %v7692_v19  ;;  %2856 = vmatmul.bf16.vlgmr.msra.gmra.mxu3 %v7695_v21  ;;  %v5734_v23 = vor.u32 %v6740_v49, %v5733_v3  ;;  %v6787_v43 = vld [vmem:[#allocation8 + $0x78c] sm:$0xf] }
 0x27e   : > { %3284 = vmatpush.bf16.msrb.mxu2 %v5846_v42  ;;  %3297 = vmatpush.bf16.msrb.mxu3 %v5974_v48  ;;  %v5914_v42 = vor.u32 %v6782_v35, %v5911_v36  ;;  %v5893_v48 = vld [vmem:[#allocation8 + $0x740] sm:$0xf] }
 0x27f   : > { %3310 = vmatpush.bf16.msra.mxu0 %v5850_v13  ;;  %3323 = vmatpush.bf16.msra.mxu1 %v5978_v55  ;;  %v7707_v27 = vpop.f32.mrf.mxu2  ;;  %v7709_v28 = vpop.f32.mrf.mxu3  ;;  %v5767_v13 = vld [vmem:[#allocation8 + $0x650] sm:$0xf0]  ;;  %v6778_v55 = vld [vmem:[#allocation8 + $0x744] sm:$0xf]  ;;  %v5894_v39 = vor.u32 %v6780_v51, %v5893_v48  ;;  %v6797_v48 = vld [vmem:[#allocation8 + $0x7d4] sm:$0xf0] }
 0x280   : > { %2869 = vmatmul.bf16.vlgmr.msrb.gmra.mxu0 %v7692_v19  ;;  %2882 = vmatmul.bf16.vlgmr.msrb.gmra.mxu1 %v7695_v21  ;;  %v5799_v19 = vld [vmem:[#allocation8 + $0x690] sm:$0xf0]  ;;  %v5770_v40 = vor.u32 %v6746_v52, %v5767_v13  ;;  %v6763_v51 = vld [vmem:[#allocation8 + $0x6cc] sm:$0xf] }
 0x281   : > { %v5927_v21 = vld [vmem:[#allocation8 + $0x790] sm:$0xf0]  ;;  %v5802_v2 = vor.u32 %v6754_v62, %v5799_v19  ;;  %v6770_v62 = vld [vmem:[#allocation8 + $0x704] sm:$0xf] }
 0x282   : > { %3285 = vmatpush.bf16.msrb.mxu2 %v5830_v56  ;;  %3298 = vmatpush.bf16.msrb.mxu3 %v5958_v57  ;;  %v5930_v26 = vor.u32 %v6786_v44, %v5927_v21  ;;  %v1899_v29 = vpop.f32.mrf.mxu0  ;;  %v1912_v30 = vpop.f32.mrf.mxu1  ;;  %v5898_v56 = vor.u32 %v6778_v55, %v5895_v16  ;;  %v5863_v19 = vld [vmem:[#allocation8 + $0x710] sm:$0xf0]  ;;  %v5853_v44 = vld [vmem:[#allocation8 + $0x6e8] sm:$0xf]  ;;  %v6769_v21 = vld [vmem:[#allocation8 + $0x6f4] sm:$0xf0] }
 0x283   : > { %3311 = vmatpush.bf16.msra.mxu0 %v5834_v4  ;;  %3324 = vmatpush.bf16.msra.mxu1 %v5962_v5  ;;  %v6776_v4 = vld [vmem:[#allocation8 + $0x72c] sm:$0xf0]  ;;  %v6742_v5 = vld [vmem:[#allocation8 + $0x624] sm:$0xf]  ;;  %v5866_v34 = vor.u32 %v6770_v62, %v5863_v19  ;;  %v5837_v30 = vld [vmem:[#allocation8 + $0x6c8] sm:$0xf] }
 0x284   : > { %v5878_v45 = vor.u32 %v6776_v4, %v5877_v60  ;;  %v5754_v12 = vor.u32 %v6742_v5, %v5751_v6  ;;  %v5839_v55 = vld [vmem:[#allocation8 + $0x6d8] sm:$0xf0]  ;;  %v6795_v16 = vld [vmem:[#allocation8 + $0x7cc] sm:$0xf]  ;;  %v6793_v60 = vld [vmem:[#allocation8 + $0x7b4] sm:$0xf0] }
 0x285   : > { %v6759_v4 = vld [vmem:[#allocation8 + $0x6ac] sm:$0xf]  ;;  %v5823_v5 = vld [vmem:[#allocation8 + $0x6b8] sm:$0xf0] }
 0x286   : > { %3286 = vmatpush.bf16.msrb.mxu2 %v5814_v24  ;;  %3299 = vmatpush.bf16.msrb.mxu3 %v5942_v47  ;;  %v6791_v6 = vld [vmem:[#allocation8 + $0x7ac] sm:$0xf]  ;;  %v5826_v49 = vor.u32 %v6759_v4, %v5823_v5  ;;  %v5935_v62 = vld [vmem:[#allocation8 + $0x798] sm:$0xf0]  ;;  %v5885_v5 = vld [vmem:[#allocation8 + $0x728] sm:$0xf] }
 0x287   : > { %3312 = vmatpush.bf16.msra.mxu0 %v5818_v1  ;;  %3325 = vmatpush.bf16.msra.mxu1 %v5946_v18  ;;  %v1873_v57 = vpop.f32.mrf.mxu2  ;;  %v1886_v59 = vpop.f32.mrf.mxu3  ;;  %v5882_v1 = vor.u32 %v6774_v7, %v5879_v61  ;;  %v5951_v7 = vld [vmem:[#allocation8 + $0x7b8] sm:$0xf0] }
 0x288   : > { %v5949_v59 = vld [vmem:[#allocation8 + $0x7a8] sm:$0xf] }
 0x28a   : > { %3287 = vmatpush.bf16.msrb.mxu2 %v5798_v63  ;;  %3300 = vmatpush.bf16.msrb.mxu3 %v5926_v0  ;;  %v1949_v24 = vpop.f32.mrf.mxu0  ;;  %v1962_v47 = vpop.f32.mrf.mxu1  ;;  %v5981_v63 = vld [vmem:[#allocation8 + $0x7e8] sm:$0xf]  ;;  %v6801_v0 = vld [vmem:[#allocation8 + $0x7f4] sm:$0xf0] }
 0x28b   : > { %3313 = vmatpush.bf16.msra.mxu0 %v5802_v2  ;;  %3326 = vmatpush.bf16.msra.mxu1 %v5930_v26  ;;  %v7711_v18 = vadd.f32 %v1962_v47, %v1949_v24  ;;  %v5862_v2 = vor.u32 %v6772_v50, %v5861_v11  ;;  %v5855_v26 = vld [vmem:[#allocation8 + $0x6f8] sm:$0xf0]  ;;  %v5805_v24 = vld [vmem:[#allocation8 + $0x688] sm:$0xf]  ;;  %v6757_v47 = vld [vmem:[#allocation8 + $0x694] sm:$0xf0]  ;;  %v5954_v11 = vor.u32 %v6791_v6, %v5951_v7 }
 0x28c   : > { %v5858_v58 = vor.u32 %v6767_v9, %v5855_v26  ;;  %v5933_v50 = vld [vmem:[#allocation8 + $0x788] sm:$0xf]  ;;  %v6753_v9 = vld [vmem:[#allocation8 + $0x674] sm:$0xf0]  ;;  %v5938_v26 = vor.u32 %v6787_v43, %v5935_v62  ;;  %v6743_v7 = vld [vmem:[#allocation8 + $0x62c] sm:$0xf] }
 0x28d   : > { %v6777_v6 = vld [vmem:[#allocation8 + $0x734] sm:$0xf0]  ;;  %v6739_v62 = vld [vmem:[#allocation8 + $0x60c] sm:$0xf] }
 0x28e   : > { %3288 = vmatpush.bf16.msrb.mxu2 %v5782_v53  ;;  %3301 = vmatpush.bf16.msrb.mxu3 %v5910_v15  ;;  %v5854_v53 = vor.u32 %v6769_v21, %v5853_v44  ;;  %v5982_v15 = vor.u32 %v6801_v0, %v5981_v63  ;;  %v5806_v21 = vor.u32 %v6757_v47, %v5805_v24  ;;  %v5789_v0 = vld [vmem:[#allocation8 + $0x668] sm:$0xf] }
 0x28f   : > { %3314 = vmatpush.bf16.msra.mxu0 %v5786_v17  ;;  %3327 = vmatpush.bf16.msra.mxu1 %v5914_v42  ;;  %v1923_v35 = vpop.f32.mrf.mxu2  ;;  %v1936_v36 = vpop.f32.mrf.mxu3  ;;  %v5986_v17 = vor.u32 %v6799_v31, %v5983_v32  ;;  %v5965_v42 = vld [vmem:[#allocation8 + $0x7c8] sm:$0xf]  ;;  %v6785_v32 = vld [vmem:[#allocation8 + $0x774] sm:$0xf0]  ;;  %v5886_v47 = vor.u32 %v6777_v6, %v5885_v5 }
 0x290   : > { %v7713_v29 = vadd.f32 %v1936_v36, %v1923_v35  ;;  %v5966_v37 = vor.u32 %v6797_v48, %v5965_v42  ;;  %v5917_v31 = vld [vmem:[#allocation8 + $0x768] sm:$0xf]  ;;  %v6783_v35 = vld [vmem:[#allocation8 + $0x76c] sm:$0xf]  ;;  %v5919_v36 = vld [vmem:[#allocation8 + $0x778] sm:$0xf0] }
 0x291   : > { %v5922_v42 = vor.u32 %v6783_v35, %v5919_v36 }
 0x292   : > { %3289 = vmatpush.bf16.msrb.mxu2 %v5766_v14  ;;  %3302 = vmatpush.bf16.msrb.mxu3 %v5894_v39  ;;  %v1951_v52 = vpop.f32.mrf.mxu0  ;;  %v1964_v13 = vpop.f32.mrf.mxu1  ;;  %v5967_v14 = vld [vmem:[#allocation8 + $0x7d8] sm:$0xf0]  ;;  %v5838_v39 = vor.u32 %v6765_v41, %v5837_v30  ;;  %v5790_v30 = vor.u32 %v6753_v9, %v5789_v0  ;;  %v5918_v41 = vor.u32 %v6785_v32, %v5917_v31  ;;  %v6832_v0 = vld [vmem:[#allocation8 + $0x8ec] sm:$0xf0]  ;;  %v6229_v9 = vld [vmem:[#allocation8 + $0x9e0] sm:$0xf] }
 0x293   : > { %3315 = vmatpush.bf16.msra.mxu0 %v5770_v40  ;;  %3328 = vmatpush.bf16.msra.mxu1 %v5898_v56  ;;  %v6761_v40 = vld [vmem:[#allocation8 + $0x6b4] sm:$0xf0]  ;;  %v5842_v56 = vor.u32 %v6763_v51, %v5839_v55  ;;  %v5970_v57 = vor.u32 %v6795_v16, %v5967_v14  ;;  %v5901_v52 = vld [vmem:[#allocation8 + $0x748] sm:$0xf]  ;;  %v6747_v55 = vld [vmem:[#allocation8 + $0x64c] sm:$0xf] }
 0x294   : > { %v6781_v13 = vld [vmem:[#allocation8 + $0x754] sm:$0xf0]  ;;  %v5775_v14 = vld [vmem:[#allocation8 + $0x658] sm:$0xf0]  ;;  %v6103_v32 = vld [vmem:[#allocation8 + $0x8f0] sm:$0xf0] }
 0x296   : > { %3290 = vmatpush.bf16.msrb.mxu2 %v5750_v8  ;;  %3303 = vmatpush.bf16.msrb.mxu3 %v5878_v45  ;;  %v5822_v8 = vor.u32 %v6761_v40, %v5821_v38  ;;  %v5950_v45 = vor.u32 %v6793_v60, %v5949_v59  ;;  %v6745_v59 = vld [vmem:[#allocation8 + $0x634] sm:$0xf0]  ;;  %v5778_v60 = vor.u32 %v6747_v55, %v5775_v14  ;;  %v6215_v55 = vld [vmem:[#allocation8 + $0x9d0] sm:$0xf0] }
 0x297   : > { %3316 = vmatpush.bf16.msra.mxu0 %v5754_v12  ;;  %3329 = vmatpush.bf16.msra.mxu1 %v5882_v1  ;;  %v1925_v61 = vpop.f32.mrf.mxu2  ;;  %v1938_v3 = vpop.f32.mrf.mxu3  ;;  %v6789_v12 = vld [vmem:[#allocation8 + $0x794] sm:$0xf0]  ;;  %v6755_v1 = vld [vmem:[#allocation8 + $0x68c] sm:$0xf] }
 0x298   : > { %v5934_v63 = vor.u32 %v6789_v12, %v5933_v50  ;;  %v5759_v61 = vld [vmem:[#allocation8 + $0x638] sm:$0xf0]  ;;  %v6775_v3 = vld [vmem:[#allocation8 + $0x72c] sm:$0xf]  ;;  %v6773_v50 = vld [vmem:[#allocation8 + $0x714] sm:$0xf0] }
 0x299   : > { %v5762_v12 = vor.u32 %v6743_v7, %v5759_v61  ;;  %v6053_v7 = vld [vmem:[#allocation8 + $0x880] sm:$0xf]  ;;  %v6820_v61 = vld [vmem:[#allocation8 + $0x88c] sm:$0xf0] }
 0x29a   : > { %3291 = vmatpush.bf16.msrb.mxu2 %v5734_v23  ;;  %3304 = vmatpush.bf16.msrb.mxu3 %v5862_v2  ;;  %v5810_v2 = vor.u32 %v6755_v1, %v5807_v25 }
 0x29b   : > { %3317 = vmatpush.bf16.msra.mxu0 %v5738_v33  ;;  %3330 = vmatpush.bf16.msra.mxu1 %v5866_v34  ;;  %v6751_v33 = vld [vmem:[#allocation8 + $0x66c] sm:$0xf]  ;;  %v5791_v34 = vld [vmem:[#allocation8 + $0x678] sm:$0xf0] }
 0x29d   : > { %3292 = vmatmul.bf16.vlgmr.msrb.gmra.mxu2 %v7663_v10  ;;  %3305 = vmatmul.bf16.vlgmr.msrb.gmra.mxu3 %v7665_v20  ;;  %v2325_v19 = vpop.f32.mrf.mxu0  ;;  %v2338_v44 = vpop.f32.mrf.mxu1 }
 0x29e   : > { %3336 = vmatpush.bf16.msra.mxu2 %v5854_v53  ;;  %3349 = vmatpush.bf16.msra.mxu3 %v5982_v15  ;;  %v2326_v23 = vadd.f32 %v2325_v19, %v7705_v22  ;;  %v1885_v15 = vadd.f32 %v7709_v28, %v7707_v27  ;;  %v5794_v22 = vor.u32 %v6751_v33, %v5791_v34  ;;  %v5743_v19 = vld [vmem:[#allocation8 + $0x618] sm:$0xf0]  ;;  %v6862_v33 = vld [vmem:[#allocation8 + $0x9e4] sm:$0xf]  ;;  %v6231_v34 = vld [vmem:[#allocation8 + $0x9f0] sm:$0xf0] }
 0x29f   : > { %3362 = vmatpush.bf16.msrb.mxu0 %v5858_v58  ;;  %3375 = vmatpush.bf16.msrb.mxu1 %v5986_v17  ;;  %v5773_v58 = vld [vmem:[#allocation8 + $0x648] sm:$0xf]  ;;  %v6749_v17 = vld [vmem:[#allocation8 + $0x654] sm:$0xf0]  ;;  %v5746_v35 = vor.u32 %v6739_v62, %v5743_v19 }
 0x2a0   : > { %3318 = vmatmul.bf16.vlgmr.msra.gmra.mxu0 %v7663_v10  ;;  %3331 = vmatmul.bf16.vlgmr.msra.gmra.mxu1 %v7665_v20  ;;  %v7720_v53 = vadd.f32 %v2338_v44, %v2326_v23  ;;  %v2299_v48 = vpop.f32.mrf.mxu2  ;;  %v2312_v51 = vpop.f32.mrf.mxu3  ;;  %v5774_v40 = vor.u32 %v6749_v17, %v5773_v58  ;;  %v6771_v44 = vld [vmem:[#allocation8 + $0x70c] sm:$0xf]  ;;  %v6864_v23 = vld [vmem:[#allocation8 + $0x9ec] sm:$0xf0] }
 0x2a1   : > { %v2300_v16 = vadd.f32 %v2299_v48, %v1885_v15  ;;  %v6828_v58 = vld [vmem:[#allocation8 + $0x8cc] sm:$0xf0] }
 0x2a2   : > { %3337 = vmatpush.bf16.msra.mxu2 %v5838_v39  ;;  %3350 = vmatpush.bf16.msra.mxu3 %v5966_v37  ;;  %v6779_v39 = vld [vmem:[#allocation8 + $0x74c] sm:$0xf]  ;;  %v5903_v37 = vld [vmem:[#allocation8 + $0x758] sm:$0xf0]  ;;  %v6860_v48 = vld [vmem:[#allocation8 + $0x9cc] sm:$0xf0] }
 0x2a3   : > { %3363 = vmatpush.bf16.msrb.mxu0 %v5842_v56  ;;  %3376 = vmatpush.bf16.msrb.mxu1 %v5970_v57  ;;  %v7724_v27 = vadd.f32 %v2312_v51, %v2300_v16  ;;  %v5902_v56 = vor.u32 %v6781_v13, %v5901_v52  ;;  %v5757_v57 = vld [vmem:[#allocation8 + $0x628] sm:$0xf]  ;;  %v5906_v4 = vor.u32 %v6779_v39, %v5903_v37  ;;  %v6826_v51 = vld [vmem:[#allocation8 + $0x8c4] sm:$0xf]  ;;  %v6087_v52 = vld [vmem:[#allocation8 + $0x8d0] sm:$0xf0] }
 0x2a4   : > { %v5758_v24 = vor.u32 %v6745_v59, %v5757_v57  ;;  %v6858_v13 = vld [vmem:[#allocation8 + $0x9c4] sm:$0xf]  ;;  %v6069_v39 = vld [vmem:[#allocation8 + $0x8a0] sm:$0xf]  ;;  %v6824_v37 = vld [vmem:[#allocation8 + $0x8ac] sm:$0xf0] }
 0x2a5   : > { %v2327_v28 = vpop.f32.mrf.mxu0  ;;  %v2340_v38 = vpop.f32.mrf.mxu1  ;;  %v6822_v57 = vld [vmem:[#allocation8 + $0x8a4] sm:$0xf]  ;;  %v6071_v59 = vld [vmem:[#allocation8 + $0x8b0] sm:$0xf0]  ;;  %v6070_v5 = vor.u32 %v6824_v37, %v6069_v39  ;;  %v6808_v39 = vld [vmem:[#allocation8 + $0x82c] sm:$0xf0] }
 0x2a6   : > { %3338 = vmatpush.bf16.msra.mxu2 %v5822_v8  ;;  %3351 = vmatpush.bf16.msra.mxu3 %v5950_v45  ;;  %v5887_v8 = vld [vmem:[#allocation8 + $0x738] sm:$0xf0]  ;;  %v5741_v45 = vld [vmem:[#allocation8 + $0x608] sm:$0xf]  ;;  %v6090_v28 = vor.u32 %v6826_v51, %v6087_v52  ;;  %v6218_v38 = vor.u32 %v6858_v13, %v6215_v55 }
 0x2a7   : > { %3364 = vmatpush.bf16.msrb.mxu0 %v5826_v49  ;;  %3377 = vmatpush.bf16.msrb.mxu1 %v5954_v11  ;;  %v6741_v49 = vld [vmem:[#allocation8 + $0x614] sm:$0xf0]  ;;  %v5869_v11 = vld [vmem:[#allocation8 + $0x708] sm:$0xf]  ;;  %v5890_v1 = vor.u32 %v6775_v3, %v5887_v8  ;;  %v6074_v3 = vor.u32 %v6822_v57, %v6071_v59  ;;  %v6838_v57 = vld [vmem:[#allocation8 + $0x924] sm:$0xf] }
 0x2a8   : > { %v2301_v25 = vpop.f32.mrf.mxu2  ;;  %v2314_v43 = vpop.f32.mrf.mxu3  ;;  %v5870_v31 = vor.u32 %v6773_v50, %v5869_v11  ;;  %v6850_v11 = vld [vmem:[#allocation8 + $0x984] sm:$0xf]  ;;  %v6183_v50 = vld [vmem:[#allocation8 + $0x990] sm:$0xf0] }
 0x2a9   : > { %v6037_v25 = vld [vmem:[#allocation8 + $0x860] sm:$0xf]  ;;  %v6816_v43 = vld [vmem:[#allocation8 + $0x86c] sm:$0xf0]  ;;  %v6135_v59 = vld [vmem:[#allocation8 + $0x930] sm:$0xf0] }
 0x2aa   : > { %3339 = vmatpush.bf16.msra.mxu2 %v5806_v21  ;;  %3352 = vmatpush.bf16.msra.mxu3 %v5934_v63  ;;  %v5871_v21 = vld [vmem:[#allocation8 + $0x718] sm:$0xf0]  ;;  %v6101_v63 = vld [vmem:[#allocation8 + $0x8e0] sm:$0xf] }
 0x2ab   : > { %3365 = vmatpush.bf16.msrb.mxu0 %v5810_v2  ;;  %3378 = vmatpush.bf16.msrb.mxu1 %v5938_v26  ;;  %v6830_v2 = vld [vmem:[#allocation8 + $0x8e4] sm:$0xf]  ;;  %v5742_v26 = vor.u32 %v6741_v49, %v5741_v45  ;;  %v5874_v36 = vor.u32 %v6771_v44, %v5871_v21  ;;  %v6102_v15 = vor.u32 %v6832_v0, %v6101_v63  ;;  %v6181_v45 = vld [vmem:[#allocation8 + $0x980] sm:$0xf]  ;;  %v6055_v49 = vld [vmem:[#allocation8 + $0x890] sm:$0xf0] }
 0x2ac   : > { %v6106_v17 = vor.u32 %v6830_v2, %v6103_v32  ;;  %v6186_v44 = vor.u32 %v6850_v11, %v6183_v50  ;;  %v6165_v21 = vld [vmem:[#allocation8 + $0x960] sm:$0xf]  ;;  %v6848_v63 = vld [vmem:[#allocation8 + $0x96c] sm:$0xf0]  ;;  %v6814_v0 = vld [vmem:[#allocation8 + $0x864] sm:$0xf] }
 0x2ad   : > { %v6167_v2 = vld [vmem:[#allocation8 + $0x970] sm:$0xf0]  ;;  %v6166_v32 = vor.u32 %v6848_v63, %v6165_v21  ;;  %v6834_v11 = vld [vmem:[#allocation8 + $0x904] sm:$0xf]  ;;  %v6239_v21 = vld [vmem:[#allocation8 + $0x9f8] sm:$0xf0] }
 0x2ae   : > { %3340 = vmatpush.bf16.msra.mxu2 %v5790_v30  ;;  %3353 = vmatpush.bf16.msra.mxu3 %v5918_v41  ;;  %v6230_v30 = vor.u32 %v6864_v23, %v6229_v9  ;;  %v6085_v41 = vld [vmem:[#allocation8 + $0x8c0] sm:$0xf]  ;;  %v6039_v9 = vld [vmem:[#allocation8 + $0x870] sm:$0xf0]  ;;  %v6846_v23 = vld [vmem:[#allocation8 + $0x964] sm:$0xf] }
 0x2af   : > { %3366 = vmatpush.bf16.msrb.mxu0 %v5794_v22  ;;  %3379 = vmatpush.bf16.msrb.mxu1 %v5922_v42  ;;  %v6234_v22 = vor.u32 %v6862_v33, %v6231_v34  ;;  %v6213_v42 = vld [vmem:[#allocation8 + $0x9c0] sm:$0xf]  ;;  %v6086_v16 = vor.u32 %v6828_v58, %v6085_v41  ;;  %v6812_v34 = vld [vmem:[#allocation8 + $0x84c] sm:$0xf0]  ;;  %v6810_v58 = vld [vmem:[#allocation8 + $0x844] sm:$0xf] }
 0x2b0   : > { %v6214_v14 = vor.u32 %v6860_v48, %v6213_v42  ;;  %v6021_v33 = vld [vmem:[#allocation8 + $0x840] sm:$0xf]  ;;  %v6844_v41 = vld [vmem:[#allocation8 + $0x94c] sm:$0xf0]  ;;  %v6842_v42 = vld [vmem:[#allocation8 + $0x944] sm:$0xf] }
 0x2b1   : > { %v6151_v48 = vld [vmem:[#allocation8 + $0x950] sm:$0xf0]  ;;  %v6022_v55 = vor.u32 %v6812_v34, %v6021_v33  ;;  %v6221_v34 = vld [vmem:[#allocation8 + $0x9c8] sm:$0xf] }
 0x2b2   : > { %3341 = vmatpush.bf16.msra.mxu2 %v5774_v40  ;;  %3354 = vmatpush.bf16.msra.mxu3 %v5902_v56  ;;  %v6197_v40 = vld [vmem:[#allocation8 + $0x9a0] sm:$0xf]  ;;  %v6856_v56 = vld [vmem:[#allocation8 + $0x9ac] sm:$0xf0]  ;;  %v6119_v50 = vld [vmem:[#allocation8 + $0x910] sm:$0xf0] }
 0x2b3   : > { %3367 = vmatpush.bf16.msrb.mxu0 %v5778_v60  ;;  %3380 = vmatpush.bf16.msrb.mxu1 %v5906_v4  ;;  %v6854_v60 = vld [vmem:[#allocation8 + $0x9a4] sm:$0xf]  ;;  %v6199_v4 = vld [vmem:[#allocation8 + $0x9b0] sm:$0xf0]  ;;  %v6198_v6 = vor.u32 %v6856_v56, %v6197_v40  ;;  %v6840_v40 = vld [vmem:[#allocation8 + $0x92c] sm:$0xf0] }
 0x2b4   : > { %v6202_v8 = vor.u32 %v6854_v60, %v6199_v4  ;;  %v6007_v56 = vld [vmem:[#allocation8 + $0x830] sm:$0xf0]  ;;  %v5989_v60 = vld [vmem:[#allocation8 + $0x800] sm:$0xf] }
 0x2b6   : > { %3342 = vmatpush.bf16.msra.mxu2 %v5758_v24  ;;  %3355 = vmatpush.bf16.msra.mxu3 %v5886_v47  ;;  %v6852_v24 = vld [vmem:[#allocation8 + $0x98c] sm:$0xf0]  ;;  %v6818_v47 = vld [vmem:[#allocation8 + $0x884] sm:$0xf] }
 0x2b7   : > { %3368 = vmatpush.bf16.msrb.mxu0 %v5762_v12  ;;  %3381 = vmatpush.bf16.msrb.mxu1 %v5890_v1  ;;  %v6054_v12 = vor.u32 %v6820_v61, %v6053_v7  ;;  %v6182_v1 = vor.u32 %v6852_v24, %v6181_v45  ;;  %v6058_v19 = vor.u32 %v6818_v47, %v6055_v49  ;;  %v6117_v7 = vld [vmem:[#allocation8 + $0x900] sm:$0xf]  ;;  %v6836_v61 = vld [vmem:[#allocation8 + $0x90c] sm:$0xf0]  ;;  %v6802_v47 = vld [vmem:[#allocation8 + $0x804] sm:$0xf] }
 0x2b8   : > { %v5991_v49 = vld [vmem:[#allocation8 + $0x810] sm:$0xf0] }
 0x2b9   : > { %v5994_v63 = vor.u32 %v6802_v47, %v5991_v49 }
 0x2ba   : > { %3343 = vmatpush.bf16.msra.mxu2 %v5742_v26  ;;  %3356 = vmatpush.bf16.msra.mxu3 %v5870_v31  ;;  %v6038_v31 = vor.u32 %v6816_v43, %v6037_v25  ;;  %v6831_v25 = vld [vmem:[#allocation8 + $0x8ec] sm:$0xf] }
 0x2bb   : > { %3369 = vmatpush.bf16.msrb.mxu0 %v5746_v35  ;;  %3382 = vmatpush.bf16.msrb.mxu1 %v5874_v36  ;;  %v6042_v35 = vor.u32 %v6814_v0, %v6039_v9  ;;  %v6122_v0 = vor.u32 %v6834_v11, %v6119_v50  ;;  %v6173_v50 = vld [vmem:[#allocation8 + $0x968] sm:$0xf] }
 0x2bd   : > { %3344 = vmatmul.bf16.vlgmr.msra.gmra.mxu2 %v7663_v10  ;;  %3357 = vmatmul.bf16.vlgmr.msra.gmra.mxu3 %v7665_v20 }
 0x2be   : > { %3781 = vmatpush.bf16.msrb.mxu2 %v6102_v15  ;;  %3794 = vmatpush.bf16.msrb.mxu3 %v6230_v30  ;;  %v6149_v30 = vld [vmem:[#allocation8 + $0x940] sm:$0xf] }
 0x2bf   : > { %3807 = vmatpush.bf16.msra.mxu0 %v6106_v17  ;;  %3820 = vmatpush.bf16.msra.mxu1 %v6234_v22  ;;  %v6023_v22 = vld [vmem:[#allocation8 + $0x850] sm:$0xf0] }
 0x2c0   : > { %3370 = vmatmul.bf16.vlgmr.msrb.gmra.mxu0 %v7663_v10  ;;  %3383 = vmatmul.bf16.vlgmr.msrb.gmra.mxu1 %v7665_v20  ;;  %v2377_v10 = vpop.f32.mrf.mxu0  ;;  %v2390_v20 = vpop.f32.mrf.mxu1  ;;  %v6026_v37 = vor.u32 %v6810_v58, %v6023_v22  ;;  %v7740_v58 = vrot.slane %v7653_v46, 2 }
 0x2c1   : > { %v2378_v62 = vadd.f32 %v2377_v10, %v7711_v18  ;;  %v6170_v18 = vor.u32 %v6846_v23, %v6167_v2  ;;  %v2351_v36 = vpop.f32.mrf.mxu2  ;;  %v2364_v15 = vpop.f32.mrf.mxu3  ;;  %v6109_v10 = vld [vmem:[#allocation8 + $0x8e8] sm:$0xf] }
 0x2c2   : > { %3782 = vmatpush.bf16.msrb.mxu2 %v6086_v16  ;;  %3795 = vmatpush.bf16.msrb.mxu3 %v6214_v14  ;;  %v2352_v17 = vadd.f32 %v2351_v36, %v7713_v29  ;;  %v6150_v16 = vor.u32 %v6844_v41, %v6149_v30  ;;  %v6005_v14 = vld [vmem:[#allocation8 + $0x820] sm:$0xf]  ;;  %v6806_v29 = vld [vmem:[#allocation8 + $0x824] sm:$0xf]  ;;  %v6093_v2 = vld [vmem:[#allocation8 + $0x8c8] sm:$0xf] }
 0x2c3   : > { %3808 = vmatpush.bf16.msra.mxu0 %v6090_v28  ;;  %3821 = vmatpush.bf16.msra.mxu1 %v6218_v38  ;;  %v7731_v26 = vadd.f32 %v2390_v20, %v2378_v62  ;;  %v6154_v28 = vor.u32 %v6842_v42, %v6151_v48  ;;  %v6133_v38 = vld [vmem:[#allocation8 + $0x920] sm:$0xf]  ;;  %v6006_v4 = vor.u32 %v6808_v39, %v6005_v14  ;;  %v6833_v20 = vld [vmem:[#allocation8 + $0x8f4] sm:$0xf0]  ;;  %v6095_v36 = vld [vmem:[#allocation8 + $0x8d8] sm:$0xf0] }
 0x2c4   : > { %v7734_v51 = vadd.f32 %v2364_v15, %v2352_v17  ;;  %v6118_v62 = vor.u32 %v6836_v61, %v6117_v7  ;;  %v6110_v9 = vor.u32 %v6833_v20, %v6109_v10  ;;  %v6859_v15 = vld [vmem:[#allocation8 + $0x9cc] sm:$0xf]  ;;  %v6223_v30 = vld [vmem:[#allocation8 + $0x9d8] sm:$0xf0]  ;;  %v7737_v41 = vrot.slane %v7650_v54, 2 }
 0x2c5   : > { %v6077_v42 = vld [vmem:[#allocation8 + $0x8a8] sm:$0xf]  ;;  %v6825_v48 = vld [vmem:[#allocation8 + $0x8b4] sm:$0xf0]  ;;  %v6823_v14 = vld [vmem:[#allocation8 + $0x8ac] sm:$0xf] }
 0x2c6   : > { %3783 = vmatpush.bf16.msrb.mxu2 %v6070_v5  ;;  %3796 = vmatpush.bf16.msrb.mxu3 %v6198_v6  ;;  %v6134_v5 = vor.u32 %v6840_v40, %v6133_v38  ;;  %v6804_v6 = vld [vmem:[#allocation8 + $0x80c] sm:$0xf0]  ;;  %v6079_v54 = vld [vmem:[#allocation8 + $0x8b8] sm:$0xf0]  ;;  %v6855_v39 = vld [vmem:[#allocation8 + $0x9ac] sm:$0xf]  ;;  %v6078_v46 = vor.u32 %v6825_v48, %v6077_v42 }
 0x2c7   : > { %3809 = vmatpush.bf16.msra.mxu0 %v6074_v3  ;;  %3822 = vmatpush.bf16.msra.mxu1 %v6202_v8  ;;  %v6010_v3 = vor.u32 %v6806_v29, %v6007_v56  ;;  %v6138_v8 = vor.u32 %v6838_v57, %v6135_v59  ;;  %v5990_v43 = vor.u32 %v6804_v6, %v5989_v60  ;;  %v6061_v38 = vld [vmem:[#allocation8 + $0x888] sm:$0xf]  ;;  %v6821_v40 = vld [vmem:[#allocation8 + $0x894] sm:$0xf0]  ;;  %v6819_v60 = vld [vmem:[#allocation8 + $0x88c] sm:$0xf] }
 0x2c8   : > { %v2379_v52 = vpop.f32.mrf.mxu0  ;;  %v2392_v13 = vpop.f32.mrf.mxu1  ;;  %v6082_v29 = vor.u32 %v6823_v14, %v6079_v54  ;;  %v6189_v57 = vld [vmem:[#allocation8 + $0x988] sm:$0xf]  ;;  %v6853_v59 = vld [vmem:[#allocation8 + $0x994] sm:$0xf0]  ;;  %v6191_v6 = vld [vmem:[#allocation8 + $0x998] sm:$0xf0] }
 0x2c9   : > { %v2353_v45 = vpop.f32.mrf.mxu2  ;;  %v2366_v24 = vpop.f32.mrf.mxu3  ;;  %v6226_v13 = vor.u32 %v6859_v15, %v6223_v30  ;;  %v6849_v10 = vld [vmem:[#allocation8 + $0x974] sm:$0xf0]  ;;  %v6815_v20 = vld [vmem:[#allocation8 + $0x86c] sm:$0xf]  ;;  %v6015_v14 = vld [vmem:[#allocation8 + $0x838] sm:$0xf0] }
 0x2ca   : > { %3784 = vmatpush.bf16.msrb.mxu2 %v6054_v12  ;;  %3797 = vmatpush.bf16.msrb.mxu3 %v6182_v1  ;;  %v6237_v12 = vld [vmem:[#allocation8 + $0x9e8] sm:$0xf]  ;;  %v6865_v1 = vld [vmem:[#allocation8 + $0x9f4] sm:$0xf0]  ;;  %v6839_v54 = vld [vmem:[#allocation8 + $0x92c] sm:$0xf] }
 0x2cb   : > { %3810 = vmatpush.bf16.msra.mxu0 %v6058_v19  ;;  %3823 = vmatpush.bf16.msra.mxu1 %v6186_v44  ;;  %v6111_v19 = vld [vmem:[#allocation8 + $0x8f8] sm:$0xf0]  ;;  %v6863_v44 = vld [vmem:[#allocation8 + $0x9ec] sm:$0xf]  ;;  %v6238_v23 = vor.u32 %v6865_v1, %v6237_v12  ;;  %v6045_v45 = vld [vmem:[#allocation8 + $0x868] sm:$0xf] }
 0x2cc   : > { %v6242_v33 = vor.u32 %v6863_v44, %v6239_v21  ;;  %v6817_v24 = vld [vmem:[#allocation8 + $0x874] sm:$0xf0]  ;;  %v6047_v12 = vld [vmem:[#allocation8 + $0x878] sm:$0xf0]  ;;  %v6847_v1 = vld [vmem:[#allocation8 + $0x96c] sm:$0xf] }
 0x2cd   : > { %v6029_v44 = vld [vmem:[#allocation8 + $0x848] sm:$0xf]  ;;  %v6813_v21 = vld [vmem:[#allocation8 + $0x854] sm:$0xf0] }
 0x2ce   : > { %3785 = vmatpush.bf16.msrb.mxu2 %v6038_v31  ;;  %3798 = vmatpush.bf16.msrb.mxu3 %v6166_v32  ;;  %v6829_v31 = vld [vmem:[#allocation8 + $0x8d4] sm:$0xf0]  ;;  %v6114_v32 = vor.u32 %v6831_v25, %v6111_v19  ;;  %v6175_v25 = vld [vmem:[#allocation8 + $0x978] sm:$0xf0]  ;;  %v6174_v19 = vor.u32 %v6849_v10, %v6173_v50  ;;  %v6030_v30 = vor.u32 %v6813_v21, %v6029_v44 }
 0x2cf   : > { %3811 = vmatpush.bf16.msra.mxu0 %v6042_v35  ;;  %3824 = vmatpush.bf16.msra.mxu1 %v6170_v18  ;;  %v6861_v35 = vld [vmem:[#allocation8 + $0x9d4] sm:$0xf0]  ;;  %v6827_v18 = vld [vmem:[#allocation8 + $0x8cc] sm:$0xf]  ;;  %v6094_v17 = vor.u32 %v6829_v31, %v6093_v2  ;;  %v6157_v2 = vld [vmem:[#allocation8 + $0x948] sm:$0xf] }
 0x2d0   : > { %v6222_v22 = vor.u32 %v6861_v35, %v6221_v34  ;;  %v6098_v52 = vor.u32 %v6827_v18, %v6095_v36  ;;  %v6845_v31 = vld [vmem:[#allocation8 + $0x954] sm:$0xf0]  ;;  %v6031_v34 = vld [vmem:[#allocation8 + $0x858] sm:$0xf0]  ;;  %v6843_v35 = vld [vmem:[#allocation8 + $0x94c] sm:$0xf] }
 0x2d1   : > { %v6809_v42 = vld [vmem:[#allocation8 + $0x834] sm:$0xf0] }
 0x2d2   : > { %3786 = vmatpush.bf16.msrb.mxu2 %v6022_v55  ;;  %3799 = vmatpush.bf16.msrb.mxu3 %v6150_v16  ;;  %v6205_v55 = vld [vmem:[#allocation8 + $0x9a8] sm:$0xf]  ;;  %v6857_v16 = vld [vmem:[#allocation8 + $0x9b4] sm:$0xf0] }
 0x2d3   : > { %3812 = vmatpush.bf16.msra.mxu0 %v6026_v37  ;;  %3825 = vmatpush.bf16.msra.mxu1 %v6154_v28  ;;  %v6207_v37 = vld [vmem:[#allocation8 + $0x9b8] sm:$0xf0]  ;;  %v6206_v28 = vor.u32 %v6857_v16, %v6205_v55  ;;  %v6841_v55 = vld [vmem:[#allocation8 + $0x934] sm:$0xf0]  ;;  %v6807_v16 = vld [vmem:[#allocation8 + $0x82c] sm:$0xf] }
 0x2d4   : > { %v6210_v56 = vor.u32 %v6855_v39, %v6207_v37  ;;  %v6143_v39 = vld [vmem:[#allocation8 + $0x938] sm:$0xf0] }
 0x2d6   : > { %3787 = vmatpush.bf16.msrb.mxu2 %v6006_v4  ;;  %3800 = vmatpush.bf16.msrb.mxu3 %v6134_v5  ;;  %v6063_v4 = vld [vmem:[#allocation8 + $0x898] sm:$0xf0]  ;;  %v6851_v5 = vld [vmem:[#allocation8 + $0x98c] sm:$0xf] }
 0x2d7   : > { %3813 = vmatpush.bf16.msra.mxu0 %v6010_v3  ;;  %3826 = vmatpush.bf16.msra.mxu1 %v6138_v8  ;;  %v6062_v3 = vor.u32 %v6821_v40, %v6061_v38  ;;  %v6190_v8 = vor.u32 %v6853_v59, %v6189_v57  ;;  %v6066_v49 = vor.u32 %v6819_v60, %v6063_v4  ;;  %v6125_v57 = vld [vmem:[#allocation8 + $0x908] sm:$0xf]  ;;  %v6837_v59 = vld [vmem:[#allocation8 + $0x914] sm:$0xf0]  ;;  %v6803_v60 = vld [vmem:[#allocation8 + $0x80c] sm:$0xf] }
 0x2d8   : > { %v6194_v11 = vor.u32 %v6851_v5, %v6191_v6  ;;  %v6018_v38 = vor.u32 %v6807_v16, %v6015_v14  ;;  %v6146_v40 = vor.u32 %v6839_v54, %v6143_v39  ;;  %v5999_v4 = vld [vmem:[#allocation8 + $0x818] sm:$0xf0]  ;;  %v6835_v5 = vld [vmem:[#allocation8 + $0x90c] sm:$0xf] }
 0x2d9   : > { %v6127_v6 = vld [vmem:[#allocation8 + $0x918] sm:$0xf0] }
 0x2da   : > { %3788 = vmatpush.bf16.msrb.mxu2 %v5990_v43  ;;  %3801 = vmatpush.bf16.msrb.mxu3 %v6118_v62  ;;  %v6046_v62 = vor.u32 %v6817_v24, %v6045_v45  ;;  %v6896_v16 = vld [vmem:[%s7973_s7 + $0xf0] sm:$0xff]  ;;  %v6895_v54 = vld [vmem:[%s7973_s7 + $0xe8] sm:$0xff] }
 0x2db   : > { %3814 = vmatpush.bf16.msra.mxu0 %v5994_v63  ;;  %3827 = vmatpush.bf16.msra.mxu1 %v6122_v0  ;;  %v6050_v63 = vor.u32 %v6815_v20, %v6047_v12  ;;  %v6178_v0 = vor.u32 %v6847_v1, %v6175_v25  ;;  %v6888_v14 = vld [vmem:[%s7973_s7 + $0xb0] sm:$0xff] }
 0x2dd   : > { %3789 = vmatmul.bf16.vlgmr.msrb.gmra.mxu2 %v7737_v41  ;;  %3802 = vmatmul.bf16.vlgmr.msrb.gmra.mxu3 %v7740_v58  ;;  %v2818_v7 = vpop.f32.mrf.mxu0  ;;  %v2831_v61 = vpop.f32.mrf.mxu1 }
 0x2de   : > { %3833 = vmatpush.bf16.msra.mxu2 %v6110_v9  ;;  %3846 = vmatpush.bf16.msra.mxu3 %v6238_v23  ;;  %v2832_v47 = vadd.f32 %v2831_v61, %v2818_v7  ;;  %v6126_v61 = vor.u32 %v6837_v59, %v6125_v57  ;;  %v6886_v59 = vld [vmem:[%s7973_s7 + $0xa0] sm:$0xff] }
 0x2df   : > { %3859 = vmatpush.bf16.msrb.mxu0 %v6114_v32  ;;  %3872 = vmatpush.bf16.msrb.mxu1 %v6242_v33  ;;  %v6811_v32 = vld [vmem:[#allocation8 + $0x84c] sm:$0xf] }
 0x2e0   : > { %3815 = vmatmul.bf16.vlgmr.msra.gmra.mxu0 %v7737_v41  ;;  %3828 = vmatmul.bf16.vlgmr.msra.gmra.mxu1 %v7740_v58  ;;  %v7747_v43 = vadd.f32 %v2832_v47, %v7720_v53  ;;  %v2792_v9 = vpop.f32.mrf.mxu2  ;;  %v2805_v23 = vpop.f32.mrf.mxu3  ;;  %v6159_v53 = vld [vmem:[#allocation8 + $0x958] sm:$0xf0]  ;;  %v6034_v48 = vor.u32 %v6811_v32, %v6031_v34 }
 0x2e1   : > { %v2806_v33 = vadd.f32 %v2805_v23, %v2792_v9 }
 0x2e2   : > { %3834 = vmatpush.bf16.msra.mxu2 %v6094_v17  ;;  %3847 = vmatpush.bf16.msra.mxu3 %v6222_v22  ;;  %v6158_v17 = vor.u32 %v6845_v31, %v6157_v2  ;;  %v6013_v22 = vld [vmem:[#allocation8 + $0x828] sm:$0xf] }
 0x2e3   : > { %3860 = vmatpush.bf16.msrb.mxu0 %v6098_v52  ;;  %3873 = vmatpush.bf16.msrb.mxu1 %v6226_v13  ;;  %v7750_v18 = vadd.f32 %v2806_v33, %v7724_v27  ;;  %v6162_v52 = vor.u32 %v6843_v35, %v6159_v53  ;;  %v6141_v13 = vld [vmem:[#allocation8 + $0x928] sm:$0xf]  ;;  %v6014_v27 = vor.u32 %v6809_v42, %v6013_v22 }
 0x2e4   : > { %v6142_v37 = vor.u32 %v6841_v55, %v6141_v13  ;;  %v6897_v13 = vld [vmem:[%s7973_s7 + $0xf8] sm:$0xff] }
 0x2e5   : > { %v2820_v36 = vpop.f32.mrf.mxu0  ;;  %v2833_v15 = vpop.f32.mrf.mxu1  ;;  %v6889_v55 = vld [vmem:[%s7973_s7 + $0xb8] sm:$0xff] }
 0x2e6   : > { %3835 = vmatpush.bf16.msra.mxu2 %v6078_v46  ;;  %3848 = vmatpush.bf16.msra.mxu3 %v6206_v28  ;;  %v5997_v46 = vld [vmem:[#allocation8 + $0x808] sm:$0xf]  ;;  %v6805_v28 = vld [vmem:[#allocation8 + $0x814] sm:$0xf0] }
 0x2e7   : > { %3861 = vmatpush.bf16.msrb.mxu0 %v6082_v29  ;;  %3874 = vmatpush.bf16.msrb.mxu1 %v6210_v56  ;;  %v5998_v7 = vor.u32 %v6805_v28, %v5997_v46  ;;  %v6894_v46 = vld [vmem:[%s7973_s7 + $0xe0] sm:$0xff] }
 0x2e8   : > { %v2794_v29 = vpop.f32.mrf.mxu2  ;;  %v2807_v56 = vpop.f32.mrf.mxu3 }
 0x2ea   : > { %3836 = vmatpush.bf16.msra.mxu2 %v6062_v3  ;;  %3849 = vmatpush.bf16.msra.mxu3 %v6190_v8  ;;  %v6002_v3 = vor.u32 %v6803_v60, %v5999_v4  ;;  %v6130_v8 = vor.u32 %v6835_v5, %v6127_v6  ;;  %v6893_v6 = vld [vmem:[%s7973_s7 + $0xd8] sm:$0xff] }
 0x2eb   : > { %3862 = vmatpush.bf16.msrb.mxu0 %v6066_v49  ;;  %3875 = vmatpush.bf16.msrb.mxu1 %v6194_v11 }
 0x2ee   : > { %3837 = vmatpush.bf16.msra.mxu2 %v6046_v62  ;;  %3850 = vmatpush.bf16.msra.mxu3 %v6174_v19 }
 0x2ef   : > { %3863 = vmatpush.bf16.msrb.mxu0 %v6050_v63  ;;  %3876 = vmatpush.bf16.msrb.mxu1 %v6178_v0 }
 0x2f2   : > { %3838 = vmatpush.bf16.msra.mxu2 %v6030_v30  ;;  %3851 = vmatpush.bf16.msra.mxu3 %v6158_v17 }
 0x2f3   : > { %3864 = vmatpush.bf16.msrb.mxu0 %v6034_v48  ;;  %3877 = vmatpush.bf16.msrb.mxu1 %v6162_v52 }
 0x2f6   : > { %3839 = vmatpush.bf16.msra.mxu2 %v6014_v27  ;;  %3852 = vmatpush.bf16.msra.mxu3 %v6142_v37  ;;  %v6887_v27 = vld [vmem:[%s7973_s7 + $0xa8] sm:$0xff] }
 0x2f7   : > { %3865 = vmatpush.bf16.msrb.mxu0 %v6018_v38  ;;  %3878 = vmatpush.bf16.msrb.mxu1 %v6146_v40  ;;  %v510_v38 = vld [vmem:[#allocation10] sm:$0x3] }
 0x2f8   : > { %v3893_v5 = vperm.slane %v510_v38, 1 }
 0x2fa   : > { %3840 = vmatpush.bf16.msra.mxu2 %v5998_v7  ;;  %3853 = vmatpush.bf16.msra.mxu3 %v6126_v61 }
 0x2fb   : > { %3866 = vmatpush.bf16.msrb.mxu0 %v6002_v3  ;;  %3879 = vmatpush.bf16.msrb.mxu1 %v6130_v8 }
 0x2fd   : > { %3841 = vmatmul.bf16.vlgmr.msra.gmra.mxu2 %v7737_v41  ;;  %3854 = vmatmul.bf16.vlgmr.msra.gmra.mxu3 %v7740_v58  ;;  %v2870_v45 = vpop.f32.mrf.mxu0  ;;  %v2883_v24 = vpop.f32.mrf.mxu1 }
 0x2fe   : > { %3867 = vmatmul.bf16.vlgmr.msrb.gmra.mxu0 %v7737_v41  ;;  %3880 = vmatmul.bf16.vlgmr.msrb.gmra.mxu1 %v7740_v58  ;;  %v2884_v47 = vadd.f32 %v2883_v24, %v2870_v45 }
 0x2ff   : > { %4532 = vmatpush.bf16.msra.mxu1 %v6897_v13  ;;  %4519 = vmatpush.bf16.msra.mxu0 %v6889_v55  ;;  %v6869_v13 = vld [vmem:[%s7973_s7 + $0x18] sm:$0xff]  ;;  %v6875_v55 = vld [vmem:[%s7973_s7 + $0x48] sm:$0xff] }
 0x300   : > { %v2890_v49 = vadd.f32 %v2884_v47, %v7731_v26  ;;  %v2844_v11 = vpop.f32.mrf.mxu2  ;;  %v2857_v50 = vpop.f32.mrf.mxu3  ;;  %v6885_v47 = vld [vmem:[%s7973_s7 + $0x98] sm:$0xff] }
 0x301   : > { %v2858_v10 = vadd.f32 %v2857_v50, %v2844_v11  ;;  %v6892_v11 = vld [vmem:[%s7973_s7 + $0xd0] sm:$0xff] }
 0x303   : > { %v7758_v20 = vadd.f32 %v2858_v10, %v7734_v51  ;;  %4533 = vmatpush.bf16.msra.mxu1 %v6896_v16  ;;  %4520 = vmatpush.bf16.msra.mxu0 %v6888_v14  ;;  %v6868_v16 = vld [vmem:[%s7973_s7 + $0x10] sm:$0xff]  ;;  %v6874_v14 = vld [vmem:[%s7973_s7 + $0x40] sm:$0xff] }
 0x305   : > { %v2872_v12 = vpop.f32.mrf.mxu0  ;;  %v2885_v1 = vpop.f32.mrf.mxu1 }
 0x306   : > { %v3892_v12 = vperm.slane %v510_v38, 0  ;;  %v6904_v38 = vld [vmem:[%s7973_s7 + $0x130] sm:$0xff] }
 0x307   : > { %4534 = vmatpush.bf16.msra.mxu1 %v6895_v54  ;;  %4521 = vmatpush.bf16.msra.mxu0 %v6887_v27  ;;  %v6867_v54 = vld [vmem:[%s7973_s7 + $0x8] sm:$0xff]  ;;  %v6866_v27 = vld [vmem:[%s7973_s7] sm:$0xff] }
 0x308   : > { %v2846_v25 = vpop.f32.mrf.mxu2  ;;  %v2859_v62 = vpop.f32.mrf.mxu3 }
 0x30b   : > { %4535 = vmatpush.bf16.msra.mxu1 %v6894_v46  ;;  %4522 = vmatpush.bf16.msra.mxu0 %v6886_v59  ;;  %v6905_v46 = vld [vmem:[%s7973_s7 + $0x138] sm:$0xff]  ;;  %v6919_v59 = vld [vmem:[%s7973_s7 + $0x1a8] sm:$0xff] }
 0x30f   : > { %4536 = vmatpush.bf16.msra.mxu1 %v6893_v6  ;;  %4523 = vmatpush.bf16.msra.mxu0 %v6885_v47  ;;  %v6918_v6 = vld [vmem:[%s7973_s7 + $0x1a0] sm:$0xff]  ;;  %v6923_v47 = vld [vmem:[%s7973_s7 + $0x1c8] sm:$0xff] }
 0x313   : > { %4537 = vmatpush.bf16.msra.mxu1 %v6892_v11  ;;  %v6906_v11 = vld [vmem:[%s7973_s7 + $0x140] sm:$0xff] }
 0x31d   : > { %v3319_v19 = vpop.f32.mrf.mxu0  ;;  %v3332_v44 = vpop.f32.mrf.mxu1 }
 0x31e   : > { %v3333_v41 = vadd.f32 %v3332_v44, %v3319_v19 }
 0x320   : > { %v3389_v58 = vadd.f32 %v3333_v41, %v7747_v43  ;;  %v3293_v21 = vpop.f32.mrf.mxu2  ;;  %v3306_v63 = vpop.f32.mrf.mxu3  ;;  %v6891_v41 = vld [vmem:[%s7973_s7 + $0xc8] sm:$0xff] }
 0x321   : > { %v3307_v0 = vadd.f32 %v3306_v63, %v3293_v21  ;;  %4538 = vmatpush.bf16.msra.mxu1 %v6891_v41 }
 0x323   : > { %v3388_v26 = vadd.f32 %v3307_v0, %v7750_v18 }
 0x325   : > { %v3321_v9 = vpop.f32.mrf.mxu0  ;;  %v3334_v23 = vpop.f32.mrf.mxu1 }
 0x326   : > { %v6881_v9 = vld [vmem:[%s7973_s7 + $0x78] sm:$0xff] }
 0x328   : > { %v3295_v2 = vpop.f32.mrf.mxu2  ;;  %v3308_v31 = vpop.f32.mrf.mxu3 }
 0x329   : > { %v6890_v2 = vld [vmem:[%s7973_s7 + $0xc0] sm:$0xff]  ;;  %v6883_v31 = vld [vmem:[%s7973_s7 + $0x88] sm:$0xff] }
 0x32a   : > { %4539 = vmatpush.bf16.msra.mxu1 %v6890_v2 }
 0x33d   : > { %v3371_v51 = vpop.f32.mrf.mxu0  ;;  %v3384_v32 = vpop.f32.mrf.mxu1 }
 0x33e   : > { %v3385_v39 = vadd.f32 %v3384_v32, %v3371_v51  ;;  %v6929_v32 = vld [vmem:[%s7973_s7 + $0x1f8] sm:$0xff] }
 0x33f   : > { %4584 = vmatpush.bf16.msrb.mxu1 %v6929_v32 }
 0x340   : > { %v3345_v33 = vpop.f32.mrf.mxu2  ;;  %v3358_v34 = vpop.f32.mrf.mxu3  ;;  %v3391_v29 = vadd.f32 %v3385_v39, %v2890_v49  ;;  %v6913_v39 = vld [vmem:[%s7973_s7 + $0x178] sm:$0xff] }
 0x341   : > { %v3359_v57 = vadd.f32 %v3358_v34, %v3345_v33  ;;  %v6880_v33 = vld [vmem:[%s7973_s7 + $0x70] sm:$0xff] }
 0x343   : > { %v3390_v45 = vadd.f32 %v3359_v57, %v7758_v20  ;;  %v6884_v20 = vld [vmem:[%s7973_s7 + $0x90] sm:$0xff]  ;;  %v6926_v57 = vld [vmem:[%s7973_s7 + $0x1e0] sm:$0xff] }
 0x344   : > { %4524 = vmatpush.bf16.msra.mxu0 %v6884_v20 }
 0x345   : > { %v3373_v35 = vpop.f32.mrf.mxu0  ;;  %v3386_v53 = vpop.f32.mrf.mxu1 }
 0x346   : > { %v6873_v35 = vld [vmem:[%s7973_s7 + $0x38] sm:$0xff]  ;;  %v6882_v53 = vld [vmem:[%s7973_s7 + $0x80] sm:$0xff] }
 0x348   : > { %v3347_v36 = vpop.f32.mrf.mxu2  ;;  %v3360_v15 = vpop.f32.mrf.mxu3  ;;  %4525 = vmatpush.bf16.msra.mxu0 %v6883_v31 }
 0x349   : > { %v6921_v36 = vld [vmem:[%s7973_s7 + $0x1b8] sm:$0xff]  ;;  %v6928_v15 = vld [vmem:[%s7973_s7 + $0x1f0] sm:$0xff] }
 0x34a   : > { %4585 = vmatpush.bf16.msrb.mxu1 %v6928_v15 }
 0x34c   : > { %4526 = vmatpush.bf16.msra.mxu0 %v6882_v53 }
 0x350   : > { %4571 = vmatpush.bf16.msrb.mxu0 %v6921_v36  ;;  %v4108_v36 = vld [vmem:[#allocation13] sm:$0x1] }
 0x35d   : > { %v3816_v30 = vpop.f32.mrf.mxu0  ;;  %v3829_v17 = vpop.f32.mrf.mxu1 }
 0x35e   : > { %v3830_v37 = vadd.f32 %v3829_v17, %v3816_v30  ;;  %v6879_v30 = vld [vmem:[%s7973_s7 + $0x68] sm:$0xff]  ;;  %v6872_v17 = vld [vmem:[%s7973_s7 + $0x30] sm:$0xff] }
 0x360   : > { %v3790_v43 = vpop.f32.mrf.mxu2  ;;  %v3803_v22 = vpop.f32.mrf.mxu3  ;;  %v3886_v60 = vadd.f32 %v3830_v37, %v3389_v58  ;;  %v6912_v37 = vld [vmem:[%s7973_s7 + $0x170] sm:$0xff] }
 0x361   : > { %v3804_v7 = vadd.f32 %v3803_v22, %v3790_v43  ;;  %v6927_v43 = vld [vmem:[%s7973_s7 + $0x1e8] sm:$0xff]  ;;  %v6878_v22 = vld [vmem:[%s7973_s7 + $0x60] sm:$0xff] }
 0x362   : > { %4586 = vmatpush.bf16.msrb.mxu1 %v6927_v43 }
 0x363   : > { %v3885_v50 = vadd.f32 %v3804_v7, %v3388_v26  ;;  %v513_v26 = vld [vmem:[#allocation11] sm:$0xf] }
 0x364   : > { %v6908_v7 = vld [vmem:[%s7973_s7 + $0x150] sm:$0xff] }
 0x365   : > { %v3818_v42 = vpop.f32.mrf.mxu0  ;;  %v3831_v48 = vpop.f32.mrf.mxu1 }
 0x366   : > { %v6871_v42 = vld [vmem:[%s7973_s7 + $0x28] sm:$0xff]  ;;  %v6877_v48 = vld [vmem:[%s7973_s7 + $0x58] sm:$0xff]  ;;  %4587 = vmatpush.bf16.msrb.mxu1 %v6926_v57 }
 0x368   : > { %v3792_v52 = vpop.f32.mrf.mxu2  ;;  %v3805_v18 = vpop.f32.mrf.mxu3 }
 0x369   : > { %v6870_v52 = vld [vmem:[%s7973_s7 + $0x20] sm:$0xff]  ;;  %v6876_v18 = vld [vmem:[%s7973_s7 + $0x50] sm:$0xff] }
 0x37b   : > { %v3868_v28 = vpop.f32.mrf.mxu0  ;;  %v3881_v40 = vpop.f32.mrf.mxu1 }
 0x37c   : > { %v3882_v56 = vadd.f32 %v3881_v40, %v3868_v28  ;;  %v6911_v28 = vld [vmem:[%s7973_s7 + $0x168] sm:$0xff]  ;;  %v6920_v40 = vld [vmem:[%s7973_s7 + $0x1b0] sm:$0xff] }
 0x37d   : > { %4572 = vmatpush.bf16.msrb.mxu0 %v6920_v40  ;;  %v4598_v40 = vld [vmem:[#allocation14] sm:$0x1] }
 0x37e   : > { %v3888_v4 = vadd.f32 %v3882_v56, %v3391_v29  ;;  %v6910_v29 = vld [vmem:[%s7973_s7 + $0x160] sm:$0xff]  ;;  %v6903_v56 = vld [vmem:[%s7973_s7 + $0x128] sm:$0xff] }
 0x380   : > { %v3890_v61 = vmax.f32 %v3886_v60, %v3888_v4  ;;  %v3842_v3 = vpop.f32.mrf.mxu2  ;;  %v3855_v8 = vpop.f32.mrf.mxu3  ;;  %v6909_v60 = vld [vmem:[%s7973_s7 + $0x158] sm:$0xff]  ;;  %v6902_v4 = vld [vmem:[%s7973_s7 + $0x120] sm:$0xff] }
 0x381   : > { %v3856_v24 = vadd.f32 %v3855_v8, %v3842_v3  ;;  %4573 = vmatpush.bf16.msrb.mxu0 %v6919_v59  ;;  %v6924_v3 = vld [vmem:[%s7973_s7 + $0x1d0] sm:$0xff]  ;;  %v6917_v8 = vld [vmem:[%s7973_s7 + $0x198] sm:$0xff]  ;;  %v4604_v59 = vld [vmem:[#allocation2] sm:$0x1] }
 0x382   : > { %v3897_v49 = vadd.f32 %v3893_v5, %v3890_v61  ;;  %v6925_v5 = vld [vmem:[%s7973_s7 + $0x1d8] sm:$0xff] }
 0x383   : > { %v3887_v10 = vadd.f32 %v3856_v24, %v3390_v45  ;;  %v3870_v1 = vpop.f32.mrf.mxu0  ;;  %v3883_v25 = vpop.f32.mrf.mxu1  ;;  %4588 = vmatpush.bf16.msrb.mxu1 %v6925_v5  ;;  %v6901_v61 = vld [vmem:[%s7973_s7 + $0x118] sm:$0xff]  ;;  %v6907_v45 = vld [vmem:[%s7973_s7 + $0x148] sm:$0xff]  ;;  %v6900_v24 = vld [vmem:[%s7973_s7 + $0x110] sm:$0xff] }
 0x384   : > { %v3899_v62 = vmax.f32 %v3897_v49, 0.0  ;;  %v6916_v49 = vld [vmem:[%s7973_s7 + $0x190] sm:$0xff]  ;;  %v6898_v1 = vld [vmem:[%s7973_s7 + $0x100] sm:$0xff] }
 0x385   : > { %v3889_v19 = vmax.f32 %v3885_v50, %v3887_v10  ;;  %4574 = vmatpush.bf16.msrb.mxu0 %v6918_v6  ;;  %v6899_v50 = vld [vmem:[%s7973_s7 + $0x108] sm:$0xff]  ;;  %v6922_v10 = vld [vmem:[%s7973_s7 + $0x1c0] sm:$0xff] }
 0x386   : > { %v3903_v44 = vrot.slane %v3899_v62, 1  ;;  %v6914_v25 = vld [vmem:[%s7973_s7 + $0x180] sm:$0xff] }
 0x387   : > { %v3896_v58 = vadd.f32 %v3892_v12, %v3889_v19  ;;  %4589 = vmatpush.bf16.msrb.mxu1 %v6924_v3  ;;  %v6915_v12 = vld [vmem:[%s7973_s7 + $0x188] sm:$0xff] }
 0x388   : > { %v3907_v21 = vmax.f32 %v3899_v62, %v3903_v44  ;;  %v3844_v63 = vpop.f32.mrf.mxu2  ;;  %v3857_v0 = vpop.f32.mrf.mxu3 }
 0x389   : > { %v3898_v23 = vmax.f32 %v3896_v58, 0.0  ;;  %4575 = vmatpush.bf16.msrb.mxu0 %v6917_v8 }
 0x38a   : > { %6245 = vmatpush.msk.msrb.mxu3 %vm828_vm4, %v3907_v21 }
 0x38b   : > { %v3902_v51 = vrot.slane %v3898_v23, 1  ;;  %6246 = vmatmul.msk.f32.vlgmr.msrb.gmra.mxu3 %vm3908_vm6, %v513_v26  ;;  %4590 = vmatpush.bf16.msrb.mxu1 %v6923_v47 }
 0x38c   : > { %4506 = vmatpush.bf16.msra.mxu3 %v6881_v9 }
 0x38d   : > { %v3906_v34 = vmax.f32 %v3898_v23, %v3902_v51  ;;  %4576 = vmatpush.bf16.msrb.mxu0 %v6916_v49 }
 0x38f   : > { %6243 = vmatpush.msk.msrb.mxu2 %vm828_vm4, %v3906_v34  ;;  %4591 = vmatpush.bf16.msrb.mxu1 %v6922_v10 }
 0x390   : > { %6244 = vmatmul.msk.f32.vlgmr.msrb.gmra.mxu2 %vm3908_vm6, %v513_v26  ;;  %4507 = vmatpush.bf16.msra.mxu3 %v6880_v33 }
 0x391   : > { %4493 = vmatpush.bf16.msra.mxu2 %v6873_v35  ;;  %4577 = vmatpush.bf16.msrb.mxu0 %v6915_v12 }
 0x394   : > { %4508 = vmatpush.bf16.msra.mxu3 %v6879_v30 }
 0x395   : > { %4494 = vmatpush.bf16.msra.mxu2 %v6872_v17  ;;  %4578 = vmatpush.bf16.msrb.mxu0 %v6914_v25 }
 0x398   : > { %4509 = vmatpush.bf16.msra.mxu3 %v6878_v22 }
 0x399   : > { %4495 = vmatpush.bf16.msra.mxu2 %v6871_v42 }
 0x39c   : > { %4510 = vmatpush.bf16.msra.mxu3 %v6877_v48 }
 0x39d   : > { %4496 = vmatpush.bf16.msra.mxu2 %v6870_v52 }
 0x3a0   : > { %4511 = vmatpush.bf16.msra.mxu3 %v6876_v18 }
 0x3a1   : > { %4497 = vmatpush.bf16.msra.mxu2 %v6869_v13 }
 0x3a4   : > { %4512 = vmatpush.bf16.msra.mxu3 %v6875_v55 }
 0x3a5   : > { %4498 = vmatpush.bf16.msra.mxu2 %v6868_v16 }
 0x3a8   : > { %4513 = vmatpush.bf16.msra.mxu3 %v6874_v14 }
 0x3a9   : > { %4499 = vmatpush.bf16.msra.mxu2 %v6867_v54 }
 0x3ac   : > { %4558 = vmatpush.bf16.msrb.mxu3 %v6913_v39 }
 0x3ad   : > { %4500 = vmatpush.bf16.msra.mxu2 %v6866_v27 }
 0x3b0   : > { %4559 = vmatpush.bf16.msrb.mxu3 %v6912_v37 }
 0x3b1   : > { %4545 = vmatpush.bf16.msrb.mxu2 %v6905_v46 }
 0x3b4   : > { %4560 = vmatpush.bf16.msrb.mxu3 %v6911_v28 }
 0x3b5   : > { %4546 = vmatpush.bf16.msrb.mxu2 %v6904_v38 }
 0x3b8   : > { %4561 = vmatpush.bf16.msrb.mxu3 %v6910_v29 }
 0x3b9   : > { %4547 = vmatpush.bf16.msrb.mxu2 %v6903_v56 }
 0x3bc   : > { %4562 = vmatpush.bf16.msrb.mxu3 %v6909_v60 }
 0x3bd   : > { %4548 = vmatpush.bf16.msrb.mxu2 %v6902_v4 }
 0x3c0   : > { %4563 = vmatpush.bf16.msrb.mxu3 %v6908_v7 }
 0x3c1   : > { %4549 = vmatpush.bf16.msrb.mxu2 %v6901_v61 }
 0x3c4   : > { %4564 = vmatpush.bf16.msrb.mxu3 %v6907_v45 }
 0x3c5   : > { %4550 = vmatpush.bf16.msrb.mxu2 %v6900_v24 }
 0x3c8   : > { %4565 = vmatpush.bf16.msrb.mxu3 %v6906_v11 }
 0x3c9   : > { %4551 = vmatpush.bf16.msrb.mxu2 %v6899_v50 }
 0x3cd   : > { %4552 = vmatpush.bf16.msrb.mxu2 %v6898_v1 }
 0x40e   : > { %v3955_v62 = vpop.f32.mrf.mxu3 }
 0x40f   : > { %v3961_v19 = vrot.slane %v3955_v62, 1  ;;  %v3973_v20 = vpack.c.bf16 %v3955_v62, %v3955_v62  ;;  %v3965_v0 = vrot.slane %v3955_v62, 2  ;;  %v3969_v26 = vrot.slane %v3955_v62, 3 }
 0x411   : > { %v3975_v44 = vpack.c.bf16 %v3961_v19, %v3961_v19  ;;  %4514 = vmatmul.bf16.vlgmr.msra.gmra.mxu3 %v3973_v20  ;;  %v3977_v9 = vpack.c.bf16 %v3965_v0, %v3965_v0  ;;  %v3979_v2 = vpack.c.bf16 %v3969_v26, %v3969_v26 }
 0x413   : > { %4540 = vmatmul.bf16.vlgmr.msra.gmra.mxu1 %v3975_v44  ;;  %v3935_v41 = vpop.f32.mrf.mxu2 }
 0x414   : > { %v3960_v58 = vrot.slane %v3935_v41, 1  ;;  %v3972_v21 = vpack.c.bf16 %v3935_v41, %v3935_v41  ;;  %v3964_v23 = vrot.slane %v3935_v41, 2  ;;  %v3968_v31 = vrot.slane %v3935_v41, 3 }
 0x416   : > { %v3974_v63 = vpack.c.bf16 %v3960_v58, %v3960_v58  ;;  %4501 = vmatmul.bf16.vlgmr.msra.gmra.mxu2 %v3972_v21  ;;  %v3976_v51 = vpack.c.bf16 %v3964_v23, %v3964_v23  ;;  %v3978_v32 = vpack.c.bf16 %v3968_v31, %v3968_v31 }
 0x418   : > { %4527 = vmatmul.bf16.vlgmr.msra.gmra.mxu0 %v3974_v63 }
 0x421   : > { %4566 = vmatmul.bf16.vlgmr.msrb.gmra.mxu3 %v3977_v9 }
 0x423   : > { %4592 = vmatmul.bf16.vlgmr.msrb.gmra.mxu1 %v3979_v2 }
 0x426   : > { %4553 = vmatmul.bf16.vlgmr.msrb.gmra.mxu2 %v3976_v51 }
 0x428   : > { %4579 = vmatmul.bf16.vlgmr.msrb.gmra.mxu0 %v3978_v32 }
 0x490   : > { %v4541_v33 = vpop.f32.mrf.mxu1 }
 0x494   : > { %v4515_v34 = vpop.f32.mrf.mxu3 }
 0x495   : > { %v4528_v35 = vpop.f32.mrf.mxu0 }
 0x498   : > { %v4543_v53 = vpop.f32.mrf.mxu1 }
 0x499   : > { %v4502_v15 = vpop.f32.mrf.mxu2 }
 0x49a   : > { %v4503_v30 = vadd.f32 %v4502_v15, %v4108_v36 }
 0x49c   : > { %v4517_v17 = vpop.f32.mrf.mxu3  ;;  %v4516_v22 = vadd.f32 %v4515_v34, %v4503_v30 }
 0x49d   : > { %v4530_v43 = vpop.f32.mrf.mxu0 }
 0x49e   : > { %v4529_v18 = vadd.f32 %v4528_v35, %v4516_v22 }
 0x4a0   : > { %v4593_v42 = vpop.f32.mrf.mxu1  ;;  %v4542_v16 = vadd.f32 %v4541_v33, %v4529_v18 }
 0x4a1   : > { %v4504_v48 = vpop.f32.mrf.mxu2 }
 0x4a4   : > { %v4567_v52 = vpop.f32.mrf.mxu3 }
 0x4a5   : > { %v4580_v13 = vpop.f32.mrf.mxu0 }
 0x4a8   : > { %v4595_v55 = vpop.f32.mrf.mxu1 }
 0x4a9   : > { %v4554_v14 = vpop.f32.mrf.mxu2 }
 0x4aa   : > { %v4555_v54 = vadd.f32 %v4554_v14, %v4542_v16 }
 0x4ac   : > { %v4568_v39 = vadd.f32 %v4567_v52, %v4555_v54  ;;  %v4569_v27 = vpop.f32.mrf.mxu3 }
 0x4ad   : > { %v4582_v37 = vpop.f32.mrf.mxu0 }
 0x4ae   : > { %v4581_v46 = vadd.f32 %v4580_v13, %v4568_v39 }
 0x4b0   : > { %v4594_v28 = vadd.f32 %v4593_v42, %v4581_v46 }
 0x4b1   : > { %v4556_v38 = vpop.f32.mrf.mxu2 }
 0x4b2   : > { %v4597_v29 = vmax.f32 %v4594_v28, 0.0 }
 0x4b4   : > { %v4599_v56 = vmul.f32 %v4598_v40, %v4597_v29 }
 0x4b6   : > { %v4601_v57 = vsel %vm4600_vm7, %v4599_v56, 0.0 }
 0x4b7   : > { %4602 = vadd.xlane.f32.xlu0 %v4601_v57 }
 0x52a   : > { %v4603_v60 = vpop.xlane.xlu0 %4602 }
 0x52b   : > { %v4605_v4 = vadd.f32 %v4604_v59, %v4603_v60 }
 0x52d   : > { %4607 = vst.msk [vmem:[%s507_s30] sm:$0x1] %vm4606_vm8, %v4605_v4 }
 0x52e PF: > { %s28_s19 = sadd.s32 1, %s7289_s19  }
 0x52f   : > { %p25_p7 = scmp.ge.s32.totalorder %s28_s19, 4  }
 0x531   :  { %27 = sbr.rel (!%p25_p7) target bundleno = 8 (0x8), region = 135 }
 0x536   :  { %4625 = vsyncpa [#allocation4], 1 }
 0x537   :  { %4627 = vsyncpa [#allocation4 + $0x1], 1 }
 0x538   :  { %4628 = vsyncpa [#allocation6], 1 }
 0x539   :  { %4629 = vsyncpa [#allocation9], 1 }
 0x53a   :  { %4630 = vsyncpa [#allocation12], 1 }
 0x53b   :  { %4631 = vsyncpa [#allocation15], 1 }

</bundles_post_ra>
